<compile_context>
chip_gen: v7x
topology: tpu7x:2x2x1
jax: 0.10.0
libtpu: 0.0.40
codegen_flags: <defaults>
</compile_context>

<pallas_src>
import functools
import math

import jax
import jax.numpy as jnp
from jax.experimental import pallas as pl
from jax.experimental.pallas import tpu as pltpu

NEG_INF = -1.0e9


# ---------------------------------------------------------------------------
# In-kernel helpers (traced inside Pallas kernel bodies; all fp32)
# ---------------------------------------------------------------------------


def _ln(x, g, b):
    """LayerNorm over the last dim. x: (L, D), g/b: (1, D)."""
    mu = jnp.mean(x, axis=-1, keepdims=True)
    xc = x - mu
    var = jnp.mean(xc * xc, axis=-1, keepdims=True)
    return xc * jax.lax.rsqrt(var + 1e-5) * g + b


def _softmax_rows(s):
    s = s - jnp.max(s, axis=-1, keepdims=True)
    p = jnp.exp(s)
    return p * pl.reciprocal(jnp.sum(p, axis=-1, keepdims=True), approx=True)


def _mha(q, k, v, mask_add, wo, bo, *, n_heads, scale):
    """Multi-head attention + output projection.

    q: (Lq, D), k/v: (Lk, D) with heads packed on the lane axis,
    mask_add: (1, Lk) additive key mask or None, wo: (D, D), bo: (1, D).
    """
    d = q.shape[-1]
    dh = d // n_heads
    out = None
    for h in range(n_heads):  # static unroll (n_heads is small)
        sl = slice(h * dh, (h + 1) * dh)
        qh, kh, vh = q[:, sl], k[:, sl], v[:, sl]
        # q @ k^T via dot_general contracting the last dims (no explicit .T).
        s = jax.lax.dot_general(
            qh, kh, (((1,), (1,)), ((), ())),
            preferred_element_type=jnp.float32) * scale           # (Lq, Lk)
        if mask_add is not None:
            s = s + mask_add
        p = _softmax_rows(s)
        ph = jnp.dot(p, vh, preferred_element_type=jnp.float32)   # (Lq, dh)
        # concat(heads) @ wo == sum_h head_h @ wo[h*dh:(h+1)*dh, :]
        c = jnp.dot(ph, wo[sl, :], preferred_element_type=jnp.float32)
        out = c if out is None else out + c
    return out + bo


# ---------------------------------------------------------------------------
# Fused encoder / decoder stack kernels
# ---------------------------------------------------------------------------


def _encoder_stack_kernel(
    x0_ref, mask_ref,
    wqkv_ref, bqkv_ref, wo_ref, bo_ref, ln1g_ref, ln1b_ref,
    w1_ref, b1_ref, w2_ref, b2_ref, ln2g_ref, ln2b_ref,
    o_ref, *, n_heads, scale,
):
    layer = pl.program_id(1)

    # Output block stays resident across the layer axis -> use it as the carry.
    @pl.when(layer == 0)
    def _():
        o_ref[...] = x0_ref[...]

    x = o_ref[0]                # (C, D)
    mask = mask_ref[0]          # (1, C) additive key mask
    d = x.shape[-1]

    # self attention (fused QKV projection)
    qkv = jnp.dot(x, wqkv_ref[0], preferred_element_type=jnp.float32) + bqkv_ref[0]
    a = _mha(qkv[:, :d], qkv[:, d:2 * d], qkv[:, 2 * d:], mask,
             wo_ref[0], bo_ref[0], n_heads=n_heads, scale=scale)
    x = _ln(x + a, ln1g_ref[0], ln1b_ref[0])

    # position-wise FFN
    h = jnp.maximum(
        jnp.dot(x, w1_ref[0], preferred_element_type=jnp.float32) + b1_ref[0], 0.0)
    f = jnp.dot(h, w2_ref[0], preferred_element_type=jnp.float32) + b2_ref[0]
    x = _ln(x + f, ln2g_ref[0], ln2b_ref[0])

    o_ref[0] = x


def _decoder_stack_kernel(
    x0_ref, enc_ref, mask_ref,
    wsqkv_ref, bsqkv_ref, wso_ref, bso_ref, ln1g_ref, ln1b_ref,
    wcq_ref, bcq_ref, wckv_ref, bckv_ref, wco_ref, bco_ref, ln2g_ref, ln2b_ref,
    w1_ref, b1_ref, w2_ref, b2_ref, ln3g_ref, ln3b_ref,
    outw_ref, outb_ref,
    logits_ref,
    x_scr, *, n_heads, scale, n_layers,
):
    layer = pl.program_id(1)

    # VMEM scratch carries the activations across layers (re-init per batch).
    @pl.when(layer == 0)
    def _():
        x_scr[...] = x0_ref[0]

    x = x_scr[...]              # (L, D)
    enc = enc_ref[0]            # (C, D)
    mask = mask_ref[0]          # (1, C) additive src key mask
    d = x.shape[-1]

    # self attention (trg_mask is None in Seq2Seq.forward -> no mask at all)
    qkv = jnp.dot(x, wsqkv_ref[0], preferred_element_type=jnp.float32) + bsqkv_ref[0]
    a = _mha(qkv[:, :d], qkv[:, d:2 * d], qkv[:, 2 * d:], None,
             wso_ref[0], bso_ref[0], n_heads=n_heads, scale=scale)
    x = _ln(x + a, ln1g_ref[0], ln1b_ref[0])

    # cross attention over the encoder output with the src padding mask
    q = jnp.dot(x, wcq_ref[0], preferred_element_type=jnp.float32) + bcq_ref[0]
    kv = jnp.dot(enc, wckv_ref[0], preferred_element_type=jnp.float32) + bckv_ref[0]
    ca = _mha(q, kv[:, :d], kv[:, d:], mask,
              wco_ref[0], bco_ref[0], n_heads=n_heads, scale=scale)
    x = _ln(x + ca, ln2g_ref[0], ln2b_ref[0])

    # position-wise FFN
    h = jnp.maximum(
        jnp.dot(x, w1_ref[0], preferred_element_type=jnp.float32) + b1_ref[0], 0.0)
    f = jnp.dot(h, w2_ref[0], preferred_element_type=jnp.float32) + b2_ref[0]
    x = _ln(x + f, ln3g_ref[0], ln3b_ref[0])

    x_scr[...] = x

    # fused, lane-dense (vocab padded to 128) output projection on last layer
    @pl.when(layer == n_layers - 1)
    def _():
        logits_ref[0] = (
            jnp.dot(x, outw_ref[...], preferred_element_type=jnp.float32)
            + outb_ref[...])


# ---------------------------------------------------------------------------
# pallas_call wrappers
# ---------------------------------------------------------------------------


def encoder_stack(x0_BCD, mask_B1C, p, cfg):
    b, c, d = x0_BCD.shape
    nl, nh, ff = cfg["n_layers"], cfg["n_heads"], cfg["d_ff"]
    scale = 1.0 / math.sqrt(d // nh)

    per_batch = lambda i, k: (i, 0, 0)
    per_layer = lambda i, k: (k, 0, 0)

    in_specs = [
        pl.BlockSpec((1, c, d), per_batch),          # x0
        pl.BlockSpec((1, 1, c), per_batch),          # additive key mask
        pl.BlockSpec((1, d, 3 * d), per_layer),      # wqkv
        pl.BlockSpec((1, 1, 3 * d), per_layer),      # bqkv
        pl.BlockSpec((1, d, d), per_layer),          # wo
        pl.BlockSpec((1, 1, d), per_layer),          # bo
        pl.BlockSpec((1, 1, d), per_layer),          # ln1_g
        pl.BlockSpec((1, 1, d), per_layer),          # ln1_b
        pl.BlockSpec((1, d, ff), per_layer),         # w1
        pl.BlockSpec((1, 1, ff), per_layer),         # b1
        pl.BlockSpec((1, ff, d), per_layer),         # w2
        pl.BlockSpec((1, 1, d), per_layer),          # b2
        pl.BlockSpec((1, 1, d), per_layer),          # ln2_g
        pl.BlockSpec((1, 1, d), per_layer),          # ln2_b
    ]
    return pl.pallas_call(
        functools.partial(_encoder_stack_kernel, n_heads=nh, scale=scale),
        out_shape=jax.ShapeDtypeStruct((b, c, d), jnp.float32),
        grid=(b, nl),                                # layer axis innermost
        in_specs=in_specs,
        out_specs=pl.BlockSpec((1, c, d), per_batch),
        compiler_params=pltpu.CompilerParams(
            # Tiny latency-bound work: keep it single-core (see review note).
            dimension_semantics=("arbitrary", "arbitrary"),
            vmem_limit_bytes=16 * 1024 * 1024,       # whole model << 1 MiB
        ),
    )(
        x0_BCD, mask_B1C,
        p["wqkv"], p["bqkv"], p["wo"], p["bo"], p["ln1_g"], p["ln1_b"],
        p["w1"], p["b1"], p["w2"], p["b2"], p["ln2_g"], p["ln2_b"],
    )


def decoder_stack(x0_BLD, enc_BCD, mask_B1C, p, out_w, out_b, cfg):
    b, l, d = x0_BLD.shape
    c = enc_BCD.shape[1]
    nl, nh, ff = cfg["n_layers"], cfg["n_heads"], cfg["d_ff"]
    v_pad = out_w.shape[1]
    scale = 1.0 / math.sqrt(d // nh)

    per_batch = lambda i, k: (i, 0, 0)
    per_layer = lambda i, k: (k, 0, 0)
    shared2d = lambda i, k: (0, 0)

    in_specs = [
        pl.BlockSpec((1, l, d), per_batch),          # x0
        pl.BlockSpec((1, c, d), per_batch),          # enc_src
        pl.BlockSpec((1, 1, c), per_batch),          # cross-attn key mask
        pl.BlockSpec((1, d, 3 * d), per_layer),      # wsqkv
        pl.BlockSpec((1, 1, 3 * d), per_layer),      # bsqkv
        pl.BlockSpec((1, d, d), per_layer),          # wso
        pl.BlockSpec((1, 1, d), per_layer),          # bso
        pl.BlockSpec((1, 1, d), per_layer),          # ln1_g
        pl.BlockSpec((1, 1, d), per_layer),          # ln1_b
        pl.BlockSpec((1, d, d), per_layer),          # wcq
        pl.BlockSpec((1, 1, d), per_layer),          # bcq
        pl.BlockSpec((1, d, 2 * d), per_layer),      # wckv
        pl.BlockSpec((1, 1, 2 * d), per_layer),      # bckv
        pl.BlockSpec((1, d, d), per_layer),          # wco
        pl.BlockSpec((1, 1, d), per_layer),          # bco
        pl.BlockSpec((1, 1, d), per_layer),          # ln2_g
        pl.BlockSpec((1, 1, d), per_layer),          # ln2_b
        pl.BlockSpec((1, d, ff), per_layer),         # w1
        pl.BlockSpec((1, 1, ff), per_layer),         # b1
        pl.BlockSpec((1, ff, d), per_layer),         # w2
        pl.BlockSpec((1, 1, d), per_layer),          # b2
        pl.BlockSpec((1, 1, d), per_layer),          # ln3_g
        pl.BlockSpec((1, 1, d), per_layer),          # ln3_b
        pl.BlockSpec((d, v_pad), shared2d),          # out_w (vocab padded to 128)
        pl.BlockSpec((1, v_pad), shared2d),          # out_b
    ]
    return pl.pallas_call(
        functools.partial(_decoder_stack_kernel,
                          n_heads=nh, scale=scale, n_layers=nl),
        out_shape=jax.ShapeDtypeStruct((b, l, v_pad), jnp.float32),
        grid=(b, nl),
        in_specs=in_specs,
        out_specs=pl.BlockSpec((1, l, v_pad), per_batch),
        scratch_shapes=[pltpu.VMEM((l, d), jnp.float32)],
        compiler_params=pltpu.CompilerParams(
            dimension_semantics=("arbitrary", "arbitrary"),
            vmem_limit_bytes=16 * 1024 * 1024,
        ),
    )(
        x0_BLD, enc_BCD, mask_B1C,
        p["wsqkv"], p["bsqkv"], p["wso"], p["bso"], p["ln1_g"], p["ln1_b"],
        p["wcq"], p["bcq"], p["wckv"], p["bckv"], p["wco"], p["bco"],
        p["ln2_g"], p["ln2_b"],
        p["w1"], p["b1"], p["w2"], p["b2"], p["ln3_g"], p["ln3_b"],
        out_w, out_b,
    )


# ---------------------------------------------------------------------------
# Forward pass (embeddings / mask glue in plain JAX, stacks in Pallas)
# ---------------------------------------------------------------------------


def encoder_forward(src_BC, src_mask_B11C, steps_B1, params, cfg):
    b, c = src_BC.shape
    d = cfg["d_model"]
    tok = jnp.take(params["enc_tok_emb"], src_BC, axis=0)            # (B, C, D)
    pos = params["enc_pos_emb"][:c]                                  # (C, D)
    stp = jnp.take(params["step_emb"], steps_B1[:, 0], axis=0)       # (B, D)
    x = tok * math.sqrt(d) + pos[None, :, :] + stp[:, None, :]

    keep = src_mask_B11C[:, 0, 0, :]                                 # (B, C) bool
    mask_add = jnp.where(keep, 0.0, NEG_INF).astype(jnp.float32)[:, None, :]  # (B,1,C)
    return encoder_stack(x.astype(jnp.float32), mask_add, params["enc"], cfg)


def decoder_forward(trg_BL, enc_BCD, src_mask_B11C, params, cfg):
    b, l = trg_BL.shape
    d = cfg["d_model"]
    tok = jnp.take(params["dec_tok_emb"], trg_BL, axis=0)            # (B, L, D)
    pos = params["dec_pos_emb"][:l]                                  # (L, D)
    x = tok * math.sqrt(d) + pos[None, :, :]

    keep = src_mask_B11C[:, 0, 0, :]                                 # (B, C) bool
    mask_add = jnp.where(keep, 0.0, NEG_INF).astype(jnp.float32)[:, None, :]  # (B,1,C)

    logits_pad = decoder_stack(x.astype(jnp.float32), enc_BCD, mask_add,
                               params["dec"], params["out_w"], params["out_b"], cfg)
    return logits_pad[:, :, : cfg["vocab"]]                          # (B, L, V)


def seq2seq_forward(src_BC, trg_BL, steps_B1, params, cfg):
    # make_src_mask: (src != src_pad_idx).unsqueeze(1).unsqueeze(2) -> (B,1,1,C)
    src_mask_B11C = (src_BC != cfg["src_pad_idx"])[:, None, None, :]
    enc_src_BCD = encoder_forward(src_BC, src_mask_B11C, steps_B1, params, cfg)
    output_BLV = decoder_forward(trg_BL, enc_src_BCD, src_mask_B11C, params, cfg)
    return output_BLV


# ---------------------------------------------------------------------------
# Deterministic parameter init (stacked per-layer weights)
# ---------------------------------------------------------------------------


def _init_params(key, cfg):
    d, ff, v, nl = cfg["d_model"], cfg["d_ff"], cfg["vocab"], cfg["n_layers"]
    v_pad = cfg["vocab_pad"]

    keys = iter(jax.random.split(key, 64))

    def nrm(shape, scale=0.02):
        return jax.random.normal(next(keys), shape, jnp.float32) * scale

    zeros = lambda s: jnp.zeros(s, jnp.float32)
    ones = lambda s: jnp.ones(s, jnp.float32)

    enc = {
        "wqkv": nrm((nl, d, 3 * d)), "bqkv": zeros((nl, 1, 3 * d)),
        "wo": nrm((nl, d, d)), "bo": zeros((nl, 1, d)),
        "ln1_g": ones((nl, 1, d)), "ln1_b": zeros((nl, 1, d)),
        "w1": nrm((nl, d, ff)), "b1": zeros((nl, 1, ff)),
        "w2": nrm((nl, ff, d)), "b2": zeros((nl, 1, d)),
        "ln2_g": ones((nl, 1, d)), "ln2_b": zeros((nl, 1, d)),
    }
    dec = {
        "wsqkv": nrm((nl, d, 3 * d)), "bsqkv": zeros((nl, 1, 3 * d)),
        "wso": nrm((nl, d, d)), "bso": zeros((nl, 1, d)),
        "ln1_g": ones((nl, 1, d)), "ln1_b": zeros((nl, 1, d)),
        "wcq": nrm((nl, d, d)), "bcq": zeros((nl, 1, d)),
        "wckv": nrm((nl, d, 2 * d)), "bckv": zeros((nl, 1, 2 * d)),
        "wco": nrm((nl, d, d)), "bco": zeros((nl, 1, d)),
        "ln2_g": ones((nl, 1, d)), "ln2_b": zeros((nl, 1, d)),
        "w1": nrm((nl, d, ff)), "b1": zeros((nl, 1, ff)),
        "w2": nrm((nl, ff, d)), "b2": zeros((nl, 1, d)),
        "ln3_g": ones((nl, 1, d)), "ln3_b": zeros((nl, 1, d)),
    }
    # Vocab projection zero-padded to a lane-dense 128-wide slab.
    out_w = jnp.zeros((d, v_pad), jnp.float32).at[:, :v].set(nrm((d, v)))
    out_b = zeros((1, v_pad))

    return {
        "enc_tok_emb": nrm((v, d)),
        "dec_tok_emb": nrm((v, d)),
        "enc_pos_emb": nrm((cfg["max_len"], d)),
        "dec_pos_emb": nrm((cfg["max_len"], d)),
        "step_emb": nrm((cfg["max_steps"], d)),
        "enc": enc, "dec": dec,
        "out_w": out_w, "out_b": out_b,
    }


# ---------------------------------------------------------------------------
# Main
# ---------------------------------------------------------------------------

if __name__ == "__main__":
    cfg = dict(
        d_model=32, d_ff=64, n_heads=4, n_layers=2, vocab=16,
        max_len=32, max_steps=10, src_pad_idx=0, trg_pad_idx=0,
    )
    cfg["vocab_pad"] = ((cfg["vocab"] + 127) // 128) * 128   # lane-dense logits

    B, C, L = 2, 12, 8

    key = jax.random.PRNGKey(0)
    k_par, k_src, k_trg, k_stp = jax.random.split(key, 4)
    params = _init_params(k_par, cfg)

    src_BC = jax.random.randint(k_src, (B, C), 1, cfg["vocab"], jnp.int32)
    # put some padding at the end of the source to exercise the mask
    src_BC = src_BC.at[:, -3:].set(cfg["src_pad_idx"])
    trg_BL = jax.random.randint(k_trg, (B, L), 1, cfg["vocab"], jnp.int32)
    steps_B1 = jax.random.randint(k_stp, (B, 1), 1, cfg["max_steps"], jnp.int32)

    fwd = jax.jit(lambda s, t, st, p: seq2seq_forward(s, t, st, p, cfg))
    out_BLV = fwd(src_BC, trg_BL, steps_B1, params)
    out_BLV = jax.block_until_ready(out_BLV)

    assert out_BLV.shape == (B, L, cfg["vocab"]), out_BLV.shape
    assert bool(jnp.all(jnp.isfinite(out_BLV)))
    print("KERNEL_OK")
</pallas_src>

<mosaic_0001>
module attributes {stable_mosaic.version = 11 : i64} {
  func.func @_encoder_stack_kernel(%arg0: i32, %arg1: i32, %arg2: memref<1x12x32xf32, #tpu.memory_space<vmem>>, %arg3: memref<1x1x12xf32, #tpu.memory_space<vmem>>, %arg4: memref<1x32x96xf32, #tpu.memory_space<vmem>>, %arg5: memref<1x1x96xf32, #tpu.memory_space<vmem>>, %arg6: memref<1x32x32xf32, #tpu.memory_space<vmem>>, %arg7: memref<1x1x32xf32, #tpu.memory_space<vmem>>, %arg8: memref<1x1x32xf32, #tpu.memory_space<vmem>>, %arg9: memref<1x1x32xf32, #tpu.memory_space<vmem>>, %arg10: memref<1x32x64xf32, #tpu.memory_space<vmem>>, %arg11: memref<1x1x64xf32, #tpu.memory_space<vmem>>, %arg12: memref<1x64x32xf32, #tpu.memory_space<vmem>>, %arg13: memref<1x1x32xf32, #tpu.memory_space<vmem>>, %arg14: memref<1x1x32xf32, #tpu.memory_space<vmem>>, %arg15: memref<1x1x32xf32, #tpu.memory_space<vmem>>, %arg16: memref<1x12x32xf32, #tpu.memory_space<vmem>>) attributes {dimension_semantics = [#tpu.dimension_semantics<arbitrary>, #tpu.dimension_semantics<arbitrary>], iteration_bounds = array<i64: 2, 2>, scalar_prefetch = 0 : i64, scratch_operands = 0 : i64, tpu.core_type = #tpu.core_type<tc>, window_params = [{transform_indices = @transform_0, window_bounds = array<i64: 1, 12, 32>}, {transform_indices = @transform_1, window_bounds = array<i64: 1, 1, 12>}, {transform_indices = @transform_2, window_bounds = array<i64: 1, 32, 96>}, {transform_indices = @transform_3, window_bounds = array<i64: 1, 1, 96>}, {transform_indices = @transform_4, window_bounds = array<i64: 1, 32, 32>}, {transform_indices = @transform_5, window_bounds = array<i64: 1, 1, 32>}, {transform_indices = @transform_6, window_bounds = array<i64: 1, 1, 32>}, {transform_indices = @transform_7, window_bounds = array<i64: 1, 1, 32>}, {transform_indices = @transform_8, window_bounds = array<i64: 1, 32, 64>}, {transform_indices = @transform_9, window_bounds = array<i64: 1, 1, 64>}, {transform_indices = @transform_10, window_bounds = array<i64: 1, 64, 32>}, {transform_indices = @transform_11, window_bounds = array<i64: 1, 1, 32>}, {transform_indices = @transform_12, window_bounds = array<i64: 1, 1, 32>}, {transform_indices = @transform_13, window_bounds = array<i64: 1, 1, 32>}, {transform_indices = @transform_14, window_bounds = array<i64: 1, 12, 32>}]} {
    %c0_i32 = arith.constant 0 : i32
    %0 = arith.cmpi eq, %arg1, %c0_i32 : i32
    %1 = arith.extui %0 : i1 to i32
    %c0_i32_0 = arith.constant 0 : i32
    %2 = arith.cmpi ne, %1, %c0_i32_0 : i32
    scf.if %2 {
      %c0_82 = arith.constant 0 : index
      %c0_83 = arith.constant 0 : index
      %c0_84 = arith.constant 0 : index
      %179 = vector.load %arg2[%c0_82, %c0_83, %c0_84] : memref<1x12x32xf32, #tpu.memory_space<vmem>>, vector<1x12x32xf32>
      %c0_85 = arith.constant 0 : index
      %c0_86 = arith.constant 0 : index
      %c0_87 = arith.constant 0 : index
      %180 = vector.load %arg16[%c0_85, %c0_86, %c0_87] : memref<1x12x32xf32, #tpu.memory_space<vmem>>, vector<1x12x32xf32>
      tpu.vector_store %arg16[%c0_85, %c0_86, %c0_87], %179 {strides = array<i32>} : memref<1x12x32xf32, #tpu.memory_space<vmem>>, vector<1x12x32xf32>,
    } else {
    }
    %c0 = arith.constant 0 : index
    %c0_1 = arith.constant 0 : index
    %c0_2 = arith.constant 0 : index
    %3 = vector.load %arg16[%c0, %c0_1, %c0_2] : memref<1x12x32xf32, #tpu.memory_space<vmem>>, vector<1x12x32xf32>
    %4 = vector.shape_cast %3 : vector<1x12x32xf32> to vector<12x32xf32>
    %c0_3 = arith.constant 0 : index
    %c0_4 = arith.constant 0 : index
    %c0_5 = arith.constant 0 : index
    %5 = vector.load %arg3[%c0_3, %c0_4, %c0_5] : memref<1x1x12xf32, #tpu.memory_space<vmem>>, vector<1x1x12xf32>
    %6 = vector.shape_cast %5 : vector<1x1x12xf32> to vector<1x12xf32>
    %c0_6 = arith.constant 0 : index
    %c0_7 = arith.constant 0 : index
    %c0_8 = arith.constant 0 : index
    %7 = vector.load %arg4[%c0_6, %c0_7, %c0_8] : memref<1x32x96xf32, #tpu.memory_space<vmem>>, vector<1x32x96xf32>
    %8 = vector.shape_cast %7 : vector<1x32x96xf32> to vector<32x96xf32>
    %cst = arith.constant dense<0.000000e+00> : vector<12x96xf32>
    %9 = tpu.matmul %4, %8, %cst {dimension_numbers = #tpu.dot_dimension_numbers<[1], [0], [0], [1], [0, 0, 1, 1], [], []>} : vector<12x32xf32>, vector<32x96xf32>, vector<12x96xf32> -> vector<12x96xf32>
    %c0_9 = arith.constant 0 : index
    %c0_10 = arith.constant 0 : index
    %c0_11 = arith.constant 0 : index
    %10 = vector.load %arg5[%c0_9, %c0_10, %c0_11] : memref<1x1x96xf32, #tpu.memory_space<vmem>>, vector<1x1x96xf32>
    %11 = vector.shape_cast %10 : vector<1x1x96xf32> to vector<1x96xf32>
    %12 = vector.broadcast %11 : vector<1x96xf32> to vector<12x96xf32>
    %13 = arith.addf %9, %12 : vector<12x96xf32>
    %14 = vector.extract_strided_slice %13 {offsets = [0, 0], sizes = [12, 32], strides = [1, 1]} : vector<12x96xf32> to vector<12x32xf32>
    %15 = vector.extract_strided_slice %13 {offsets = [0, 32], sizes = [12, 32], strides = [1, 1]} : vector<12x96xf32> to vector<12x32xf32>
    %16 = vector.extract_strided_slice %13 {offsets = [0, 64], sizes = [12, 32], strides = [1, 1]} : vector<12x96xf32> to vector<12x32xf32>
    %c0_12 = arith.constant 0 : index
    %c0_13 = arith.constant 0 : index
    %c0_14 = arith.constant 0 : index
    %17 = vector.load %arg6[%c0_12, %c0_13, %c0_14] : memref<1x32x32xf32, #tpu.memory_space<vmem>>, vector<1x32x32xf32>
    %18 = vector.shape_cast %17 : vector<1x32x32xf32> to vector<32x32xf32>
    %c0_15 = arith.constant 0 : index
    %c0_16 = arith.constant 0 : index
    %c0_17 = arith.constant 0 : index
    %19 = vector.load %arg7[%c0_15, %c0_16, %c0_17] : memref<1x1x32xf32, #tpu.memory_space<vmem>>, vector<1x1x32xf32>
    %20 = vector.shape_cast %19 : vector<1x1x32xf32> to vector<1x32xf32>
    %21 = vector.extract_strided_slice %14 {offsets = [0, 0], sizes = [12, 8], strides = [1, 1]} : vector<12x32xf32> to vector<12x8xf32>
    %22 = vector.extract_strided_slice %15 {offsets = [0, 0], sizes = [12, 8], strides = [1, 1]} : vector<12x32xf32> to vector<12x8xf32>
    %23 = vector.extract_strided_slice %16 {offsets = [0, 0], sizes = [12, 8], strides = [1, 1]} : vector<12x32xf32> to vector<12x8xf32>
    %cst_18 = arith.constant dense<0.000000e+00> : vector<12x12xf32>
    %24 = tpu.matmul %21, %22, %cst_18 {dimension_numbers = #tpu.dot_dimension_numbers<[1], [1], [0], [0], [0, 0, 1, 0], [], []>} : vector<12x8xf32>, vector<12x8xf32>, vector<12x12xf32> -> vector<12x12xf32>
    %cst_19 = arith.constant 0.353553385 : f32
    %25 = vector.broadcast %cst_19 : f32 to vector<12x12xf32>
    %26 = arith.mulf %24, %25 : vector<12x12xf32>
    %27 = vector.broadcast %6 : vector<1x12xf32> to vector<12x12xf32>
    %28 = arith.addf %26, %27 : vector<12x12xf32>
    %cst_20 = arith.constant dense<0xFF800000> : vector<12xf32>
    %29 = vector.multi_reduction <maximumf>, %28, %cst_20 [1] : vector<12x12xf32> to vector<12xf32>
    %30 = vector.shape_cast %29 : vector<12xf32> to vector<12x1xf32>
    %31 = vector.broadcast %30 : vector<12x1xf32> to vector<12x12xf32>
    %32 = arith.subf %28, %31 : vector<12x12xf32>
    %33 = math.exp %32 : vector<12x12xf32>
    %cst_21 = arith.constant dense<0.000000e+00> : vector<12xf32>
    %34 = vector.multi_reduction <add>, %33, %cst_21 [1] : vector<12x12xf32> to vector<12xf32>
    %35 = vector.shape_cast %34 : vector<12xf32> to vector<12x1xf32>
    %36 = tpu.reciprocal %35 {approx = true} : vector<12x1xf32> -> vector<12x1xf32>
    %37 = vector.broadcast %36 : vector<12x1xf32> to vector<12x12xf32>
    %38 = arith.mulf %33, %37 : vector<12x12xf32>
    %cst_22 = arith.constant dense<0.000000e+00> : vector<12x8xf32>
    %39 = tpu.matmul %38, %23, %cst_22 {dimension_numbers = #tpu.dot_dimension_numbers<[1], [0], [0], [1], [0, 0, 1, 1], [], []>} : vector<12x12xf32>, vector<12x8xf32>, vector<12x8xf32> -> vector<12x8xf32>
    %40 = vector.extract_strided_slice %18 {offsets = [0, 0], sizes = [8, 32], strides = [1, 1]} : vector<32x32xf32> to vector<8x32xf32>
    %cst_23 = arith.constant dense<0.000000e+00> : vector<12x32xf32>
    %41 = tpu.matmul %39, %40, %cst_23 {dimension_numbers = #tpu.dot_dimension_numbers<[1], [0], [0], [1], [0, 0, 1, 1], [], []>} : vector<12x8xf32>, vector<8x32xf32>, vector<12x32xf32> -> vector<12x32xf32>
    %42 = vector.extract_strided_slice %14 {offsets = [0, 8], sizes = [12, 8], strides = [1, 1]} : vector<12x32xf32> to vector<12x8xf32>
    %43 = vector.extract_strided_slice %15 {offsets = [0, 8], sizes = [12, 8], strides = [1, 1]} : vector<12x32xf32> to vector<12x8xf32>
    %44 = vector.extract_strided_slice %16 {offsets = [0, 8], sizes = [12, 8], strides = [1, 1]} : vector<12x32xf32> to vector<12x8xf32>
    %cst_24 = arith.constant dense<0.000000e+00> : vector<12x12xf32>
    %45 = tpu.matmul %42, %43, %cst_24 {dimension_numbers = #tpu.dot_dimension_numbers<[1], [1], [0], [0], [0, 0, 1, 0], [], []>} : vector<12x8xf32>, vector<12x8xf32>, vector<12x12xf32> -> vector<12x12xf32>
    %cst_25 = arith.constant 0.353553385 : f32
    %46 = vector.broadcast %cst_25 : f32 to vector<12x12xf32>
    %47 = arith.mulf %45, %46 : vector<12x12xf32>
    %48 = vector.broadcast %6 : vector<1x12xf32> to vector<12x12xf32>
    %49 = arith.addf %47, %48 : vector<12x12xf32>
    %cst_26 = arith.constant dense<0xFF800000> : vector<12xf32>
    %50 = vector.multi_reduction <maximumf>, %49, %cst_26 [1] : vector<12x12xf32> to vector<12xf32>
    %51 = vector.shape_cast %50 : vector<12xf32> to vector<12x1xf32>
    %52 = vector.broadcast %51 : vector<12x1xf32> to vector<12x12xf32>
    %53 = arith.subf %49, %52 : vector<12x12xf32>
    %54 = math.exp %53 : vector<12x12xf32>
    %cst_27 = arith.constant dense<0.000000e+00> : vector<12xf32>
    %55 = vector.multi_reduction <add>, %54, %cst_27 [1] : vector<12x12xf32> to vector<12xf32>
    %56 = vector.shape_cast %55 : vector<12xf32> to vector<12x1xf32>
    %57 = tpu.reciprocal %56 {approx = true} : vector<12x1xf32> -> vector<12x1xf32>
    %58 = vector.broadcast %57 : vector<12x1xf32> to vector<12x12xf32>
    %59 = arith.mulf %54, %58 : vector<12x12xf32>
    %cst_28 = arith.constant dense<0.000000e+00> : vector<12x8xf32>
    %60 = tpu.matmul %59, %44, %cst_28 {dimension_numbers = #tpu.dot_dimension_numbers<[1], [0], [0], [1], [0, 0, 1, 1], [], []>} : vector<12x12xf32>, vector<12x8xf32>, vector<12x8xf32> -> vector<12x8xf32>
    %61 = vector.extract_strided_slice %18 {offsets = [8, 0], sizes = [8, 32], strides = [1, 1]} : vector<32x32xf32> to vector<8x32xf32>
    %cst_29 = arith.constant dense<0.000000e+00> : vector<12x32xf32>
    %62 = tpu.matmul %60, %61, %cst_29 {dimension_numbers = #tpu.dot_dimension_numbers<[1], [0], [0], [1], [0, 0, 1, 1], [], []>} : vector<12x8xf32>, vector<8x32xf32>, vector<12x32xf32> -> vector<12x32xf32>
    %63 = arith.addf %41, %62 : vector<12x32xf32>
    %64 = vector.extract_strided_slice %14 {offsets = [0, 16], sizes = [12, 8], strides = [1, 1]} : vector<12x32xf32> to vector<12x8xf32>
    %65 = vector.extract_strided_slice %15 {offsets = [0, 16], sizes = [12, 8], strides = [1, 1]} : vector<12x32xf32> to vector<12x8xf32>
    %66 = vector.extract_strided_slice %16 {offsets = [0, 16], sizes = [12, 8], strides = [1, 1]} : vector<12x32xf32> to vector<12x8xf32>
    %cst_30 = arith.constant dense<0.000000e+00> : vector<12x12xf32>
    %67 = tpu.matmul %64, %65, %cst_30 {dimension_numbers = #tpu.dot_dimension_numbers<[1], [1], [0], [0], [0, 0, 1, 0], [], []>} : vector<12x8xf32>, vector<12x8xf32>, vector<12x12xf32> -> vector<12x12xf32>
    %cst_31 = arith.constant 0.353553385 : f32
    %68 = vector.broadcast %cst_31 : f32 to vector<12x12xf32>
    %69 = arith.mulf %67, %68 : vector<12x12xf32>
    %70 = vector.broadcast %6 : vector<1x12xf32> to vector<12x12xf32>
    %71 = arith.addf %69, %70 : vector<12x12xf32>
    %cst_32 = arith.constant dense<0xFF800000> : vector<12xf32>
    %72 = vector.multi_reduction <maximumf>, %71, %cst_32 [1] : vector<12x12xf32> to vector<12xf32>
    %73 = vector.shape_cast %72 : vector<12xf32> to vector<12x1xf32>
    %74 = vector.broadcast %73 : vector<12x1xf32> to vector<12x12xf32>
    %75 = arith.subf %71, %74 : vector<12x12xf32>
    %76 = math.exp %75 : vector<12x12xf32>
    %cst_33 = arith.constant dense<0.000000e+00> : vector<12xf32>
    %77 = vector.multi_reduction <add>, %76, %cst_33 [1] : vector<12x12xf32> to vector<12xf32>
    %78 = vector.shape_cast %77 : vector<12xf32> to vector<12x1xf32>
    %79 = tpu.reciprocal %78 {approx = true} : vector<12x1xf32> -> vector<12x1xf32>
    %80 = vector.broadcast %79 : vector<12x1xf32> to vector<12x12xf32>
    %81 = arith.mulf %76, %80 : vector<12x12xf32>
    %cst_34 = arith.constant dense<0.000000e+00> : vector<12x8xf32>
    %82 = tpu.matmul %81, %66, %cst_34 {dimension_numbers = #tpu.dot_dimension_numbers<[1], [0], [0], [1], [0, 0, 1, 1], [], []>} : vector<12x12xf32>, vector<12x8xf32>, vector<12x8xf32> -> vector<12x8xf32>
    %83 = vector.extract_strided_slice %18 {offsets = [16, 0], sizes = [8, 32], strides = [1, 1]} : vector<32x32xf32> to vector<8x32xf32>
    %cst_35 = arith.constant dense<0.000000e+00> : vector<12x32xf32>
    %84 = tpu.matmul %82, %83, %cst_35 {dimension_numbers = #tpu.dot_dimension_numbers<[1], [0], [0], [1], [0, 0, 1, 1], [], []>} : vector<12x8xf32>, vector<8x32xf32>, vector<12x32xf32> -> vector<12x32xf32>
    %85 = arith.addf %63, %84 : vector<12x32xf32>
    %86 = vector.extract_strided_slice %14 {offsets = [0, 24], sizes = [12, 8], strides = [1, 1]} : vector<12x32xf32> to vector<12x8xf32>
    %87 = vector.extract_strided_slice %15 {offsets = [0, 24], sizes = [12, 8], strides = [1, 1]} : vector<12x32xf32> to vector<12x8xf32>
    %88 = vector.extract_strided_slice %16 {offsets = [0, 24], sizes = [12, 8], strides = [1, 1]} : vector<12x32xf32> to vector<12x8xf32>
    %cst_36 = arith.constant dense<0.000000e+00> : vector<12x12xf32>
    %89 = tpu.matmul %86, %87, %cst_36 {dimension_numbers = #tpu.dot_dimension_numbers<[1], [1], [0], [0], [0, 0, 1, 0], [], []>} : vector<12x8xf32>, vector<12x8xf32>, vector<12x12xf32> -> vector<12x12xf32>
    %cst_37 = arith.constant 0.353553385 : f32
    %90 = vector.broadcast %cst_37 : f32 to vector<12x12xf32>
    %91 = arith.mulf %89, %90 : vector<12x12xf32>
    %92 = vector.broadcast %6 : vector<1x12xf32> to vector<12x12xf32>
    %93 = arith.addf %91, %92 : vector<12x12xf32>
    %cst_38 = arith.constant dense<0xFF800000> : vector<12xf32>
    %94 = vector.multi_reduction <maximumf>, %93, %cst_38 [1] : vector<12x12xf32> to vector<12xf32>
    %95 = vector.shape_cast %94 : vector<12xf32> to vector<12x1xf32>
    %96 = vector.broadcast %95 : vector<12x1xf32> to vector<12x12xf32>
    %97 = arith.subf %93, %96 : vector<12x12xf32>
    %98 = math.exp %97 : vector<12x12xf32>
    %cst_39 = arith.constant dense<0.000000e+00> : vector<12xf32>
    %99 = vector.multi_reduction <add>, %98, %cst_39 [1] : vector<12x12xf32> to vector<12xf32>
    %100 = vector.shape_cast %99 : vector<12xf32> to vector<12x1xf32>
    %101 = tpu.reciprocal %100 {approx = true} : vector<12x1xf32> -> vector<12x1xf32>
    %102 = vector.broadcast %101 : vector<12x1xf32> to vector<12x12xf32>
    %103 = arith.mulf %98, %102 : vector<12x12xf32>
    %cst_40 = arith.constant dense<0.000000e+00> : vector<12x8xf32>
    %104 = tpu.matmul %103, %88, %cst_40 {dimension_numbers = #tpu.dot_dimension_numbers<[1], [0], [0], [1], [0, 0, 1, 1], [], []>} : vector<12x12xf32>, vector<12x8xf32>, vector<12x8xf32> -> vector<12x8xf32>
    %105 = vector.extract_strided_slice %18 {offsets = [24, 0], sizes = [8, 32], strides = [1, 1]} : vector<32x32xf32> to vector<8x32xf32>
    %cst_41 = arith.constant dense<0.000000e+00> : vector<12x32xf32>
    %106 = tpu.matmul %104, %105, %cst_41 {dimension_numbers = #tpu.dot_dimension_numbers<[1], [0], [0], [1], [0, 0, 1, 1], [], []>} : vector<12x8xf32>, vector<8x32xf32>, vector<12x32xf32> -> vector<12x32xf32>
    %107 = arith.addf %85, %106 : vector<12x32xf32>
    %108 = vector.broadcast %20 : vector<1x32xf32> to vector<12x32xf32>
    %109 = arith.addf %107, %108 : vector<12x32xf32>
    %110 = arith.addf %4, %109 : vector<12x32xf32>
    %c0_42 = arith.constant 0 : index
    %c0_43 = arith.constant 0 : index
    %c0_44 = arith.constant 0 : index
    %111 = vector.load %arg8[%c0_42, %c0_43, %c0_44] : memref<1x1x32xf32, #tpu.memory_space<vmem>>, vector<1x1x32xf32>
    %112 = vector.shape_cast %111 : vector<1x1x32xf32> to vector<1x32xf32>
    %c0_45 = arith.constant 0 : index
    %c0_46 = arith.constant 0 : index
    %c0_47 = arith.constant 0 : index
    %113 = vector.load %arg9[%c0_45, %c0_46, %c0_47] : memref<1x1x32xf32, #tpu.memory_space<vmem>>, vector<1x1x32xf32>
    %114 = vector.shape_cast %113 : vector<1x1x32xf32> to vector<1x32xf32>
    %cst_48 = arith.constant dense<0.000000e+00> : vector<12xf32>
    %115 = vector.multi_reduction <add>, %110, %cst_48 [1] : vector<12x32xf32> to vector<12xf32>
    %116 = vector.shape_cast %115 : vector<12xf32> to vector<12x1xf32>
    %cst_49 = arith.constant 3.200000e+01 : f32
    %117 = vector.broadcast %cst_49 : f32 to vector<12x1xf32>
    %118 = arith.divf %116, %117 : vector<12x1xf32>
    %119 = vector.broadcast %118 : vector<12x1xf32> to vector<12x32xf32>
    %120 = arith.subf %110, %119 : vector<12x32xf32>
    %121 = arith.mulf %120, %120 : vector<12x32xf32>
    %cst_50 = arith.constant dense<0.000000e+00> : vector<12xf32>
    %122 = vector.multi_reduction <add>, %121, %cst_50 [1] : vector<12x32xf32> to vector<12xf32>
    %123 = vector.shape_cast %122 : vector<12xf32> to vector<12x1xf32>
    %cst_51 = arith.constant 3.200000e+01 : f32
    %124 = vector.broadcast %cst_51 : f32 to vector<12x1xf32>
    %125 = arith.divf %123, %124 : vector<12x1xf32>
    %cst_52 = arith.constant 9.99999974E-6 : f32
    %126 = vector.broadcast %cst_52 : f32 to vector<12x1xf32>
    %127 = arith.addf %125, %126 : vector<12x1xf32>
    %128 = math.rsqrt %127 : vector<12x1xf32>
    %129 = vector.broadcast %128 : vector<12x1xf32> to vector<12x32xf32>
    %130 = arith.mulf %120, %129 : vector<12x32xf32>
    %131 = vector.broadcast %112 : vector<1x32xf32> to vector<12x32xf32>
    %132 = arith.mulf %130, %131 : vector<12x32xf32>
    %133 = vector.broadcast %114 : vector<1x32xf32> to vector<12x32xf32>
    %134 = arith.addf %132, %133 : vector<12x32xf32>
    %c0_53 = arith.constant 0 : index
    %c0_54 = arith.constant 0 : index
    %c0_55 = arith.constant 0 : index
    %135 = vector.load %arg10[%c0_53, %c0_54, %c0_55] : memref<1x32x64xf32, #tpu.memory_space<vmem>>, vector<1x32x64xf32>
    %136 = vector.shape_cast %135 : vector<1x32x64xf32> to vector<32x64xf32>
    %cst_56 = arith.constant dense<0.000000e+00> : vector<12x64xf32>
    %137 = tpu.matmul %134, %136, %cst_56 {dimension_numbers = #tpu.dot_dimension_numbers<[1], [0], [0], [1], [0, 0, 1, 1], [], []>} : vector<12x32xf32>, vector<32x64xf32>, vector<12x64xf32> -> vector<12x64xf32>
    %c0_57 = arith.constant 0 : index
    %c0_58 = arith.constant 0 : index
    %c0_59 = arith.constant 0 : index
    %138 = vector.load %arg11[%c0_57, %c0_58, %c0_59] : memref<1x1x64xf32, #tpu.memory_space<vmem>>, vector<1x1x64xf32>
    %139 = vector.shape_cast %138 : vector<1x1x64xf32> to vector<1x64xf32>
    %140 = vector.broadcast %139 : vector<1x64xf32> to vector<12x64xf32>
    %141 = arith.addf %137, %140 : vector<12x64xf32>
    %cst_60 = arith.constant 0.000000e+00 : f32
    %142 = vector.broadcast %cst_60 : f32 to vector<12x64xf32>
    %143 = arith.maximumf %141, %142 : vector<12x64xf32>
    %c0_61 = arith.constant 0 : index
    %c0_62 = arith.constant 0 : index
    %c0_63 = arith.constant 0 : index
    %144 = vector.load %arg12[%c0_61, %c0_62, %c0_63] : memref<1x64x32xf32, #tpu.memory_space<vmem>>, vector<1x64x32xf32>
    %145 = vector.shape_cast %144 : vector<1x64x32xf32> to vector<64x32xf32>
    %cst_64 = arith.constant dense<0.000000e+00> : vector<12x32xf32>
    %146 = tpu.matmul %143, %145, %cst_64 {dimension_numbers = #tpu.dot_dimension_numbers<[1], [0], [0], [1], [0, 0, 1, 1], [], []>} : vector<12x64xf32>, vector<64x32xf32>, vector<12x32xf32> -> vector<12x32xf32>
    %c0_65 = arith.constant 0 : index
    %c0_66 = arith.constant 0 : index
    %c0_67 = arith.constant 0 : index
    %147 = vector.load %arg13[%c0_65, %c0_66, %c0_67] : memref<1x1x32xf32, #tpu.memory_space<vmem>>, vector<1x1x32xf32>
    %148 = vector.shape_cast %147 : vector<1x1x32xf32> to vector<1x32xf32>
    %149 = vector.broadcast %148 : vector<1x32xf32> to vector<12x32xf32>
    %150 = arith.addf %146, %149 : vector<12x32xf32>
    %151 = arith.addf %134, %150 : vector<12x32xf32>
    %c0_68 = arith.constant 0 : index
    %c0_69 = arith.constant 0 : index
    %c0_70 = arith.constant 0 : index
    %152 = vector.load %arg14[%c0_68, %c0_69, %c0_70] : memref<1x1x32xf32, #tpu.memory_space<vmem>>, vector<1x1x32xf32>
    %153 = vector.shape_cast %152 : vector<1x1x32xf32> to vector<1x32xf32>
    %c0_71 = arith.constant 0 : index
    %c0_72 = arith.constant 0 : index
    %c0_73 = arith.constant 0 : index
    %154 = vector.load %arg15[%c0_71, %c0_72, %c0_73] : memref<1x1x32xf32, #tpu.memory_space<vmem>>, vector<1x1x32xf32>
    %155 = vector.shape_cast %154 : vector<1x1x32xf32> to vector<1x32xf32>
    %cst_74 = arith.constant dense<0.000000e+00> : vector<12xf32>
    %156 = vector.multi_reduction <add>, %151, %cst_74 [1] : vector<12x32xf32> to vector<12xf32>
    %157 = vector.shape_cast %156 : vector<12xf32> to vector<12x1xf32>
    %cst_75 = arith.constant 3.200000e+01 : f32
    %158 = vector.broadcast %cst_75 : f32 to vector<12x1xf32>
    %159 = arith.divf %157, %158 : vector<12x1xf32>
    %160 = vector.broadcast %159 : vector<12x1xf32> to vector<12x32xf32>
    %161 = arith.subf %151, %160 : vector<12x32xf32>
    %162 = arith.mulf %161, %161 : vector<12x32xf32>
    %cst_76 = arith.constant dense<0.000000e+00> : vector<12xf32>
    %163 = vector.multi_reduction <add>, %162, %cst_76 [1] : vector<12x32xf32> to vector<12xf32>
    %164 = vector.shape_cast %163 : vector<12xf32> to vector<12x1xf32>
    %cst_77 = arith.constant 3.200000e+01 : f32
    %165 = vector.broadcast %cst_77 : f32 to vector<12x1xf32>
    %166 = arith.divf %164, %165 : vector<12x1xf32>
    %cst_78 = arith.constant 9.99999974E-6 : f32
    %167 = vector.broadcast %cst_78 : f32 to vector<12x1xf32>
    %168 = arith.addf %166, %167 : vector<12x1xf32>
    %169 = math.rsqrt %168 : vector<12x1xf32>
    %170 = vector.broadcast %169 : vector<12x1xf32> to vector<12x32xf32>
    %171 = arith.mulf %161, %170 : vector<12x32xf32>
    %172 = vector.broadcast %153 : vector<1x32xf32> to vector<12x32xf32>
    %173 = arith.mulf %171, %172 : vector<12x32xf32>
    %174 = vector.broadcast %155 : vector<1x32xf32> to vector<12x32xf32>
    %175 = arith.addf %173, %174 : vector<12x32xf32>
    %c0_79 = arith.constant 0 : index
    %c0_80 = arith.constant 0 : index
    %c0_81 = arith.constant 0 : index
    %176 = vector.load %arg16[%c0_79, %c0_80, %c0_81] : memref<1x12x32xf32, #tpu.memory_space<vmem>>, vector<1x12x32xf32>
    %177 = vector.shape_cast %176 : vector<1x12x32xf32> to vector<12x32xf32>
    %178 = vector.shape_cast %175 : vector<12x32xf32> to vector<1x12x32xf32>
    tpu.vector_store %arg16[%c0_79, %c0_80, %c0_81], %178 {strides = array<i32>} : memref<1x12x32xf32, #tpu.memory_space<vmem>>, vector<1x12x32xf32>,
    return
  }
  func.func @transform_0(%arg0: i32, %arg1: i32) -> (i32, i32, i32) {
    %c0_i32 = arith.constant 0 : i32
    %c0_i32_0 = arith.constant 0 : i32
    %c0_i32_1 = arith.constant 0 : i32
    return %arg0, %c0_i32, %c0_i32_0 : i32, i32, i32
  }
  func.func @transform_1(%arg0: i32, %arg1: i32) -> (i32, i32, i32) {
    %c0_i32 = arith.constant 0 : i32
    %c0_i32_0 = arith.constant 0 : i32
    %c0_i32_1 = arith.constant 0 : i32
    return %arg0, %c0_i32, %c0_i32_0 : i32, i32, i32
  }
  func.func @transform_2(%arg0: i32, %arg1: i32) -> (i32, i32, i32) {
    %c0_i32 = arith.constant 0 : i32
    %c0_i32_0 = arith.constant 0 : i32
    %c0_i32_1 = arith.constant 0 : i32
    return %arg1, %c0_i32, %c0_i32_0 : i32, i32, i32
  }
  func.func @transform_3(%arg0: i32, %arg1: i32) -> (i32, i32, i32) {
    %c0_i32 = arith.constant 0 : i32
    %c0_i32_0 = arith.constant 0 : i32
    %c0_i32_1 = arith.constant 0 : i32
    return %arg1, %c0_i32, %c0_i32_0 : i32, i32, i32
  }
  func.func @transform_4(%arg0: i32, %arg1: i32) -> (i32, i32, i32) {
    %c0_i32 = arith.constant 0 : i32
    %c0_i32_0 = arith.constant 0 : i32
    %c0_i32_1 = arith.constant 0 : i32
    return %arg1, %c0_i32, %c0_i32_0 : i32, i32, i32
  }
  func.func @transform_5(%arg0: i32, %arg1: i32) -> (i32, i32, i32) {
    %c0_i32 = arith.constant 0 : i32
    %c0_i32_0 = arith.constant 0 : i32
    %c0_i32_1 = arith.constant 0 : i32
    return %arg1, %c0_i32, %c0_i32_0 : i32, i32, i32
  }
  func.func @transform_6(%arg0: i32, %arg1: i32) -> (i32, i32, i32) {
    %c0_i32 = arith.constant 0 : i32
    %c0_i32_0 = arith.constant 0 : i32
    %c0_i32_1 = arith.constant 0 : i32
    return %arg1, %c0_i32, %c0_i32_0 : i32, i32, i32
  }
  func.func @transform_7(%arg0: i32, %arg1: i32) -> (i32, i32, i32) {
    %c0_i32 = arith.constant 0 : i32
    %c0_i32_0 = arith.constant 0 : i32
    %c0_i32_1 = arith.constant 0 : i32
    return %arg1, %c0_i32, %c0_i32_0 : i32, i32, i32
  }
  func.func @transform_8(%arg0: i32, %arg1: i32) -> (i32, i32, i32) {
    %c0_i32 = arith.constant 0 : i32
    %c0_i32_0 = arith.constant 0 : i32
    %c0_i32_1 = arith.constant 0 : i32
    return %arg1, %c0_i32, %c0_i32_0 : i32, i32, i32
  }
  func.func @transform_9(%arg0: i32, %arg1: i32) -> (i32, i32, i32) {
    %c0_i32 = arith.constant 0 : i32
    %c0_i32_0 = arith.constant 0 : i32
    %c0_i32_1 = arith.constant 0 : i32
    return %arg1, %c0_i32, %c0_i32_0 : i32, i32, i32
  }
  func.func @transform_10(%arg0: i32, %arg1: i32) -> (i32, i32, i32) {
    %c0_i32 = arith.constant 0 : i32
    %c0_i32_0 = arith.constant 0 : i32
    %c0_i32_1 = arith.constant 0 : i32
    return %arg1, %c0_i32, %c0_i32_0 : i32, i32, i32
  }
  func.func @transform_11(%arg0: i32, %arg1: i32) -> (i32, i32, i32) {
    %c0_i32 = arith.constant 0 : i32
    %c0_i32_0 = arith.constant 0 : i32
    %c0_i32_1 = arith.constant 0 : i32
    return %arg1, %c0_i32, %c0_i32_0 : i32, i32, i32
  }
  func.func @transform_12(%arg0: i32, %arg1: i32) -> (i32, i32, i32) {
    %c0_i32 = arith.constant 0 : i32
    %c0_i32_0 = arith.constant 0 : i32
    %c0_i32_1 = arith.constant 0 : i32
    return %arg1, %c0_i32, %c0_i32_0 : i32, i32, i32
  }
  func.func @transform_13(%arg0: i32, %arg1: i32) -> (i32, i32, i32) {
    %c0_i32 = arith.constant 0 : i32
    %c0_i32_0 = arith.constant 0 : i32
    %c0_i32_1 = arith.constant 0 : i32
    return %arg1, %c0_i32, %c0_i32_0 : i32, i32, i32
  }
  func.func @transform_14(%arg0: i32, %arg1: i32) -> (i32, i32, i32) {
    %c0_i32 = arith.constant 0 : i32
    %c0_i32_0 = arith.constant 0 : i32
    %c0_i32_1 = arith.constant 0 : i32
    return %arg0, %c0_i32, %c0_i32_0 : i32, i32, i32
  }
}

module attributes {stable_mosaic.version = 11 : i64} {
  func.func @_decoder_stack_kernel(%arg0: i32, %arg1: i32, %arg2: memref<1x8x32xf32, #tpu.memory_space<vmem>>, %arg3: memref<1x12x32xf32, #tpu.memory_space<vmem>>, %arg4: memref<1x1x12xf32, #tpu.memory_space<vmem>>, %arg5: memref<1x32x96xf32, #tpu.memory_space<vmem>>, %arg6: memref<1x1x96xf32, #tpu.memory_space<vmem>>, %arg7: memref<1x32x32xf32, #tpu.memory_space<vmem>>, %arg8: memref<1x1x32xf32, #tpu.memory_space<vmem>>, %arg9: memref<1x1x32xf32, #tpu.memory_space<vmem>>, %arg10: memref<1x1x32xf32, #tpu.memory_space<vmem>>, %arg11: memref<1x32x32xf32, #tpu.memory_space<vmem>>, %arg12: memref<1x1x32xf32, #tpu.memory_space<vmem>>, %arg13: memref<1x32x64xf32, #tpu.memory_space<vmem>>, %arg14: memref<1x1x64xf32, #tpu.memory_space<vmem>>, %arg15: memref<1x32x32xf32, #tpu.memory_space<vmem>>, %arg16: memref<1x1x32xf32, #tpu.memory_space<vmem>>, %arg17: memref<1x1x32xf32, #tpu.memory_space<vmem>>, %arg18: memref<1x1x32xf32, #tpu.memory_space<vmem>>, %arg19: memref<1x32x64xf32, #tpu.memory_space<vmem>>, %arg20: memref<1x1x64xf32, #tpu.memory_space<vmem>>, %arg21: memref<1x64x32xf32, #tpu.memory_space<vmem>>, %arg22: memref<1x1x32xf32, #tpu.memory_space<vmem>>, %arg23: memref<1x1x32xf32, #tpu.memory_space<vmem>>, %arg24: memref<1x1x32xf32, #tpu.memory_space<vmem>>, %arg25: memref<32x128xf32, #tpu.memory_space<vmem>>, %arg26: memref<1x128xf32, #tpu.memory_space<vmem>>, %arg27: memref<1x8x128xf32, #tpu.memory_space<vmem>>, %arg28: memref<8x32xf32, #tpu.memory_space<vmem>>) attributes {dimension_semantics = [#tpu.dimension_semantics<arbitrary>, #tpu.dimension_semantics<arbitrary>], iteration_bounds = array<i64: 2, 2>, scalar_prefetch = 0 : i64, scratch_operands = 1 : i64, tpu.core_type = #tpu.core_type<tc>, window_params = [{transform_indices = @transform_0, window_bounds = array<i64: 1, 8, 32>}, {transform_indices = @transform_1, window_bounds = array<i64: 1, 12, 32>}, {transform_indices = @transform_2, window_bounds = array<i64: 1, 1, 12>}, {transform_indices = @transform_3, window_bounds = array<i64: 1, 32, 96>}, {transform_indices = @transform_4, window_bounds = array<i64: 1, 1, 96>}, {transform_indices = @transform_5, window_bounds = array<i64: 1, 32, 32>}, {transform_indices = @transform_6, window_bounds = array<i64: 1, 1, 32>}, {transform_indices = @transform_7, window_bounds = array<i64: 1, 1, 32>}, {transform_indices = @transform_8, window_bounds = array<i64: 1, 1, 32>}, {transform_indices = @transform_9, window_bounds = array<i64: 1, 32, 32>}, {transform_indices = @transform_10, window_bounds = array<i64: 1, 1, 32>}, {transform_indices = @transform_11, window_bounds = array<i64: 1, 32, 64>}, {transform_indices = @transform_12, window_bounds = array<i64: 1, 1, 64>}, {transform_indices = @transform_13, window_bounds = array<i64: 1, 32, 32>}, {transform_indices = @transform_14, window_bounds = array<i64: 1, 1, 32>}, {transform_indices = @transform_15, window_bounds = array<i64: 1, 1, 32>}, {transform_indices = @transform_16, window_bounds = array<i64: 1, 1, 32>}, {transform_indices = @transform_17, window_bounds = array<i64: 1, 32, 64>}, {transform_indices = @transform_18, window_bounds = array<i64: 1, 1, 64>}, {transform_indices = @transform_19, window_bounds = array<i64: 1, 64, 32>}, {transform_indices = @transform_20, window_bounds = array<i64: 1, 1, 32>}, {transform_indices = @transform_21, window_bounds = array<i64: 1, 1, 32>}, {transform_indices = @transform_22, window_bounds = array<i64: 1, 1, 32>}, {pipeline_mode = #tpu.pipeline_mode<synchronous>, transform_indices = @transform_23, window_bounds = array<i64: 32, 128>}, {pipeline_mode = #tpu.pipeline_mode<synchronous>, transform_indices = @transform_24, window_bounds = array<i64: 1, 128>}, {transform_indices = @transform_25, window_bounds = array<i64: 1, 8, 128>}]} {
    %c0_i32 = arith.constant 0 : i32
    %0 = arith.cmpi eq, %arg1, %c0_i32 : i32
    %1 = arith.extui %0 : i1 to i32
    %c0_i32_0 = arith.constant 0 : i32
    %2 = arith.cmpi ne, %1, %c0_i32_0 : i32
    scf.if %2 {
      %c0_139 = arith.constant 0 : index
      %c0_140 = arith.constant 0 : index
      %c0_141 = arith.constant 0 : index
      %307 = vector.load %arg2[%c0_139, %c0_140, %c0_141] : memref<1x8x32xf32, #tpu.memory_space<vmem>>, vector<1x8x32xf32>
      %308 = vector.shape_cast %307 : vector<1x8x32xf32> to vector<8x32xf32>
      %c0_142 = arith.constant 0 : index
      %c0_143 = arith.constant 0 : index
      %309 = vector.load %arg28[%c0_142, %c0_143] : memref<8x32xf32, #tpu.memory_space<vmem>>, vector<8x32xf32>
      tpu.vector_store %arg28[%c0_142, %c0_143], %308 {strides = array<i32>} : memref<8x32xf32, #tpu.memory_space<vmem>>, vector<8x32xf32>,
    } else {
    }
    %c0 = arith.constant 0 : index
    %c0_1 = arith.constant 0 : index
    %3 = vector.load %arg28[%c0, %c0_1] : memref<8x32xf32, #tpu.memory_space<vmem>>, vector<8x32xf32>
    %c0_2 = arith.constant 0 : index
    %c0_3 = arith.constant 0 : index
    %c0_4 = arith.constant 0 : index
    %4 = vector.load %arg3[%c0_2, %c0_3, %c0_4] : memref<1x12x32xf32, #tpu.memory_space<vmem>>, vector<1x12x32xf32>
    %5 = vector.shape_cast %4 : vector<1x12x32xf32> to vector<12x32xf32>
    %c0_5 = arith.constant 0 : index
    %c0_6 = arith.constant 0 : index
    %c0_7 = arith.constant 0 : index
    %6 = vector.load %arg4[%c0_5, %c0_6, %c0_7] : memref<1x1x12xf32, #tpu.memory_space<vmem>>, vector<1x1x12xf32>
    %7 = vector.shape_cast %6 : vector<1x1x12xf32> to vector<1x12xf32>
    %c0_8 = arith.constant 0 : index
    %c0_9 = arith.constant 0 : index
    %c0_10 = arith.constant 0 : index
    %8 = vector.load %arg5[%c0_8, %c0_9, %c0_10] : memref<1x32x96xf32, #tpu.memory_space<vmem>>, vector<1x32x96xf32>
    %9 = vector.shape_cast %8 : vector<1x32x96xf32> to vector<32x96xf32>
    %cst = arith.constant dense<0.000000e+00> : vector<8x96xf32>
    %10 = tpu.matmul %3, %9, %cst {dimension_numbers = #tpu.dot_dimension_numbers<[1], [0], [0], [1], [0, 0, 1, 1], [], []>} : vector<8x32xf32>, vector<32x96xf32>, vector<8x96xf32> -> vector<8x96xf32>
    %c0_11 = arith.constant 0 : index
    %c0_12 = arith.constant 0 : index
    %c0_13 = arith.constant 0 : index
    %11 = vector.load %arg6[%c0_11, %c0_12, %c0_13] : memref<1x1x96xf32, #tpu.memory_space<vmem>>, vector<1x1x96xf32>
    %12 = vector.shape_cast %11 : vector<1x1x96xf32> to vector<1x96xf32>
    %13 = vector.broadcast %12 : vector<1x96xf32> to vector<8x96xf32>
    %14 = arith.addf %10, %13 : vector<8x96xf32>
    %15 = vector.extract_strided_slice %14 {offsets = [0, 0], sizes = [8, 32], strides = [1, 1]} : vector<8x96xf32> to vector<8x32xf32>
    %16 = vector.extract_strided_slice %14 {offsets = [0, 32], sizes = [8, 32], strides = [1, 1]} : vector<8x96xf32> to vector<8x32xf32>
    %17 = vector.extract_strided_slice %14 {offsets = [0, 64], sizes = [8, 32], strides = [1, 1]} : vector<8x96xf32> to vector<8x32xf32>
    %c0_14 = arith.constant 0 : index
    %c0_15 = arith.constant 0 : index
    %c0_16 = arith.constant 0 : index
    %18 = vector.load %arg7[%c0_14, %c0_15, %c0_16] : memref<1x32x32xf32, #tpu.memory_space<vmem>>, vector<1x32x32xf32>
    %19 = vector.shape_cast %18 : vector<1x32x32xf32> to vector<32x32xf32>
    %c0_17 = arith.constant 0 : index
    %c0_18 = arith.constant 0 : index
    %c0_19 = arith.constant 0 : index
    %20 = vector.load %arg8[%c0_17, %c0_18, %c0_19] : memref<1x1x32xf32, #tpu.memory_space<vmem>>, vector<1x1x32xf32>
    %21 = vector.shape_cast %20 : vector<1x1x32xf32> to vector<1x32xf32>
    %22 = vector.extract_strided_slice %15 {offsets = [0, 0], sizes = [8, 8], strides = [1, 1]} : vector<8x32xf32> to vector<8x8xf32>
    %23 = vector.extract_strided_slice %16 {offsets = [0, 0], sizes = [8, 8], strides = [1, 1]} : vector<8x32xf32> to vector<8x8xf32>
    %24 = vector.extract_strided_slice %17 {offsets = [0, 0], sizes = [8, 8], strides = [1, 1]} : vector<8x32xf32> to vector<8x8xf32>
    %cst_20 = arith.constant dense<0.000000e+00> : vector<8x8xf32>
    %25 = tpu.matmul %22, %23, %cst_20 {dimension_numbers = #tpu.dot_dimension_numbers<[1], [1], [0], [0], [0, 0, 1, 0], [], []>} : vector<8x8xf32>, vector<8x8xf32>, vector<8x8xf32> -> vector<8x8xf32>
    %cst_21 = arith.constant 0.353553385 : f32
    %26 = vector.broadcast %cst_21 : f32 to vector<8x8xf32>
    %27 = arith.mulf %25, %26 : vector<8x8xf32>
    %cst_22 = arith.constant dense<0xFF800000> : vector<8xf32>
    %28 = vector.multi_reduction <maximumf>, %27, %cst_22 [1] : vector<8x8xf32> to vector<8xf32>
    %29 = vector.shape_cast %28 : vector<8xf32> to vector<8x1xf32>
    %30 = vector.broadcast %29 : vector<8x1xf32> to vector<8x8xf32>
    %31 = arith.subf %27, %30 : vector<8x8xf32>
    %32 = math.exp %31 : vector<8x8xf32>
    %cst_23 = arith.constant dense<0.000000e+00> : vector<8xf32>
    %33 = vector.multi_reduction <add>, %32, %cst_23 [1] : vector<8x8xf32> to vector<8xf32>
    %34 = vector.shape_cast %33 : vector<8xf32> to vector<8x1xf32>
    %35 = tpu.reciprocal %34 {approx = true} : vector<8x1xf32> -> vector<8x1xf32>
    %36 = vector.broadcast %35 : vector<8x1xf32> to vector<8x8xf32>
    %37 = arith.mulf %32, %36 : vector<8x8xf32>
    %cst_24 = arith.constant dense<0.000000e+00> : vector<8x8xf32>
    %38 = tpu.matmul %37, %24, %cst_24 {dimension_numbers = #tpu.dot_dimension_numbers<[1], [0], [0], [1], [0, 0, 1, 1], [], []>} : vector<8x8xf32>, vector<8x8xf32>, vector<8x8xf32> -> vector<8x8xf32>
    %39 = vector.extract_strided_slice %19 {offsets = [0, 0], sizes = [8, 32], strides = [1, 1]} : vector<32x32xf32> to vector<8x32xf32>
    %cst_25 = arith.constant dense<0.000000e+00> : vector<8x32xf32>
    %40 = tpu.matmul %38, %39, %cst_25 {dimension_numbers = #tpu.dot_dimension_numbers<[1], [0], [0], [1], [0, 0, 1, 1], [], []>} : vector<8x8xf32>, vector<8x32xf32>, vector<8x32xf32> -> vector<8x32xf32>
    %41 = vector.extract_strided_slice %15 {offsets = [0, 8], sizes = [8, 8], strides = [1, 1]} : vector<8x32xf32> to vector<8x8xf32>
    %42 = vector.extract_strided_slice %16 {offsets = [0, 8], sizes = [8, 8], strides = [1, 1]} : vector<8x32xf32> to vector<8x8xf32>
    %43 = vector.extract_strided_slice %17 {offsets = [0, 8], sizes = [8, 8], strides = [1, 1]} : vector<8x32xf32> to vector<8x8xf32>
    %cst_26 = arith.constant dense<0.000000e+00> : vector<8x8xf32>
    %44 = tpu.matmul %41, %42, %cst_26 {dimension_numbers = #tpu.dot_dimension_numbers<[1], [1], [0], [0], [0, 0, 1, 0], [], []>} : vector<8x8xf32>, vector<8x8xf32>, vector<8x8xf32> -> vector<8x8xf32>
    %cst_27 = arith.constant 0.353553385 : f32
    %45 = vector.broadcast %cst_27 : f32 to vector<8x8xf32>
    %46 = arith.mulf %44, %45 : vector<8x8xf32>
    %cst_28 = arith.constant dense<0xFF800000> : vector<8xf32>
    %47 = vector.multi_reduction <maximumf>, %46, %cst_28 [1] : vector<8x8xf32> to vector<8xf32>
    %48 = vector.shape_cast %47 : vector<8xf32> to vector<8x1xf32>
    %49 = vector.broadcast %48 : vector<8x1xf32> to vector<8x8xf32>
    %50 = arith.subf %46, %49 : vector<8x8xf32>
    %51 = math.exp %50 : vector<8x8xf32>
    %cst_29 = arith.constant dense<0.000000e+00> : vector<8xf32>
    %52 = vector.multi_reduction <add>, %51, %cst_29 [1] : vector<8x8xf32> to vector<8xf32>
    %53 = vector.shape_cast %52 : vector<8xf32> to vector<8x1xf32>
    %54 = tpu.reciprocal %53 {approx = true} : vector<8x1xf32> -> vector<8x1xf32>
    %55 = vector.broadcast %54 : vector<8x1xf32> to vector<8x8xf32>
    %56 = arith.mulf %51, %55 : vector<8x8xf32>
    %cst_30 = arith.constant dense<0.000000e+00> : vector<8x8xf32>
    %57 = tpu.matmul %56, %43, %cst_30 {dimension_numbers = #tpu.dot_dimension_numbers<[1], [0], [0], [1], [0, 0, 1, 1], [], []>} : vector<8x8xf32>, vector<8x8xf32>, vector<8x8xf32> -> vector<8x8xf32>
    %58 = vector.extract_strided_slice %19 {offsets = [8, 0], sizes = [8, 32], strides = [1, 1]} : vector<32x32xf32> to vector<8x32xf32>
    %cst_31 = arith.constant dense<0.000000e+00> : vector<8x32xf32>
    %59 = tpu.matmul %57, %58, %cst_31 {dimension_numbers = #tpu.dot_dimension_numbers<[1], [0], [0], [1], [0, 0, 1, 1], [], []>} : vector<8x8xf32>, vector<8x32xf32>, vector<8x32xf32> -> vector<8x32xf32>
    %60 = arith.addf %40, %59 : vector<8x32xf32>
    %61 = vector.extract_strided_slice %15 {offsets = [0, 16], sizes = [8, 8], strides = [1, 1]} : vector<8x32xf32> to vector<8x8xf32>
    %62 = vector.extract_strided_slice %16 {offsets = [0, 16], sizes = [8, 8], strides = [1, 1]} : vector<8x32xf32> to vector<8x8xf32>
    %63 = vector.extract_strided_slice %17 {offsets = [0, 16], sizes = [8, 8], strides = [1, 1]} : vector<8x32xf32> to vector<8x8xf32>
    %cst_32 = arith.constant dense<0.000000e+00> : vector<8x8xf32>
    %64 = tpu.matmul %61, %62, %cst_32 {dimension_numbers = #tpu.dot_dimension_numbers<[1], [1], [0], [0], [0, 0, 1, 0], [], []>} : vector<8x8xf32>, vector<8x8xf32>, vector<8x8xf32> -> vector<8x8xf32>
    %cst_33 = arith.constant 0.353553385 : f32
    %65 = vector.broadcast %cst_33 : f32 to vector<8x8xf32>
    %66 = arith.mulf %64, %65 : vector<8x8xf32>
    %cst_34 = arith.constant dense<0xFF800000> : vector<8xf32>
    %67 = vector.multi_reduction <maximumf>, %66, %cst_34 [1] : vector<8x8xf32> to vector<8xf32>
    %68 = vector.shape_cast %67 : vector<8xf32> to vector<8x1xf32>
    %69 = vector.broadcast %68 : vector<8x1xf32> to vector<8x8xf32>
    %70 = arith.subf %66, %69 : vector<8x8xf32>
    %71 = math.exp %70 : vector<8x8xf32>
    %cst_35 = arith.constant dense<0.000000e+00> : vector<8xf32>
    %72 = vector.multi_reduction <add>, %71, %cst_35 [1] : vector<8x8xf32> to vector<8xf32>
    %73 = vector.shape_cast %72 : vector<8xf32> to vector<8x1xf32>
    %74 = tpu.reciprocal %73 {approx = true} : vector<8x1xf32> -> vector<8x1xf32>
    %75 = vector.broadcast %74 : vector<8x1xf32> to vector<8x8xf32>
    %76 = arith.mulf %71, %75 : vector<8x8xf32>
    %cst_36 = arith.constant dense<0.000000e+00> : vector<8x8xf32>
    %77 = tpu.matmul %76, %63, %cst_36 {dimension_numbers = #tpu.dot_dimension_numbers<[1], [0], [0], [1], [0, 0, 1, 1], [], []>} : vector<8x8xf32>, vector<8x8xf32>, vector<8x8xf32> -> vector<8x8xf32>
    %78 = vector.extract_strided_slice %19 {offsets = [16, 0], sizes = [8, 32], strides = [1, 1]} : vector<32x32xf32> to vector<8x32xf32>
    %cst_37 = arith.constant dense<0.000000e+00> : vector<8x32xf32>
    %79 = tpu.matmul %77, %78, %cst_37 {dimension_numbers = #tpu.dot_dimension_numbers<[1], [0], [0], [1], [0, 0, 1, 1], [], []>} : vector<8x8xf32>, vector<8x32xf32>, vector<8x32xf32> -> vector<8x32xf32>
    %80 = arith.addf %60, %79 : vector<8x32xf32>
    %81 = vector.extract_strided_slice %15 {offsets = [0, 24], sizes = [8, 8], strides = [1, 1]} : vector<8x32xf32> to vector<8x8xf32>
    %82 = vector.extract_strided_slice %16 {offsets = [0, 24], sizes = [8, 8], strides = [1, 1]} : vector<8x32xf32> to vector<8x8xf32>
    %83 = vector.extract_strided_slice %17 {offsets = [0, 24], sizes = [8, 8], strides = [1, 1]} : vector<8x32xf32> to vector<8x8xf32>
    %cst_38 = arith.constant dense<0.000000e+00> : vector<8x8xf32>
    %84 = tpu.matmul %81, %82, %cst_38 {dimension_numbers = #tpu.dot_dimension_numbers<[1], [1], [0], [0], [0, 0, 1, 0], [], []>} : vector<8x8xf32>, vector<8x8xf32>, vector<8x8xf32> -> vector<8x8xf32>
    %cst_39 = arith.constant 0.353553385 : f32
    %85 = vector.broadcast %cst_39 : f32 to vector<8x8xf32>
    %86 = arith.mulf %84, %85 : vector<8x8xf32>
    %cst_40 = arith.constant dense<0xFF800000> : vector<8xf32>
    %87 = vector.multi_reduction <maximumf>, %86, %cst_40 [1] : vector<8x8xf32> to vector<8xf32>
    %88 = vector.shape_cast %87 : vector<8xf32> to vector<8x1xf32>
    %89 = vector.broadcast %88 : vector<8x1xf32> to vector<8x8xf32>
    %90 = arith.subf %86, %89 : vector<8x8xf32>
    %91 = math.exp %90 : vector<8x8xf32>
    %cst_41 = arith.constant dense<0.000000e+00> : vector<8xf32>
    %92 = vector.multi_reduction <add>, %91, %cst_41 [1] : vector<8x8xf32> to vector<8xf32>
    %93 = vector.shape_cast %92 : vector<8xf32> to vector<8x1xf32>
    %94 = tpu.reciprocal %93 {approx = true} : vector<8x1xf32> -> vector<8x1xf32>
    %95 = vector.broadcast %94 : vector<8x1xf32> to vector<8x8xf32>
    %96 = arith.mulf %91, %95 : vector<8x8xf32>
    %cst_42 = arith.constant dense<0.000000e+00> : vector<8x8xf32>
    %97 = tpu.matmul %96, %83, %cst_42 {dimension_numbers = #tpu.dot_dimension_numbers<[1], [0], [0], [1], [0, 0, 1, 1], [], []>} : vector<8x8xf32>, vector<8x8xf32>, vector<8x8xf32> -> vector<8x8xf32>
    %98 = vector.extract_strided_slice %19 {offsets = [24, 0], sizes = [8, 32], strides = [1, 1]} : vector<32x32xf32> to vector<8x32xf32>
    %cst_43 = arith.constant dense<0.000000e+00> : vector<8x32xf32>
    %99 = tpu.matmul %97, %98, %cst_43 {dimension_numbers = #tpu.dot_dimension_numbers<[1], [0], [0], [1], [0, 0, 1, 1], [], []>} : vector<8x8xf32>, vector<8x32xf32>, vector<8x32xf32> -> vector<8x32xf32>
    %100 = arith.addf %80, %99 : vector<8x32xf32>
    %101 = vector.broadcast %21 : vector<1x32xf32> to vector<8x32xf32>
    %102 = arith.addf %100, %101 : vector<8x32xf32>
    %103 = arith.addf %3, %102 : vector<8x32xf32>
    %c0_44 = arith.constant 0 : index
    %c0_45 = arith.constant 0 : index
    %c0_46 = arith.constant 0 : index
    %104 = vector.load %arg9[%c0_44, %c0_45, %c0_46] : memref<1x1x32xf32, #tpu.memory_space<vmem>>, vector<1x1x32xf32>
    %105 = vector.shape_cast %104 : vector<1x1x32xf32> to vector<1x32xf32>
    %c0_47 = arith.constant 0 : index
    %c0_48 = arith.constant 0 : index
    %c0_49 = arith.constant 0 : index
    %106 = vector.load %arg10[%c0_47, %c0_48, %c0_49] : memref<1x1x32xf32, #tpu.memory_space<vmem>>, vector<1x1x32xf32>
    %107 = vector.shape_cast %106 : vector<1x1x32xf32> to vector<1x32xf32>
    %cst_50 = arith.constant dense<0.000000e+00> : vector<8xf32>
    %108 = vector.multi_reduction <add>, %103, %cst_50 [1] : vector<8x32xf32> to vector<8xf32>
    %109 = vector.shape_cast %108 : vector<8xf32> to vector<8x1xf32>
    %cst_51 = arith.constant 3.200000e+01 : f32
    %110 = vector.broadcast %cst_51 : f32 to vector<8x1xf32>
    %111 = arith.divf %109, %110 : vector<8x1xf32>
    %112 = vector.broadcast %111 : vector<8x1xf32> to vector<8x32xf32>
    %113 = arith.subf %103, %112 : vector<8x32xf32>
    %114 = arith.mulf %113, %113 : vector<8x32xf32>
    %cst_52 = arith.constant dense<0.000000e+00> : vector<8xf32>
    %115 = vector.multi_reduction <add>, %114, %cst_52 [1] : vector<8x32xf32> to vector<8xf32>
    %116 = vector.shape_cast %115 : vector<8xf32> to vector<8x1xf32>
    %cst_53 = arith.constant 3.200000e+01 : f32
    %117 = vector.broadcast %cst_53 : f32 to vector<8x1xf32>
    %118 = arith.divf %116, %117 : vector<8x1xf32>
    %cst_54 = arith.constant 9.99999974E-6 : f32
    %119 = vector.broadcast %cst_54 : f32 to vector<8x1xf32>
    %120 = arith.addf %118, %119 : vector<8x1xf32>
    %121 = math.rsqrt %120 : vector<8x1xf32>
    %122 = vector.broadcast %121 : vector<8x1xf32> to vector<8x32xf32>
    %123 = arith.mulf %113, %122 : vector<8x32xf32>
    %124 = vector.broadcast %105 : vector<1x32xf32> to vector<8x32xf32>
    %125 = arith.mulf %123, %124 : vector<8x32xf32>
    %126 = vector.broadcast %107 : vector<1x32xf32> to vector<8x32xf32>
    %127 = arith.addf %125, %126 : vector<8x32xf32>
    %c0_55 = arith.constant 0 : index
    %c0_56 = arith.constant 0 : index
    %c0_57 = arith.constant 0 : index
    %128 = vector.load %arg11[%c0_55, %c0_56, %c0_57] : memref<1x32x32xf32, #tpu.memory_space<vmem>>, vector<1x32x32xf32>
    %129 = vector.shape_cast %128 : vector<1x32x32xf32> to vector<32x32xf32>
    %cst_58 = arith.constant dense<0.000000e+00> : vector<8x32xf32>
    %130 = tpu.matmul %127, %129, %cst_58 {dimension_numbers = #tpu.dot_dimension_numbers<[1], [0], [0], [1], [0, 0, 1, 1], [], []>} : vector<8x32xf32>, vector<32x32xf32>, vector<8x32xf32> -> vector<8x32xf32>
    %c0_59 = arith.constant 0 : index
    %c0_60 = arith.constant 0 : index
    %c0_61 = arith.constant 0 : index
    %131 = vector.load %arg12[%c0_59, %c0_60, %c0_61] : memref<1x1x32xf32, #tpu.memory_space<vmem>>, vector<1x1x32xf32>
    %132 = vector.shape_cast %131 : vector<1x1x32xf32> to vector<1x32xf32>
    %133 = vector.broadcast %132 : vector<1x32xf32> to vector<8x32xf32>
    %134 = arith.addf %130, %133 : vector<8x32xf32>
    %c0_62 = arith.constant 0 : index
    %c0_63 = arith.constant 0 : index
    %c0_64 = arith.constant 0 : index
    %135 = vector.load %arg13[%c0_62, %c0_63, %c0_64] : memref<1x32x64xf32, #tpu.memory_space<vmem>>, vector<1x32x64xf32>
    %136 = vector.shape_cast %135 : vector<1x32x64xf32> to vector<32x64xf32>
    %cst_65 = arith.constant dense<0.000000e+00> : vector<12x64xf32>
    %137 = tpu.matmul %5, %136, %cst_65 {dimension_numbers = #tpu.dot_dimension_numbers<[1], [0], [0], [1], [0, 0, 1, 1], [], []>} : vector<12x32xf32>, vector<32x64xf32>, vector<12x64xf32> -> vector<12x64xf32>
    %c0_66 = arith.constant 0 : index
    %c0_67 = arith.constant 0 : index
    %c0_68 = arith.constant 0 : index
    %138 = vector.load %arg14[%c0_66, %c0_67, %c0_68] : memref<1x1x64xf32, #tpu.memory_space<vmem>>, vector<1x1x64xf32>
    %139 = vector.shape_cast %138 : vector<1x1x64xf32> to vector<1x64xf32>
    %140 = vector.broadcast %139 : vector<1x64xf32> to vector<12x64xf32>
    %141 = arith.addf %137, %140 : vector<12x64xf32>
    %142 = vector.extract_strided_slice %141 {offsets = [0, 0], sizes = [12, 32], strides = [1, 1]} : vector<12x64xf32> to vector<12x32xf32>
    %143 = vector.extract_strided_slice %141 {offsets = [0, 32], sizes = [12, 32], strides = [1, 1]} : vector<12x64xf32> to vector<12x32xf32>
    %c0_69 = arith.constant 0 : index
    %c0_70 = arith.constant 0 : index
    %c0_71 = arith.constant 0 : index
    %144 = vector.load %arg15[%c0_69, %c0_70, %c0_71] : memref<1x32x32xf32, #tpu.memory_space<vmem>>, vector<1x32x32xf32>
    %145 = vector.shape_cast %144 : vector<1x32x32xf32> to vector<32x32xf32>
    %c0_72 = arith.constant 0 : index
    %c0_73 = arith.constant 0 : index
    %c0_74 = arith.constant 0 : index
    %146 = vector.load %arg16[%c0_72, %c0_73, %c0_74] : memref<1x1x32xf32, #tpu.memory_space<vmem>>, vector<1x1x32xf32>
    %147 = vector.shape_cast %146 : vector<1x1x32xf32> to vector<1x32xf32>
    %148 = vector.extract_strided_slice %134 {offsets = [0, 0], sizes = [8, 8], strides = [1, 1]} : vector<8x32xf32> to vector<8x8xf32>
    %149 = vector.extract_strided_slice %142 {offsets = [0, 0], sizes = [12, 8], strides = [1, 1]} : vector<12x32xf32> to vector<12x8xf32>
    %150 = vector.extract_strided_slice %143 {offsets = [0, 0], sizes = [12, 8], strides = [1, 1]} : vector<12x32xf32> to vector<12x8xf32>
    %cst_75 = arith.constant dense<0.000000e+00> : vector<8x12xf32>
    %151 = tpu.matmul %148, %149, %cst_75 {dimension_numbers = #tpu.dot_dimension_numbers<[1], [1], [0], [0], [0, 0, 1, 0], [], []>} : vector<8x8xf32>, vector<12x8xf32>, vector<8x12xf32> -> vector<8x12xf32>
    %cst_76 = arith.constant 0.353553385 : f32
    %152 = vector.broadcast %cst_76 : f32 to vector<8x12xf32>
    %153 = arith.mulf %151, %152 : vector<8x12xf32>
    %154 = vector.broadcast %7 : vector<1x12xf32> to vector<8x12xf32>
    %155 = arith.addf %153, %154 : vector<8x12xf32>
    %cst_77 = arith.constant dense<0xFF800000> : vector<8xf32>
    %156 = vector.multi_reduction <maximumf>, %155, %cst_77 [1] : vector<8x12xf32> to vector<8xf32>
    %157 = vector.shape_cast %156 : vector<8xf32> to vector<8x1xf32>
    %158 = vector.broadcast %157 : vector<8x1xf32> to vector<8x12xf32>
    %159 = arith.subf %155, %158 : vector<8x12xf32>
    %160 = math.exp %159 : vector<8x12xf32>
    %cst_78 = arith.constant dense<0.000000e+00> : vector<8xf32>
    %161 = vector.multi_reduction <add>, %160, %cst_78 [1] : vector<8x12xf32> to vector<8xf32>
    %162 = vector.shape_cast %161 : vector<8xf32> to vector<8x1xf32>
    %163 = tpu.reciprocal %162 {approx = true} : vector<8x1xf32> -> vector<8x1xf32>
    %164 = vector.broadcast %163 : vector<8x1xf32> to vector<8x12xf32>
    %165 = arith.mulf %160, %164 : vector<8x12xf32>
    %cst_79 = arith.constant dense<0.000000e+00> : vector<8x8xf32>
    %166 = tpu.matmul %165, %150, %cst_79 {dimension_numbers = #tpu.dot_dimension_numbers<[1], [0], [0], [1], [0, 0, 1, 1], [], []>} : vector<8x12xf32>, vector<12x8xf32>, vector<8x8xf32> -> vector<8x8xf32>
    %167 = vector.extract_strided_slice %145 {offsets = [0, 0], sizes = [8, 32], strides = [1, 1]} : vector<32x32xf32> to vector<8x32xf32>
    %cst_80 = arith.constant dense<0.000000e+00> : vector<8x32xf32>
    %168 = tpu.matmul %166, %167, %cst_80 {dimension_numbers = #tpu.dot_dimension_numbers<[1], [0], [0], [1], [0, 0, 1, 1], [], []>} : vector<8x8xf32>, vector<8x32xf32>, vector<8x32xf32> -> vector<8x32xf32>
    %169 = vector.extract_strided_slice %134 {offsets = [0, 8], sizes = [8, 8], strides = [1, 1]} : vector<8x32xf32> to vector<8x8xf32>
    %170 = vector.extract_strided_slice %142 {offsets = [0, 8], sizes = [12, 8], strides = [1, 1]} : vector<12x32xf32> to vector<12x8xf32>
    %171 = vector.extract_strided_slice %143 {offsets = [0, 8], sizes = [12, 8], strides = [1, 1]} : vector<12x32xf32> to vector<12x8xf32>
    %cst_81 = arith.constant dense<0.000000e+00> : vector<8x12xf32>
    %172 = tpu.matmul %169, %170, %cst_81 {dimension_numbers = #tpu.dot_dimension_numbers<[1], [1], [0], [0], [0, 0, 1, 0], [], []>} : vector<8x8xf32>, vector<12x8xf32>, vector<8x12xf32> -> vector<8x12xf32>
    %cst_82 = arith.constant 0.353553385 : f32
    %173 = vector.broadcast %cst_82 : f32 to vector<8x12xf32>
    %174 = arith.mulf %172, %173 : vector<8x12xf32>
    %175 = vector.broadcast %7 : vector<1x12xf32> to vector<8x12xf32>
    %176 = arith.addf %174, %175 : vector<8x12xf32>
    %cst_83 = arith.constant dense<0xFF800000> : vector<8xf32>
    %177 = vector.multi_reduction <maximumf>, %176, %cst_83 [1] : vector<8x12xf32> to vector<8xf32>
    %178 = vector.shape_cast %177 : vector<8xf32> to vector<8x1xf32>
    %179 = vector.broadcast %178 : vector<8x1xf32> to vector<8x12xf32>
    %180 = arith.subf %176, %179 : vector<8x12xf32>
    %181 = math.exp %180 : vector<8x12xf32>
    %cst_84 = arith.constant dense<0.000000e+00> : vector<8xf32>
    %182 = vector.multi_reduction <add>, %181, %cst_84 [1] : vector<8x12xf32> to vector<8xf32>
    %183 = vector.shape_cast %182 : vector<8xf32> to vector<8x1xf32>
    %184 = tpu.reciprocal %183 {approx = true} : vector<8x1xf32> -> vector<8x1xf32>
    %185 = vector.broadcast %184 : vector<8x1xf32> to vector<8x12xf32>
    %186 = arith.mulf %181, %185 : vector<8x12xf32>
    %cst_85 = arith.constant dense<0.000000e+00> : vector<8x8xf32>
    %187 = tpu.matmul %186, %171, %cst_85 {dimension_numbers = #tpu.dot_dimension_numbers<[1], [0], [0], [1], [0, 0, 1, 1], [], []>} : vector<8x12xf32>, vector<12x8xf32>, vector<8x8xf32> -> vector<8x8xf32>
    %188 = vector.extract_strided_slice %145 {offsets = [8, 0], sizes = [8, 32], strides = [1, 1]} : vector<32x32xf32> to vector<8x32xf32>
    %cst_86 = arith.constant dense<0.000000e+00> : vector<8x32xf32>
    %189 = tpu.matmul %187, %188, %cst_86 {dimension_numbers = #tpu.dot_dimension_numbers<[1], [0], [0], [1], [0, 0, 1, 1], [], []>} : vector<8x8xf32>, vector<8x32xf32>, vector<8x32xf32> -> vector<8x32xf32>
    %190 = arith.addf %168, %189 : vector<8x32xf32>
    %191 = vector.extract_strided_slice %134 {offsets = [0, 16], sizes = [8, 8], strides = [1, 1]} : vector<8x32xf32> to vector<8x8xf32>
    %192 = vector.extract_strided_slice %142 {offsets = [0, 16], sizes = [12, 8], strides = [1, 1]} : vector<12x32xf32> to vector<12x8xf32>
    %193 = vector.extract_strided_slice %143 {offsets = [0, 16], sizes = [12, 8], strides = [1, 1]} : vector<12x32xf32> to vector<12x8xf32>
    %cst_87 = arith.constant dense<0.000000e+00> : vector<8x12xf32>
    %194 = tpu.matmul %191, %192, %cst_87 {dimension_numbers = #tpu.dot_dimension_numbers<[1], [1], [0], [0], [0, 0, 1, 0], [], []>} : vector<8x8xf32>, vector<12x8xf32>, vector<8x12xf32> -> vector<8x12xf32>
    %cst_88 = arith.constant 0.353553385 : f32
    %195 = vector.broadcast %cst_88 : f32 to vector<8x12xf32>
    %196 = arith.mulf %194, %195 : vector<8x12xf32>
    %197 = vector.broadcast %7 : vector<1x12xf32> to vector<8x12xf32>
    %198 = arith.addf %196, %197 : vector<8x12xf32>
    %cst_89 = arith.constant dense<0xFF800000> : vector<8xf32>
    %199 = vector.multi_reduction <maximumf>, %198, %cst_89 [1] : vector<8x12xf32> to vector<8xf32>
    %200 = vector.shape_cast %199 : vector<8xf32> to vector<8x1xf32>
    %201 = vector.broadcast %200 : vector<8x1xf32> to vector<8x12xf32>
    %202 = arith.subf %198, %201 : vector<8x12xf32>
    %203 = math.exp %202 : vector<8x12xf32>
    %cst_90 = arith.constant dense<0.000000e+00> : vector<8xf32>
    %204 = vector.multi_reduction <add>, %203, %cst_90 [1] : vector<8x12xf32> to vector<8xf32>
    %205 = vector.shape_cast %204 : vector<8xf32> to vector<8x1xf32>
    %206 = tpu.reciprocal %205 {approx = true} : vector<8x1xf32> -> vector<8x1xf32>
    %207 = vector.broadcast %206 : vector<8x1xf32> to vector<8x12xf32>
    %208 = arith.mulf %203, %207 : vector<8x12xf32>
    %cst_91 = arith.constant dense<0.000000e+00> : vector<8x8xf32>
    %209 = tpu.matmul %208, %193, %cst_91 {dimension_numbers = #tpu.dot_dimension_numbers<[1], [0], [0], [1], [0, 0, 1, 1], [], []>} : vector<8x12xf32>, vector<12x8xf32>, vector<8x8xf32> -> vector<8x8xf32>
    %210 = vector.extract_strided_slice %145 {offsets = [16, 0], sizes = [8, 32], strides = [1, 1]} : vector<32x32xf32> to vector<8x32xf32>
    %cst_92 = arith.constant dense<0.000000e+00> : vector<8x32xf32>
    %211 = tpu.matmul %209, %210, %cst_92 {dimension_numbers = #tpu.dot_dimension_numbers<[1], [0], [0], [1], [0, 0, 1, 1], [], []>} : vector<8x8xf32>, vector<8x32xf32>, vector<8x32xf32> -> vector<8x32xf32>
    %212 = arith.addf %190, %211 : vector<8x32xf32>
    %213 = vector.extract_strided_slice %134 {offsets = [0, 24], sizes = [8, 8], strides = [1, 1]} : vector<8x32xf32> to vector<8x8xf32>
    %214 = vector.extract_strided_slice %142 {offsets = [0, 24], sizes = [12, 8], strides = [1, 1]} : vector<12x32xf32> to vector<12x8xf32>
    %215 = vector.extract_strided_slice %143 {offsets = [0, 24], sizes = [12, 8], strides = [1, 1]} : vector<12x32xf32> to vector<12x8xf32>
    %cst_93 = arith.constant dense<0.000000e+00> : vector<8x12xf32>
    %216 = tpu.matmul %213, %214, %cst_93 {dimension_numbers = #tpu.dot_dimension_numbers<[1], [1], [0], [0], [0, 0, 1, 0], [], []>} : vector<8x8xf32>, vector<12x8xf32>, vector<8x12xf32> -> vector<8x12xf32>
    %cst_94 = arith.constant 0.353553385 : f32
    %217 = vector.broadcast %cst_94 : f32 to vector<8x12xf32>
    %218 = arith.mulf %216, %217 : vector<8x12xf32>
    %219 = vector.broadcast %7 : vector<1x12xf32> to vector<8x12xf32>
    %220 = arith.addf %218, %219 : vector<8x12xf32>
    %cst_95 = arith.constant dense<0xFF800000> : vector<8xf32>
    %221 = vector.multi_reduction <maximumf>, %220, %cst_95 [1] : vector<8x12xf32> to vector<8xf32>
    %222 = vector.shape_cast %221 : vector<8xf32> to vector<8x1xf32>
    %223 = vector.broadcast %222 : vector<8x1xf32> to vector<8x12xf32>
    %224 = arith.subf %220, %223 : vector<8x12xf32>
    %225 = math.exp %224 : vector<8x12xf32>
    %cst_96 = arith.constant dense<0.000000e+00> : vector<8xf32>
    %226 = vector.multi_reduction <add>, %225, %cst_96 [1] : vector<8x12xf32> to vector<8xf32>
    %227 = vector.shape_cast %226 : vector<8xf32> to vector<8x1xf32>
    %228 = tpu.reciprocal %227 {approx = true} : vector<8x1xf32> -> vector<8x1xf32>
    %229 = vector.broadcast %228 : vector<8x1xf32> to vector<8x12xf32>
    %230 = arith.mulf %225, %229 : vector<8x12xf32>
    %cst_97 = arith.constant dense<0.000000e+00> : vector<8x8xf32>
    %231 = tpu.matmul %230, %215, %cst_97 {dimension_numbers = #tpu.dot_dimension_numbers<[1], [0], [0], [1], [0, 0, 1, 1], [], []>} : vector<8x12xf32>, vector<12x8xf32>, vector<8x8xf32> -> vector<8x8xf32>
    %232 = vector.extract_strided_slice %145 {offsets = [24, 0], sizes = [8, 32], strides = [1, 1]} : vector<32x32xf32> to vector<8x32xf32>
    %cst_98 = arith.constant dense<0.000000e+00> : vector<8x32xf32>
    %233 = tpu.matmul %231, %232, %cst_98 {dimension_numbers = #tpu.dot_dimension_numbers<[1], [0], [0], [1], [0, 0, 1, 1], [], []>} : vector<8x8xf32>, vector<8x32xf32>, vector<8x32xf32> -> vector<8x32xf32>
    %234 = arith.addf %212, %233 : vector<8x32xf32>
    %235 = vector.broadcast %147 : vector<1x32xf32> to vector<8x32xf32>
    %236 = arith.addf %234, %235 : vector<8x32xf32>
    %237 = arith.addf %127, %236 : vector<8x32xf32>
    %c0_99 = arith.constant 0 : index
    %c0_100 = arith.constant 0 : index
    %c0_101 = arith.constant 0 : index
    %238 = vector.load %arg17[%c0_99, %c0_100, %c0_101] : memref<1x1x32xf32, #tpu.memory_space<vmem>>, vector<1x1x32xf32>
    %239 = vector.shape_cast %238 : vector<1x1x32xf32> to vector<1x32xf32>
    %c0_102 = arith.constant 0 : index
    %c0_103 = arith.constant 0 : index
    %c0_104 = arith.constant 0 : index
    %240 = vector.load %arg18[%c0_102, %c0_103, %c0_104] : memref<1x1x32xf32, #tpu.memory_space<vmem>>, vector<1x1x32xf32>
    %241 = vector.shape_cast %240 : vector<1x1x32xf32> to vector<1x32xf32>
    %cst_105 = arith.constant dense<0.000000e+00> : vector<8xf32>
    %242 = vector.multi_reduction <add>, %237, %cst_105 [1] : vector<8x32xf32> to vector<8xf32>
    %243 = vector.shape_cast %242 : vector<8xf32> to vector<8x1xf32>
    %cst_106 = arith.constant 3.200000e+01 : f32
    %244 = vector.broadcast %cst_106 : f32 to vector<8x1xf32>
    %245 = arith.divf %243, %244 : vector<8x1xf32>
    %246 = vector.broadcast %245 : vector<8x1xf32> to vector<8x32xf32>
    %247 = arith.subf %237, %246 : vector<8x32xf32>
    %248 = arith.mulf %247, %247 : vector<8x32xf32>
    %cst_107 = arith.constant dense<0.000000e+00> : vector<8xf32>
    %249 = vector.multi_reduction <add>, %248, %cst_107 [1] : vector<8x32xf32> to vector<8xf32>
    %250 = vector.shape_cast %249 : vector<8xf32> to vector<8x1xf32>
    %cst_108 = arith.constant 3.200000e+01 : f32
    %251 = vector.broadcast %cst_108 : f32 to vector<8x1xf32>
    %252 = arith.divf %250, %251 : vector<8x1xf32>
    %cst_109 = arith.constant 9.99999974E-6 : f32
    %253 = vector.broadcast %cst_109 : f32 to vector<8x1xf32>
    %254 = arith.addf %252, %253 : vector<8x1xf32>
    %255 = math.rsqrt %254 : vector<8x1xf32>
    %256 = vector.broadcast %255 : vector<8x1xf32> to vector<8x32xf32>
    %257 = arith.mulf %247, %256 : vector<8x32xf32>
    %258 = vector.broadcast %239 : vector<1x32xf32> to vector<8x32xf32>
    %259 = arith.mulf %257, %258 : vector<8x32xf32>
    %260 = vector.broadcast %241 : vector<1x32xf32> to vector<8x32xf32>
    %261 = arith.addf %259, %260 : vector<8x32xf32>
    %c0_110 = arith.constant 0 : index
    %c0_111 = arith.constant 0 : index
    %c0_112 = arith.constant 0 : index
    %262 = vector.load %arg19[%c0_110, %c0_111, %c0_112] : memref<1x32x64xf32, #tpu.memory_space<vmem>>, vector<1x32x64xf32>
    %263 = vector.shape_cast %262 : vector<1x32x64xf32> to vector<32x64xf32>
    %cst_113 = arith.constant dense<0.000000e+00> : vector<8x64xf32>
    %264 = tpu.matmul %261, %263, %cst_113 {dimension_numbers = #tpu.dot_dimension_numbers<[1], [0], [0], [1], [0, 0, 1, 1], [], []>} : vector<8x32xf32>, vector<32x64xf32>, vector<8x64xf32> -> vector<8x64xf32>
    %c0_114 = arith.constant 0 : index
    %c0_115 = arith.constant 0 : index
    %c0_116 = arith.constant 0 : index
    %265 = vector.load %arg20[%c0_114, %c0_115, %c0_116] : memref<1x1x64xf32, #tpu.memory_space<vmem>>, vector<1x1x64xf32>
    %266 = vector.shape_cast %265 : vector<1x1x64xf32> to vector<1x64xf32>
    %267 = vector.broadcast %266 : vector<1x64xf32> to vector<8x64xf32>
    %268 = arith.addf %264, %267 : vector<8x64xf32>
    %cst_117 = arith.constant 0.000000e+00 : f32
    %269 = vector.broadcast %cst_117 : f32 to vector<8x64xf32>
    %270 = arith.maximumf %268, %269 : vector<8x64xf32>
    %c0_118 = arith.constant 0 : index
    %c0_119 = arith.constant 0 : index
    %c0_120 = arith.constant 0 : index
    %271 = vector.load %arg21[%c0_118, %c0_119, %c0_120] : memref<1x64x32xf32, #tpu.memory_space<vmem>>, vector<1x64x32xf32>
    %272 = vector.shape_cast %271 : vector<1x64x32xf32> to vector<64x32xf32>
    %cst_121 = arith.constant dense<0.000000e+00> : vector<8x32xf32>
    %273 = tpu.matmul %270, %272, %cst_121 {dimension_numbers = #tpu.dot_dimension_numbers<[1], [0], [0], [1], [0, 0, 1, 1], [], []>} : vector<8x64xf32>, vector<64x32xf32>, vector<8x32xf32> -> vector<8x32xf32>
    %c0_122 = arith.constant 0 : index
    %c0_123 = arith.constant 0 : index
    %c0_124 = arith.constant 0 : index
    %274 = vector.load %arg22[%c0_122, %c0_123, %c0_124] : memref<1x1x32xf32, #tpu.memory_space<vmem>>, vector<1x1x32xf32>
    %275 = vector.shape_cast %274 : vector<1x1x32xf32> to vector<1x32xf32>
    %276 = vector.broadcast %275 : vector<1x32xf32> to vector<8x32xf32>
    %277 = arith.addf %273, %276 : vector<8x32xf32>
    %278 = arith.addf %261, %277 : vector<8x32xf32>
    %c0_125 = arith.constant 0 : index
    %c0_126 = arith.constant 0 : index
    %c0_127 = arith.constant 0 : index
    %279 = vector.load %arg23[%c0_125, %c0_126, %c0_127] : memref<1x1x32xf32, #tpu.memory_space<vmem>>, vector<1x1x32xf32>
    %280 = vector.shape_cast %279 : vector<1x1x32xf32> to vector<1x32xf32>
    %c0_128 = arith.constant 0 : index
    %c0_129 = arith.constant 0 : index
    %c0_130 = arith.constant 0 : index
    %281 = vector.load %arg24[%c0_128, %c0_129, %c0_130] : memref<1x1x32xf32, #tpu.memory_space<vmem>>, vector<1x1x32xf32>
    %282 = vector.shape_cast %281 : vector<1x1x32xf32> to vector<1x32xf32>
    %cst_131 = arith.constant dense<0.000000e+00> : vector<8xf32>
    %283 = vector.multi_reduction <add>, %278, %cst_131 [1] : vector<8x32xf32> to vector<8xf32>
    %284 = vector.shape_cast %283 : vector<8xf32> to vector<8x1xf32>
    %cst_132 = arith.constant 3.200000e+01 : f32
    %285 = vector.broadcast %cst_132 : f32 to vector<8x1xf32>
    %286 = arith.divf %284, %285 : vector<8x1xf32>
    %287 = vector.broadcast %286 : vector<8x1xf32> to vector<8x32xf32>
    %288 = arith.subf %278, %287 : vector<8x32xf32>
    %289 = arith.mulf %288, %288 : vector<8x32xf32>
    %cst_133 = arith.constant dense<0.000000e+00> : vector<8xf32>
    %290 = vector.multi_reduction <add>, %289, %cst_133 [1] : vector<8x32xf32> to vector<8xf32>
    %291 = vector.shape_cast %290 : vector<8xf32> to vector<8x1xf32>
    %cst_134 = arith.constant 3.200000e+01 : f32
    %292 = vector.broadcast %cst_134 : f32 to vector<8x1xf32>
    %293 = arith.divf %291, %292 : vector<8x1xf32>
    %cst_135 = arith.constant 9.99999974E-6 : f32
    %294 = vector.broadcast %cst_135 : f32 to vector<8x1xf32>
    %295 = arith.addf %293, %294 : vector<8x1xf32>
    %296 = math.rsqrt %295 : vector<8x1xf32>
    %297 = vector.broadcast %296 : vector<8x1xf32> to vector<8x32xf32>
    %298 = arith.mulf %288, %297 : vector<8x32xf32>
    %299 = vector.broadcast %280 : vector<1x32xf32> to vector<8x32xf32>
    %300 = arith.mulf %298, %299 : vector<8x32xf32>
    %301 = vector.broadcast %282 : vector<1x32xf32> to vector<8x32xf32>
    %302 = arith.addf %300, %301 : vector<8x32xf32>
    %c0_136 = arith.constant 0 : index
    %c0_137 = arith.constant 0 : index
    %303 = vector.load %arg28[%c0_136, %c0_137] : memref<8x32xf32, #tpu.memory_space<vmem>>, vector<8x32xf32>
    tpu.vector_store %arg28[%c0_136, %c0_137], %302 {strides = array<i32>} : memref<8x32xf32, #tpu.memory_space<vmem>>, vector<8x32xf32>,
    %c1_i32 = arith.constant 1 : i32
    %304 = arith.cmpi eq, %arg1, %c1_i32 : i32
    %305 = arith.extui %304 : i1 to i32
    %c0_i32_138 = arith.constant 0 : i32
    %306 = arith.cmpi ne, %305, %c0_i32_138 : i32
    scf.if %306 {
      %c0_139 = arith.constant 0 : index
      %c0_140 = arith.constant 0 : index
      %307 = vector.load %arg25[%c0_139, %c0_140] : memref<32x128xf32, #tpu.memory_space<vmem>>, vector<32x128xf32>
      %cst_141 = arith.constant dense<0.000000e+00> : vector<8x128xf32>
      %308 = tpu.matmul %302, %307, %cst_141 {dimension_numbers = #tpu.dot_dimension_numbers<[1], [0], [0], [1], [0, 0, 1, 1], [], []>} : vector<8x32xf32>, vector<32x128xf32>, vector<8x128xf32> -> vector<8x128xf32>
      %c0_142 = arith.constant 0 : index
      %c0_143 = arith.constant 0 : index
      %309 = vector.load %arg26[%c0_142, %c0_143] : memref<1x128xf32, #tpu.memory_space<vmem>>, vector<1x128xf32>
      %310 = vector.broadcast %309 : vector<1x128xf32> to vector<8x128xf32>
      %311 = arith.addf %308, %310 : vector<8x128xf32>
      %c0_144 = arith.constant 0 : index
      %c0_145 = arith.constant 0 : index
      %c0_146 = arith.constant 0 : index
      %312 = vector.load %arg27[%c0_144, %c0_145, %c0_146] : memref<1x8x128xf32, #tpu.memory_space<vmem>>, vector<1x8x128xf32>
      %313 = vector.shape_cast %312 : vector<1x8x128xf32> to vector<8x128xf32>
      %314 = vector.shape_cast %311 : vector<8x128xf32> to vector<1x8x128xf32>
      tpu.vector_store %arg27[%c0_144, %c0_145, %c0_146], %314 {strides = array<i32>} : memref<1x8x128xf32, #tpu.memory_space<vmem>>, vector<1x8x128xf32>,
    } else {
    }
    return
  }
  func.func @transform_0(%arg0: i32, %arg1: i32) -> (i32, i32, i32) {
    %c0_i32 = arith.constant 0 : i32
    %c0_i32_0 = arith.constant 0 : i32
    %c0_i32_1 = arith.constant 0 : i32
    return %arg0, %c0_i32, %c0_i32_0 : i32, i32, i32
  }
  func.func @transform_1(%arg0: i32, %arg1: i32) -> (i32, i32, i32) {
    %c0_i32 = arith.constant 0 : i32
    %c0_i32_0 = arith.constant 0 : i32
    %c0_i32_1 = arith.constant 0 : i32
    return %arg0, %c0_i32, %c0_i32_0 : i32, i32, i32
  }
  func.func @transform_2(%arg0: i32, %arg1: i32) -> (i32, i32, i32) {
    %c0_i32 = arith.constant 0 : i32
    %c0_i32_0 = arith.constant 0 : i32
    %c0_i32_1 = arith.constant 0 : i32
    return %arg0, %c0_i32, %c0_i32_0 : i32, i32, i32
  }
  func.func @transform_3(%arg0: i32, %arg1: i32) -> (i32, i32, i32) {
    %c0_i32 = arith.constant 0 : i32
    %c0_i32_0 = arith.constant 0 : i32
    %c0_i32_1 = arith.constant 0 : i32
    return %arg1, %c0_i32, %c0_i32_0 : i32, i32, i32
  }
  func.func @transform_4(%arg0: i32, %arg1: i32) -> (i32, i32, i32) {
    %c0_i32 = arith.constant 0 : i32
    %c0_i32_0 = arith.constant 0 : i32
    %c0_i32_1 = arith.constant 0 : i32
    return %arg1, %c0_i32, %c0_i32_0 : i32, i32, i32
  }
  func.func @transform_5(%arg0: i32, %arg1: i32) -> (i32, i32, i32) {
    %c0_i32 = arith.constant 0 : i32
    %c0_i32_0 = arith.constant 0 : i32
    %c0_i32_1 = arith.constant 0 : i32
    return %arg1, %c0_i32, %c0_i32_0 : i32, i32, i32
  }
  func.func @transform_6(%arg0: i32, %arg1: i32) -> (i32, i32, i32) {
    %c0_i32 = arith.constant 0 : i32
    %c0_i32_0 = arith.constant 0 : i32
    %c0_i32_1 = arith.constant 0 : i32
    return %arg1, %c0_i32, %c0_i32_0 : i32, i32, i32
  }
  func.func @transform_7(%arg0: i32, %arg1: i32) -> (i32, i32, i32) {
    %c0_i32 = arith.constant 0 : i32
    %c0_i32_0 = arith.constant 0 : i32
    %c0_i32_1 = arith.constant 0 : i32
    return %arg1, %c0_i32, %c0_i32_0 : i32, i32, i32
  }
  func.func @transform_8(%arg0: i32, %arg1: i32) -> (i32, i32, i32) {
    %c0_i32 = arith.constant 0 : i32
    %c0_i32_0 = arith.constant 0 : i32
    %c0_i32_1 = arith.constant 0 : i32
    return %arg1, %c0_i32, %c0_i32_0 : i32, i32, i32
  }
  func.func @transform_9(%arg0: i32, %arg1: i32) -> (i32, i32, i32) {
    %c0_i32 = arith.constant 0 : i32
    %c0_i32_0 = arith.constant 0 : i32
    %c0_i32_1 = arith.constant 0 : i32
    return %arg1, %c0_i32, %c0_i32_0 : i32, i32, i32
  }
  func.func @transform_10(%arg0: i32, %arg1: i32) -> (i32, i32, i32) {
    %c0_i32 = arith.constant 0 : i32
    %c0_i32_0 = arith.constant 0 : i32
    %c0_i32_1 = arith.constant 0 : i32
    return %arg1, %c0_i32, %c0_i32_0 : i32, i32, i32
  }
  func.func @transform_11(%arg0: i32, %arg1: i32) -> (i32, i32, i32) {
    %c0_i32 = arith.constant 0 : i32
    %c0_i32_0 = arith.constant 0 : i32
    %c0_i32_1 = arith.constant 0 : i32
    return %arg1, %c0_i32, %c0_i32_0 : i32, i32, i32
  }
  func.func @transform_12(%arg0: i32, %arg1: i32) -> (i32, i32, i32) {
    %c0_i32 = arith.constant 0 : i32
    %c0_i32_0 = arith.constant 0 : i32
    %c0_i32_1 = arith.constant 0 : i32
    return %arg1, %c0_i32, %c0_i32_0 : i32, i32, i32
  }
  func.func @transform_13(%arg0: i32, %arg1: i32) -> (i32, i32, i32) {
    %c0_i32 = arith.constant 0 : i32
    %c0_i32_0 = arith.constant 0 : i32
    %c0_i32_1 = arith.constant 0 : i32
    return %arg1, %c0_i32, %c0_i32_0 : i32, i32, i32
  }
  func.func @transform_14(%arg0: i32, %arg1: i32) -> (i32, i32, i32) {
    %c0_i32 = arith.constant 0 : i32
    %c0_i32_0 = arith.constant 0 : i32
    %c0_i32_1 = arith.constant 0 : i32
    return %arg1, %c0_i32, %c0_i32_0 : i32, i32, i32
  }
  func.func @transform_15(%arg0: i32, %arg1: i32) -> (i32, i32, i32) {
    %c0_i32 = arith.constant 0 : i32
    %c0_i32_0 = arith.constant 0 : i32
    %c0_i32_1 = arith.constant 0 : i32
    return %arg1, %c0_i32, %c0_i32_0 : i32, i32, i32
  }
  func.func @transform_16(%arg0: i32, %arg1: i32) -> (i32, i32, i32) {
    %c0_i32 = arith.constant 0 : i32
    %c0_i32_0 = arith.constant 0 : i32
    %c0_i32_1 = arith.constant 0 : i32
    return %arg1, %c0_i32, %c0_i32_0 : i32, i32, i32
  }
  func.func @transform_17(%arg0: i32, %arg1: i32) -> (i32, i32, i32) {
    %c0_i32 = arith.constant 0 : i32
    %c0_i32_0 = arith.constant 0 : i32
    %c0_i32_1 = arith.constant 0 : i32
    return %arg1, %c0_i32, %c0_i32_0 : i32, i32, i32
  }
  func.func @transform_18(%arg0: i32, %arg1: i32) -> (i32, i32, i32) {
    %c0_i32 = arith.constant 0 : i32
    %c0_i32_0 = arith.constant 0 : i32
    %c0_i32_1 = arith.constant 0 : i32
    return %arg1, %c0_i32, %c0_i32_0 : i32, i32, i32
  }
  func.func @transform_19(%arg0: i32, %arg1: i32) -> (i32, i32, i32) {
    %c0_i32 = arith.constant 0 : i32
    %c0_i32_0 = arith.constant 0 : i32
    %c0_i32_1 = arith.constant 0 : i32
    return %arg1, %c0_i32, %c0_i32_0 : i32, i32, i32
  }
  func.func @transform_20(%arg0: i32, %arg1: i32) -> (i32, i32, i32) {
    %c0_i32 = arith.constant 0 : i32
    %c0_i32_0 = arith.constant 0 : i32
    %c0_i32_1 = arith.constant 0 : i32
    return %arg1, %c0_i32, %c0_i32_0 : i32, i32, i32
  }
  func.func @transform_21(%arg0: i32, %arg1: i32) -> (i32, i32, i32) {
    %c0_i32 = arith.constant 0 : i32
    %c0_i32_0 = arith.constant 0 : i32
    %c0_i32_1 = arith.constant 0 : i32
    return %arg1, %c0_i32, %c0_i32_0 : i32, i32, i32
  }
  func.func @transform_22(%arg0: i32, %arg1: i32) -> (i32, i32, i32) {
    %c0_i32 = arith.constant 0 : i32
    %c0_i32_0 = arith.constant 0 : i32
    %c0_i32_1 = arith.constant 0 : i32
    return %arg1, %c0_i32, %c0_i32_0 : i32, i32, i32
  }
  func.func @transform_23(%arg0: i32, %arg1: i32) -> (i32, i32) {
    %c0_i32 = arith.constant 0 : i32
    %c0_i32_0 = arith.constant 0 : i32
    %c0_i32_1 = arith.constant 0 : i32
    return %c0_i32, %c0_i32_0 : i32, i32
  }
  func.func @transform_24(%arg0: i32, %arg1: i32) -> (i32, i32) {
    %c0_i32 = arith.constant 0 : i32
    %c0_i32_0 = arith.constant 0 : i32
    %c0_i32_1 = arith.constant 0 : i32
    return %c0_i32, %c0_i32_0 : i32, i32
  }
  func.func @transform_25(%arg0: i32, %arg1: i32) -> (i32, i32, i32) {
    %c0_i32 = arith.constant 0 : i32
    %c0_i32_0 = arith.constant 0 : i32
    %c0_i32_1 = arith.constant 0 : i32
    return %arg0, %c0_i32, %c0_i32_0 : i32, i32, i32
  }
}

</mosaic_0001>

<bundles_post_ra>
// kernel: _lambda_.2
= control target key start
LH: loop header
LB: loop body
LE: loop exit
PB: predicated region body
PF: predicated region fallthrough
CT: control target
= control target key end

     0   :  { %s3048_s29 = smov 0   ;;  %s3050_s30 = smov 0   ;;  %s3380_s0 = inlined_call_operand.vmem [shape: f32[2,12,32], index: 0, kind: input, shape index: {}]   ;;  %s3381_s1 = inlined_call_operand.vmem [shape: f32[2,1,12], index: 1, kind: input, shape index: {}]   ;;  %s3382_s2 = inlined_call_operand.vmem [shape: f32[2,32,96], index: 2, kind: input, shape index: {}]   ;;  %s3383_s3 = inlined_call_operand.vmem [shape: f32[2,1,96], index: 3, kind: input, shape index: {}]   ;;  %s3384_s4 = inlined_call_operand.vmem [shape: f32[2,32,32], index: 4, kind: input, shape index: {}]   ;;  %s3385_s5 = inlined_call_operand.vmem [shape: f32[2,1,32], index: 5, kind: input, shape index: {}]   ;;  %s3386_s6 = inlined_call_operand.vmem [shape: f32[2,1,32], index: 6, kind: input, shape index: {}]   ;;  %s3387_s7 = inlined_call_operand.vmem [shape: f32[2,1,32], index: 7, kind: input, shape index: {}]   ;;  %s3388_s8 = inlined_call_operand.vmem [shape: f32[2,32,64], index: 8, kind: input, shape index: {}]   ;;  %s3389_s9 = inlined_call_operand.vmem [shape: f32[2,1,64], index: 9, kind: input, shape index: {}]   ;;  %s3390_s10 = inlined_call_operand.vmem [shape: f32[2,64,32], index: 10, kind: input, shape index: {}]   ;;  %s3391_s11 = inlined_call_operand.vmem [shape: f32[2,1,32], index: 11, kind: input, shape index: {}]   ;;  %s3392_s12 = inlined_call_operand.vmem [shape: f32[2,1,32], index: 12, kind: input, shape index: {}]   ;;  %s3393_s13 = inlined_call_operand.vmem [shape: f32[2,1,32], index: 13, kind: input, shape index: {}]   ;;  %s3394_s14 = inlined_call_operand.vmem [shape: f32[2,12,32], index: 14, kind: output, shape index: {}]  }
   0x1   :  { %3399 = sst [smem:[#allocation8_spill]] %s3380_s0  ;;  %s3052_s15 = smov 0  }
   0x2   :  { %3400 = sst [smem:[#allocation9_spill]] %s3381_s1  ;;  %s3054_s16 = smov 0  }
   0x3   :  { %3401 = sst [smem:[#allocation10_spill]] %s3382_s2  ;;  %s3056_s17 = smov 0  }
   0x4   :  { %3402 = sst [smem:[#allocation11_spill]] %s3384_s4 }
   0x5   :  { %3403 = sst [smem:[#allocation12_spill]] %s3387_s7 }
   0x6   :  { %3404 = sst [smem:[#allocation13_spill]] %s3388_s8 }
   0x7   :  { %3405 = sst [smem:[#allocation14_spill]] %s3389_s9 }
   0x8   :  { %3406 = sst [smem:[#allocation15_spill]] %s3392_s12 }
   0x9   :  { %3407 = sst [smem:[#allocation16_spill]] %s3393_s13 }
   0xa   :  { %3408 = sst [smem:[#allocation17_spill]] %s3394_s14 }
   0xb LB: > { %3409 = sst [smem:[#allocation2_spill]] %s2943_s29  ;;  %s33_s18 = sadd.s32 1, %s2951_s15  ;;  %s2959_s17 = sphi %s3056_s17, %s24_s17   ;;  %s2955_s16 = sphi %s3054_s16, %s3445_s16   ;;  %s2951_s15 = sphi %s3052_s15, %s3444_s15   ;;  %s2947_s30 = sphi %s3050_s30, %s3443_s30   ;;  %s2943_s29 = sphi %s3048_s29, %s3442_s29  }
   0xc   : > { %3410 = sst [smem:[#allocation3_spill]] %s2951_s15  ;;  %s36_s19 = sadd.s32 1, %s2955_s16 }
   0xd   : > { %3411 = sst [smem:[#allocation4_spill]] %s2955_s16  ;;  %p34_p0 = scmp.ge.s32.totalorder %s33_s18, 2 }
   0xe   : > { %3412 = sst [smem:[#allocation5_spill]] %s2959_s17  ;;  %p2447_p1 = scmp.ge.s32.totalorder %s2959_s17, 1 }
   0xf   : > { %p536_p2 = scmp.lt.s32.totalorder %s2959_s17, 5  ;;  %s3447_s18 = smov (%p34_p0, %s33_s18), 0 }
  0x10   : > { %3413 = sst [smem:[#allocation6_spill]] %s3447_s18  ;;  %s3449_s19 = smov (!%p34_p0, %s36_s19), %s2955_s16 }
  0x11   : > { %p537_p3 = pnand %p2447_p1, %p536_p2  ;;  %p38_p4 = scmp.ge.s32.totalorder %s3449_s19, 2 }
  0x12   : > { %p629_p5 = scmp.lt.s32.totalorder (!%p537_p3), %s2947_s30, 1  ;;  %p637_p6 = scmp.lt.s32.totalorder (!%p537_p3), %s2943_s29, 1 }
  0x13   : > { %s3451_s19 = smov (%p38_p4, %s3449_s19), 0  ;;  %540 = sbr.rel (%p537_p3) target bundleno = 2979 (0xba3), region = 76 }
  0x14   : > { %3414 = sst [smem:[#allocation7_spill]] %s3451_s19  ;;  %s3416_s0 = sld [smem:[#allocation8_spill]] (!%p537_p3) }
  0x15   : > { %s3417_s2 = sld [smem:[#allocation10_spill]] (!%p537_p3)  ;;  %s3418_s4 = sld [smem:[#allocation11_spill]] (!%p537_p3) }
  0x16   : > { %s3420_s8 = sld [smem:[#allocation13_spill]] (!%p537_p3)  ;;  %s3422_s19 = sld [smem:[#allocation15_spill]] (!%p537_p3) }
  0x17   : > { %s3425_s22 = sld [smem:[#allocation2_spill]] (!%p537_p3) }
  0x1a   : > { %s3453_s30 = smov (!%p629_p5, %s2947_s30), 1 }
  0x1b   : > { %s3084_s20 = scalar_select %p637_p6, %s2943_s29, 1 }
  0x1c   : > { %s2514_s21 = sshll.u32 %s3453_s30, 4  ;;  %s3424_s29 = sld [smem:[#allocation17_spill]] }
  0x1d   : > { %s633_s27 = scalar_lea.vmem %s3416_s0, %s2514_s21  ;;  %s2515_s28 = sshll.u32 %s3084_s20, 5 }
  0x1e   : > { %s641_s16 = scalar_lea.vmem %s3417_s2, %s2515_s28  ;;  %s3105_s12 = scalar_lea.vmem %s3418_s4, %s2515_s28 }
  0x1f   : > { %s3122_s17 = scalar_lea.vmem %s3420_s8, %s2515_s28  ;;  %s2518_s4 = sshll.u32 %s3084_s20, 6 }
  0x20   : > { %s674_s24 = scalar_lea.vmem %s3391_s11, %s3084_s20  ;;  %s3136_s0 = scalar_lea.vmem %s3390_s10, %s2518_s4 }
  0x21   : > { %s677_s2 = scalar_lea.vmem %s3422_s19, %s3084_s20  ;;  %s3423_s8 = sld [smem:[#allocation16_spill]] }
  0x22   : > { %s3149_s9 = scalar_lea.vmem %s3424_s29, %s2514_s21  ;;  %p2460_p7 = scmp.ne.s32.totalorder %s3425_s22, 0 }
  0x23   : > { %v690_v0 = vld [vmem:[%s633_s27] sm:$0xff] (!%p2460_p7)  ;;  %vm692_vm0 = vcmask (!%p2460_p7), 261120   ;;  %v691_v1 = vld [vmem:[%s633_s27 + $0x8] sm:$0xf] (!%p2460_p7)  ;;  %vm694_vm1 = vcmask (!%p2460_p7), 257024  }
  0x24   : > { %689 = sbr.rel (%p2460_p7) target bundleno = 43 (0x2b), region = 80  ;;  %693 = vst.msk [vmem:[%s3149_s9] sm:$0xff] (!%p2460_p7), %vm692_vm0, %v690_v0 }
  0x25   : > { %695 = vst.msk [vmem:[%s3149_s9 + $0x8] sm:$0xf] (!%p2460_p7), %vm694_vm1, %v691_v1 }
  0x27   : > { %s680_s7 = scalar_lea.vmem %s3423_s8, %s3084_s20 }
  0x2b PF: > { %v699_v2 = vld [vmem:[%s641_s16] sm:$0xff]  ;;  %v700_v3 = vld [vmem:[%s641_s16 + $0x8] sm:$0xff]  ;;  %v701_v4 = vld [vmem:[%s641_s16 + $0x10] sm:$0xff]  ;;  %vm710_vm2 = vcmask 261120   ;;  %s3426_s29 = scalar_lea.vmem %s3383_s3, %s3084_s20  ;;  %vm803_vm3 = vcmask 64512   ;;  %s2962_s21 = smov 96  }
  0x2c   : > { %v2703_v5 = vpack.c.bf16 %v700_v3, %v699_v2  ;;  %v702_v6 = vld [vmem:[%s641_s16 + $0x18] sm:$0xff]  ;;  %v3155_v7 = vld [vmem:[%s3149_s9] sm:$0xff]  ;;  %v3160_v9 = vld [vmem:[%s3149_s9 + $0x8] sm:$0xf]  ;;  %s2961_s16 = smov 120   ;;  %s2963_s27 = smov 88  }
  0x2d   : > { %v2707_v8 = vpack.c.bf16 %v702_v6, %v701_v4  ;;  %2594 = vmatprep.mubr.msk.f32.mxu1 %vm710_vm2, %v3155_v7  ;;  %v2461_v10 = vld [vmem:[%s3426_s29] ss:$0 sm:$0xff]  ;;  %s2964_s19 = smov 112   ;;  %s2965_s23 = smov 80   ;;  %vm3188_vm4 = vmpackc.low %vm803_vm3, %vm803_vm3  ;;  %vm901_vm5 = vcmask 93184   ;;  %vm897_vm6 = vcmask 97280  }
  0x2e   : > { %2704 = vmatprep.subr.bf16.mxu1 %v2703_v5  ;;  %s3429_s1 = sld [smem:[#allocation9_spill]]  ;;  %s2967_s28 = smov 72   ;;  %vm932_vm7 = vcmask 1043456   ;;  %vm2972_vm8 = vmmov 1   ;;  %vm1968_vm10 = vcmask 257024   ;;  %vm2118_vm11 = vcmask 523264  }
  0x2f   : > { %2706 = vmatpush3.bf16.msra.mxu1 %v2703_v5  ;;  %s2968_s15 = smov 64   ;;  %s2969_s13 = smov 104   ;;  %vm3247_vm9 = vmpackc.low %vm932_vm7, %vm2972_vm8 }
  0x30   : > { %2708 = vmatprep.subr.bf16.mxu1 %v2707_v8  ;;  %s2970_s14 = smov 48   ;;  %s2971_s22 = smov 40  }
  0x31   : > { %s3433_s8 = scalar_lea.vmem %s3385_s5, %s3084_s20 }
  0x33   : > { %2710 = vmatpush3.bf16.msra.mxu1 %v2707_v8 }
  0x34   : > { %s3430_s18 = scalar_lea.vmem %s3429_s1, %s3453_s30  ;;  %s2966_s30 = smov 56  }
  0x35   : > { %v3215_v34 = vld [vmem:[%s3430_s18] ss:$0 sm:$0xff]  ;;  %s3437_s1 = sld [smem:[#allocation14_spill]] }
  0x36   : > { %2595 = vmatmul.mubr.msk.f32.vlgmr.msra.gmra.mrb[0].mxu1 %vm710_vm2, %v3160_v9 }
  0x3b   : > { %s3438_s18 = scalar_lea.vmem %s3437_s1, %s3084_s20 }
 0x109   : > { %v2596_v11 = vpop.f32.mrb[0].mxu1 }
 0x10a   : > { %v3169_v12 = vadd.f32 %v2596_v11, %v2461_v10  ;;  %v783_v13 = vpop.f32.mrb[1].mxu1 }
 0x10b   : > { %v3171_v14 = vadd.f32 %v2461_v10, %v783_v13 }
 0x10d   : > { %1010 = vrot.lane.b32.xlu1 %v3171_v14, %s2961_s16  ;;  %2601 = vmatprep.mubr.msk.f32.mxu1 %vm803_vm3, %v3171_v14  ;;  %v3178_v15 = vpack.i.bf16 %v3169_v12, %v3171_v14 }
 0x10f   : > { %2842 = vrot.lane.b32.xlu0 %v3178_v15, %s2962_s21 }
 0x111   : > { %1012 = vrot.lane.b32.xlu1 %v3169_v12, %s2961_s16  ;;  %s3434_s16 = scalar_lea.vmem %s3386_s6, %s3084_s20 }
 0x113   : > { %2847 = vrot.lane.b32.xlu0 %v3178_v15, %s2963_s27 }
 0x115   : > { %1377 = vrot.lane.b32.xlu1 %v3171_v14, %s2964_s19 }
 0x117   : > { %2852 = vrot.lane.b32.xlu0 %v3178_v15, %s2965_s23 }
 0x11b   : > { %1379 = vrot.lane.b32.xlu0 %v3169_v12, %s2964_s19  ;;  %s3435_s19 = sld [smem:[#allocation12_spill]] }
 0x121   : > { %s3436_s23 = scalar_lea.vmem %s3435_s19, %s3084_s20 }
 0x17f   : > { %v1011_v26 = vpop.permute.xlu1 %1010 }
 0x181   : > { %v2843_v16 = vpop.permute.xlu0 %2842 }
 0x182   : > { %v2845_v17 = vunpack.i.h.bf16 %v2843_v16  ;;  %v2844_v18 = vunpack.i.l.bf16 %v2843_v16 }
 0x183   : > { %v1013_v30 = vpop.permute.xlu1 %1012 }
 0x184   : > { %v2711_v20 = vpack.c.bf16 %v2845_v17, %v2844_v18 }
 0x185   : > { %v2848_v21 = vpop.permute.xlu0 %2847 }
 0x186   : > { %v2850_v22 = vunpack.i.h.bf16 %v2848_v21  ;;  %v2849_v23 = vunpack.i.l.bf16 %v2848_v21  ;;  %2713 = vmatprep.subr.msk.bf16.mxu1 %vm3188_vm4, %v2711_v20 }
 0x187   : > { %2716 = vmatpush3.bf16.xpose.msk.msra.mxu1 %vm3188_vm4, %v2711_v20  ;;  %v1378_v31 = vpop.permute.xlu1 %1377 }
 0x188   : > { %v2723_v24 = vpack.c.bf16 %v2850_v22, %v2849_v23 }
 0x189   : > { %v2853_v25 = vpop.permute.xlu0 %2852 }
 0x18a   : > { %v2855_v27 = vunpack.i.h.bf16 %v2853_v25  ;;  %v2854_v28 = vunpack.i.l.bf16 %v2853_v25  ;;  %2725 = vmatprep.subr.msk.bf16.mxu1 %vm3188_vm4, %v2723_v24 }
 0x18c   : > { %v2735_v29 = vpack.c.bf16 %v2855_v27, %v2854_v28 }
 0x18d   : > { %v1380_v32 = vpop.permute.xlu0 %1379 }
 0x18e   : > { %2602 = vmatmul.mubr.msk.f32.vlgmr.msra.gmra.mrb[2].mxu1 %vm803_vm3, %v3169_v12 }
 0x18f   : > { %2728 = vmatpush3.bf16.xpose.msk.msra.mxu1 %vm3188_vm4, %v2723_v24  ;;  %2615 = vmatprep.mubr.msk.f32.mxu1 %vm803_vm3, %v1011_v26 }
 0x190   : > { %2737 = vmatprep.subr.msk.bf16.mxu1 %vm3188_vm4, %v2735_v29 }
 0x196   : > { %2616 = vmatmul.mubr.msk.f32.vlgmr.msra.gmra.mrb[4].mxu1 %vm803_vm3, %v1013_v30 }
 0x197   : > { %2740 = vmatpush3.bf16.xpose.msk.msra.mxu1 %vm3188_vm4, %v2735_v29  ;;  %2639 = vmatprep.mubr.msk.f32.mxu1 %vm803_vm3, %v1378_v31 }
 0x19e   : > { %2640 = vmatmul.mubr.msk.f32.vlgmr.msra.gmra.mrb[6].mxu1 %vm803_vm3, %v1380_v32 }
 0x261   : > { %v2603_v33 = vpop.f32.mrb[2].mxu1 }
 0x262   : > { %v888_v35 = vmul.f32 0.35355338, %v2603_v33  ;;  %v878_v36 = vpop.f32.mrb[3].mxu1 }
 0x263   : > { %v887_v37 = vmul.f32 0.35355338, %v878_v36 }
 0x264   : > { %v896_v38 = vadd.f32 %v3215_v34, %v888_v35 }
 0x265   : > { %v895_v39 = vadd.f32 %v3215_v34, %v887_v37 }
 0x266   : > { %v902_v40 = vsel %vm901_vm5, %v896_v38, -inf }
 0x267   : > { %903 = vmax.xlane.f32.xlu0 %v902_v40  ;;  %v898_v41 = vsel %vm897_vm6, %v895_v39, -inf }
 0x268   : > { %899 = vmax.xlane.f32.xlu1 %v898_v41 }
 0x269   : > { %v2617_v42 = vpop.f32.mrb[4].mxu1 }
 0x26a   : > { %v1102_v43 = vmul.f32 0.35355338, %v2617_v42  ;;  %v1092_v44 = vpop.f32.mrb[5].mxu1 }
 0x26b   : > { %v1101_v45 = vmul.f32 0.35355338, %v1092_v44 }
 0x26c   : > { %v1104_v46 = vadd.f32 %v3215_v34, %v1102_v43 }
 0x26d   : > { %v1103_v47 = vadd.f32 %v3215_v34, %v1101_v45 }
 0x26e   : > { %v1108_v48 = vsel %vm901_vm5, %v1104_v46, -inf }
 0x26f   : > { %1109 = vmax.xlane.f32.xlu1 %v1108_v48  ;;  %v1105_v49 = vsel %vm897_vm6, %v1103_v47, -inf }
 0x270   : > { %1106 = vmax.xlane.f32.xlu0 %v1105_v49 }
 0x271   : > { %v2641_v50 = vpop.f32.mrb[6].mxu1 }
 0x272   : > { %v1459_v51 = vpop.f32.mrb[7].mxu1  ;;  %v1469_v11 = vmul.f32 0.35355338, %v2641_v50 }
 0x273   : > { %v1468_v10 = vmul.f32 0.35355338, %v1459_v51 }
 0x274   : > { %v1471_v16 = vadd.f32 %v3215_v34, %v1469_v11 }
 0x275   : > { %v1470_v13 = vadd.f32 %v3215_v34, %v1468_v10 }
 0x276   : > { %v1475_v18 = vsel %vm901_vm5, %v1471_v16, -inf }
 0x277   : > { %v1472_v17 = vsel %vm897_vm6, %v1470_v13, -inf }
 0x2f4   : > { %v904_v52 = vpop.xlane.xlu0 %903 }
 0x2f5   : > { %v906_v53 = vsub.f32 %v896_v38, %v904_v52  ;;  %v900_v54 = vpop.xlane.xlu1 %899 }
 0x2f6   : > { %v905_v55 = vsub.f32 %v895_v39, %v900_v54  ;;  %v793_v54 = vld [vmem:[%s3105_s12 + $0x8] sm:$0xff] }
 0x2f7   : > { %v909_v56 = vmul.f32 1.442695, %v906_v53 }
 0x2f8   : > { %v907_v57 = vmul.f32 1.442695, %v905_v55  ;;  %v792_v55 = vld [vmem:[%s3105_s12] sm:$0xff] }
 0x2f9   : > { %2881 = vpow2.f32 %v909_v56 }
 0x2fa   : > { %2883 = vpow2.f32 %v907_v57 }
 0x2fc   : > { %v1110_v58 = vpop.xlane.xlu1 %1109 }
 0x2fd   : > { %v1112_v59 = vsub.f32 %v1104_v46, %v1110_v58  ;;  %v1107_v60 = vpop.xlane.xlu0 %1106 }
 0x2fe   : > { %v1111_v61 = vsub.f32 %v1103_v47, %v1107_v60 }
 0x2ff   : > { %v1115_v62 = vmul.f32 1.442695, %v1112_v59 }
 0x300   : > { %v1113_v63 = vmul.f32 1.442695, %v1111_v61 }
 0x301   : > { %2885 = vpow2.f32 %v1115_v62 }
 0x302   : > { %2887 = vpow2.f32 %v1113_v63 }
 0x303   : > { %v3225_v0 = vpop.eup %2881 }
 0x304   : > { %v2884_v1 = vpop.eup %2883  ;;  %v914_v2 = vsel %vm901_vm5, %v3225_v0, 0.0 }
 0x305   : > { %915 = vadd.xlane.f32.xlu1 %v914_v2  ;;  %v911_v3 = vsel %vm897_vm6, %v2884_v1, 0.0 }
 0x306   : > { %912 = vadd.xlane.f32.xlu0 %v911_v3 }
 0x30b   : > { %v3230_v4 = vpop.eup %2885 }
 0x30c   : > { %v2888_v5 = vpop.eup %2887  ;;  %v1120_v6 = vsel %vm901_vm5, %v3230_v4, 0.0 }
 0x30d   : > { %1121 = vadd.xlane.f32.xlu1 %v1120_v6  ;;  %v1117_v8 = vsel %vm897_vm6, %v2888_v5, 0.0 }
 0x30e   : > { %1118 = vadd.xlane.f32.xlu0 %v1117_v8 }
 0x31e   : > { %2862 = vrot.lane.b32.xlu1 %v3178_v15, %s2966_s30 }
 0x322   : > { %2867 = vrot.lane.b32.xlu1 %v3178_v15, %s2967_s28 }
 0x324   : > { %2857 = vrot.lane.b32.xlu0 %v3178_v15, %s2968_s15 }
 0x326   : > { %1667 = vrot.lane.b32.xlu1 %v3169_v12, %s2969_s13 }
 0x328   : > { %1665 = vrot.lane.b32.xlu0 %v3171_v14, %s2969_s13 }
 0x347   : > { %1473 = vmax.xlane.f32.xlu0 %v1472_v17 }
 0x34a   : > { %1476 = vmax.xlane.f32.xlu1 %v1475_v18  ;;  %v794_v18 = vld [vmem:[%s3105_s12 + $0x10] sm:$0xff] }
 0x35b   : > { %2872 = vrot.lane.b32.xlu1 %v3178_v15, %s2970_s14 }
 0x35f   : > { %2877 = vrot.lane.b32.xlu1 %v3178_v15, %s2971_s22  ;;  %v2501_v15 = vld [vmem:[%s3433_s8] ss:$0 sm:$0xff] }
 0x392   : > { %v916_v14 = vpop.xlane.xlu1 %915 }
 0x393   : > { %v913_v12 = vpop.xlane.xlu0 %912 }
 0x394   : > { %2889 = vrcp.f32 %v913_v12 }
 0x395   : > { %2891 = vrcp.f32 %v916_v14 }
 0x39a   : > { %v1122_v20 = vpop.xlane.xlu1 %1121 }
 0x39b   : > { %v1119_v21 = vpop.xlane.xlu0 %1118 }
 0x39c   : > { %2893 = vrcp.f32 %v1119_v21 }
 0x39d   : > { %2895 = vrcp.f32 %v1122_v20 }
 0x39e   : > { %v2890_v22 = vpop.eup %2889  ;;  %v2863_v23 = vpop.permute.xlu1 %2862 }
 0x39f   : > { %v2858_v24 = vpop.permute.xlu0 %2857  ;;  %v919_v25 = vmul.f32 %v2890_v22, %v2884_v1  ;;  %v2865_v26 = vunpack.i.h.bf16 %v2863_v23  ;;  %v2864_v27 = vunpack.i.l.bf16 %v2863_v23  ;;  %v2892_v32 = vpop.eup %2891 }
 0x3a0   : > { %v2860_v28 = vunpack.i.h.bf16 %v2858_v24  ;;  %v2859_v29 = vunpack.i.l.bf16 %v2858_v24  ;;  %v920_v40 = vmul.f32 %v2892_v32, %v3225_v0 }
 0x3a1   : > { %2608 = vmatprep.mubr.msk.f32.mxu0 %vm897_vm6, %v919_v25  ;;  %v2729_v37 = vpack.c.bf16 %v2865_v26, %v2864_v27 }
 0x3a2   : > { %v2868_v30 = vpop.permute.xlu1 %2867  ;;  %v2717_v31 = vpack.c.bf16 %v2860_v28, %v2859_v29 }
 0x3a3   : > { %v2870_v33 = vunpack.i.h.bf16 %v2868_v30  ;;  %v2869_v35 = vunpack.i.l.bf16 %v2868_v30  ;;  %v1666_v36 = vpop.permute.xlu0 %1665 }
 0x3a4   : > { %2719 = vmatprep.subr.msk.bf16.mxu0 %vm3247_vm9, %v2717_v31  ;;  %2658 = vmatprep.mubr.msk.f32.mxu1 %vm803_vm3, %v1666_v36 }
 0x3a5   : > { %v2747_v38 = vpack.c.bf16 %v2870_v33, %v2869_v35  ;;  %2722 = vmatpush3.bf16.msk.msra.mxu0 %vm3247_vm9, %v2717_v31  ;;  %v795_v35 = vld [vmem:[%s3105_s12 + $0x18] sm:$0xff] }
 0x3a6   : > { %v2894_v39 = vpop.eup %2893  ;;  %2731 = vmatprep.subr.msk.bf16.mxu0 %vm3247_vm9, %v2729_v37  ;;  %v1668_v44 = vpop.permute.xlu1 %1667 }
 0x3a7   : > { %v2896_v41 = vpop.eup %2895  ;;  %2749 = vmatprep.subr.msk.bf16.mxu1 %vm3188_vm4, %v2747_v38  ;;  %v1125_v42 = vmul.f32 %v2894_v39, %v2888_v5 }
 0x3a8   : > { %2609 = vmatmul.mubr.msk.f32.vlgmr.msra.gmra.mrb[0].mxu0 %vm897_vm6, %v920_v40  ;;  %2752 = vmatpush3.bf16.xpose.msk.msra.mxu1 %vm3188_vm4, %v2747_v38  ;;  %v1126_v43 = vmul.f32 %v2896_v41, %v3230_v4 }
 0x3a9   : > { %2734 = vmatpush3.bf16.msk.msra.mxu0 %vm3247_vm9, %v2729_v37  ;;  %2622 = vmatprep.mubr.msk.f32.mxu0 %vm897_vm6, %v1125_v42 }
 0x3aa   : > { %2625 = vmatprep.subr.mxu0 %v793_v54 }
 0x3ac   : > { %2623 = vmatmul.mubr.msk.f32.vlgmr.msra.gmra.mrb[2].mxu0 %vm897_vm6, %v1126_v43 }
 0x3ad   : > { %2626 = vmatpush3.msra.mxu0 %v793_v54 }
 0x3ae   : > { %2630 = vmatprep.subr.mxu0 %v792_v55 }
 0x3af   : > { %2659 = vmatmul.mubr.msk.f32.vlgmr.msra.gmra.mrb[8].mxu1 %vm803_vm3, %v1668_v44 }
 0x3d4   : > { %v1474_v45 = vpop.xlane.xlu0 %1473 }
 0x3d5   : > { %v1478_v46 = vsub.f32 %v1470_v13, %v1474_v45 }
 0x3d7   : > { %v1480_v47 = vmul.f32 1.442695, %v1478_v46  ;;  %v1477_v48 = vpop.xlane.xlu1 %1476 }
 0x3d8   : > { %v1479_v19 = vsub.f32 %v1471_v16, %v1477_v48 }
 0x3d9   : > { %2897 = vpow2.f32 %v1480_v47 }
 0x3da   : > { %v1482_v49 = vmul.f32 1.442695, %v1479_v19 }
 0x3db   : > { %v2873_v57 = vpop.permute.xlu1 %2872 }
 0x3dc   : > { %2899 = vpow2.f32 %v1482_v49  ;;  %v2875_v61 = vunpack.i.h.bf16 %v2873_v57  ;;  %v2874_v62 = vunpack.i.l.bf16 %v2873_v57 }
 0x3de   : > { %v2741_v1 = vpack.c.bf16 %v2875_v61, %v2874_v62  ;;  %v2011_v62 = vld [vmem:[%s3122_s17 + $0x10] sm:$0xff] }
 0x3df   : > { %v2878_v10 = vpop.permute.xlu1 %2877 }
 0x3e0   : > { %v2880_v12 = vunpack.i.h.bf16 %v2878_v10  ;;  %v2879_v14 = vunpack.i.l.bf16 %v2878_v10  ;;  %v2108_v10 = vld [vmem:[%s3136_s0 + $0x28] sm:$0xff] }
 0x3e2   : > { %v2753_v22 = vpack.c.bf16 %v2880_v12, %v2879_v14 }
 0x3e3   : > { %v2898_v50 = vpop.eup %2897 }
 0x3e4   : > { %v1484_v51 = vsel %vm897_vm6, %v2898_v50, 0.0 }
 0x3e5   : > { %1485 = vadd.xlane.f32.xlu0 %v1484_v51 }
 0x3e6   : > { %v2900_v52 = vpop.eup %2899 }
 0x3e7   : > { %v1487_v53 = vsel %vm901_vm5, %v2900_v52, 0.0 }
 0x3e9   : > { %1488 = vadd.xlane.f32.xlu0 %v1487_v53 }
 0x472   : > { %v1486_v56 = vpop.xlane.xlu0 %1485 }
 0x473   : > { %2901 = vrcp.f32 %v1486_v56 }
 0x476   : > { %v1489_v59 = vpop.xlane.xlu0 %1488 }
 0x477   : > { %2903 = vrcp.f32 %v1489_v59  ;;  %v2009_v59 = vld [vmem:[%s3122_s17] sm:$0xff] }
 0x47b   : > { %v2610_v58 = vpop.f32.mrb[0].mxu0 }
 0x47c   : > { %v1001_v60 = vpop.f32.mrb[1].mxu0 }
 0x47d   : > { %v2902_v6 = vpop.eup %2901 }
 0x47e   : > { %v1492_v17 = vmul.f32 %v2902_v6, %v2898_v50 }
 0x47f   : > { %v2624_v63 = vpop.f32.mrb[2].mxu0 }
 0x480   : > { %v1206_v0 = vpop.f32.mrb[3].mxu0 }
 0x481   : > { %2627 = vmatprep.mubr.msk.f32.mxu0 %vm803_vm3, %v1206_v0  ;;  %v2904_v16 = vpop.eup %2903 }
 0x482   : > { %2628 = vmatmul.mubr.msk.f32.vlgmr.msra.gmra.mrb[4].mxu0 %vm803_vm3, %v2624_v63  ;;  %v2660_v2 = vpop.f32.mrb[8].mxu1  ;;  %v1493_v20 = vmul.f32 %v2904_v16, %v2900_v52  ;;  %v2012_v63 = vld [vmem:[%s3122_s17 + $0x18] sm:$0xff] }
 0x483   : > { %2631 = vmatpush3.msra.mxu0 %v792_v55  ;;  %2632 = vmatprep.mubr.msk.f32.mxu0 %vm803_vm3, %v1001_v60  ;;  %v1747_v3 = vpop.f32.mrb[9].mxu1  ;;  %v1757_v4 = vmul.f32 0.35355338, %v2660_v2  ;;  %v2010_v60 = vld [vmem:[%s3122_s17 + $0x8] sm:$0xff]  ;;  %v2763_v0 = vpack.c.bf16 %v2012_v63, %v2011_v62  ;;  %v2510_v62 = vld [vmem:[%s677_s2] ss:$0 sm:$0xff] }
 0x484   : > { %2743 = vmatprep.subr.msk.bf16.mxu0 %vm3247_vm9, %v2741_v1  ;;  %v1756_v5 = vmul.f32 0.35355338, %v1747_v3  ;;  %v2759_v61 = vpack.c.bf16 %v2010_v60, %v2009_v59  ;;  %v2104_v2 = vld [vmem:[%s3136_s0 + $0x8] sm:$0xff]  ;;  %v2105_v3 = vld [vmem:[%s3136_s0 + $0x10] sm:$0xff] }
 0x485   : > { %v1759_v13 = vadd.f32 %v3215_v34, %v1757_v4 }
 0x486   : > { %v1758_v8 = vadd.f32 %v3215_v34, %v1756_v5  ;;  %2760 = vmatprep.subr.bf16.mxu1 %v2759_v61  ;;  %v2106_v5 = vld [vmem:[%s3136_s0 + $0x18] sm:$0xff] }
 0x487   : > { %v1763_v21 = vsel %vm901_vm5, %v1759_v13, -inf  ;;  %2762 = vmatpush3.bf16.msra.mxu1 %v2759_v61  ;;  %v2771_v6 = vpack.c.bf16 %v2106_v5, %v2105_v3 }
 0x488   : > { %v1760_v11 = vsel %vm897_vm6, %v1758_v8, -inf  ;;  %2764 = vmatprep.subr.bf16.mxu1 %v2763_v0 }
 0x489   : > { %1761 = vmax.xlane.f32.xlu0 %v1760_v11 }
 0x48a   : > { %2633 = vmatmul.mubr.msk.f32.vlgmr.msra.gmra.mrb[4].mxu0 %vm803_vm3, %v2610_v58 }
 0x48b   : > { %2746 = vmatpush3.bf16.msk.msra.mxu0 %vm3247_vm9, %v2741_v1  ;;  %2646 = vmatprep.mubr.msk.f32.mxu0 %vm897_vm6, %v1492_v17  ;;  %v2103_v1 = vld [vmem:[%s3136_s0] sm:$0xff] }
 0x48c   : > { %2649 = vmatprep.subr.mxu0 %v794_v18  ;;  %2766 = vmatpush3.bf16.msra.mxu1 %v2763_v0  ;;  %v2767_v4 = vpack.c.bf16 %v2104_v2, %v2103_v1  ;;  %v2511_v0 = vld [vmem:[%s680_s7] ss:$0 sm:$0xff] }
 0x48d   : > { %1764 = vmax.xlane.f32.xlu0 %v1763_v21  ;;  %v2502_v21 = vld [vmem:[%s3434_s16] ss:$0 sm:$0xff] }
 0x48e   : > { %2647 = vmatmul.mubr.msk.f32.vlgmr.msra.gmra.mrb[6].mxu0 %vm897_vm6, %v1493_v20 }
 0x48f   : > { %2650 = vmatpush3.msra.mxu0 %v794_v18 }
 0x490   : > { %2755 = vmatprep.subr.msk.bf16.mxu0 %vm3247_vm9, %v2753_v22 }
 0x516   : > { %v1762_v34 = vpop.xlane.xlu0 %1761 }
 0x517   : > { %v1766_v23 = vsub.f32 %v1758_v8, %v1762_v34  ;;  %v2107_v8 = vld [vmem:[%s3136_s0 + $0x20] sm:$0xff] }
 0x518   : > { %v2775_v11 = vpack.c.bf16 %v2108_v10, %v2107_v8  ;;  %v2503_v34 = vld [vmem:[%s3436_s23] ss:$0 sm:$0xff] }
 0x519   : > { %v1768_v24 = vmul.f32 1.442695, %v1766_v23 }
 0x51a   : > { %v1765_v25 = vpop.xlane.xlu0 %1764 }
 0x51b   : > { %2905 = vpow2.f32 %v1768_v24  ;;  %v1767_v26 = vsub.f32 %v1759_v13, %v1765_v25 }
 0x51d   : > { %v1770_v27 = vmul.f32 1.442695, %v1767_v26 }
 0x51f   : > { %2907 = vpow2.f32 %v1770_v27 }
 0x525   : > { %v2906_v28 = vpop.eup %2905 }
 0x526   : > { %v1772_v29 = vsel %vm897_vm6, %v2906_v28, 0.0 }
 0x527   : > { %1773 = vadd.xlane.f32.xlu0 %v1772_v29  ;;  %v2109_v29 = vld [vmem:[%s3136_s0 + $0x30] sm:$0xff] }
 0x529   : > { %v2908_v30 = vpop.eup %2907 }
 0x52a   : > { %v1775_v31 = vsel %vm901_vm5, %v2908_v30, 0.0 }
 0x52b   : > { %1776 = vadd.xlane.f32.xlu0 %v1775_v31 }
 0x561   : > { %v2648_v32 = vpop.f32.mrb[6].mxu0 }
 0x562   : > { %v1573_v33 = vpop.f32.mrb[7].mxu0 }
 0x563   : > { %2651 = vmatprep.mubr.msk.f32.mxu0 %vm803_vm3, %v1573_v33 }
 0x564   : > { %2652 = vmatmul.mubr.msk.f32.vlgmr.msra.gmra.mrb[4].mxu0 %vm803_vm3, %v2648_v32  ;;  %v2504_v32 = vld [vmem:[%s3438_s18] ss:$0 sm:$0xff] }
 0x565   : > { %2758 = vmatpush3.bf16.msk.msra.mxu0 %vm3247_vm9, %v2753_v22 }
 0x566   : > { %2668 = vmatprep.subr.mxu0 %v795_v35 }
 0x5b4   : > { %v1774_v36 = vpop.xlane.xlu0 %1773 }
 0x5b5   : > { %2909 = vrcp.f32 %v1774_v36 }
 0x5b8   : > { %v1777_v37 = vpop.xlane.xlu0 %1776 }
 0x5b9   : > { %2911 = vrcp.f32 %v1777_v37 }
 0x5bf   : > { %v2910_v38 = vpop.eup %2909 }
 0x5c0   : > { %v1780_v39 = vmul.f32 %v2910_v38, %v2906_v28 }
 0x5c2   : > { %2665 = vmatprep.mubr.msk.f32.mxu0 %vm897_vm6, %v1780_v39 }
 0x5c3   : > { %v2912_v40 = vpop.eup %2911 }
 0x5c4   : > { %v1781_v41 = vmul.f32 %v2912_v40, %v2908_v30  ;;  %v2110_v30 = vld [vmem:[%s3136_s0 + $0x38] sm:$0xff]  ;;  %v2507_v40 = vld [vmem:[%s674_s24] ss:$0 sm:$0xff] }
 0x5c5   : > { %v2779_v31 = vpack.c.bf16 %v2110_v30, %v2109_v29 }
 0x5c6   : > { %2666 = vmatmul.mubr.msk.f32.vlgmr.msra.gmra.mrb[8].mxu0 %vm897_vm6, %v1781_v41 }
 0x5c7   : > { %2669 = vmatpush3.msra.mxu0 %v795_v35 }
 0x5c8   : > { %2768 = vmatprep.subr.bf16.mxu0 %v2767_v4 }
 0x699   : > { %v2667_v42 = vpop.f32.mrb[8].mxu0 }
 0x69a   : > { %v1861_v43 = vpop.f32.mrb[9].mxu0 }
 0x69b   : > { %2670 = vmatprep.mubr.msk.f32.mxu0 %vm803_vm3, %v1861_v43 }
 0x69c   : > { %2671 = vmatmul.mubr.msk.f32.vlgmr.msra.gmra.mrb[4].mxu0 %vm803_vm3, %v2667_v42 }
 0x69d   : > { %2770 = vmatpush3.bf16.msra.mxu0 %v2767_v4 }
 0x69e   : > { %2772 = vmatprep.subr.bf16.mxu0 %v2771_v6 }
 0x6a1   : > { %2774 = vmatpush3.bf16.msra.mxu0 %v2771_v6 }
 0x6a2   : > { %2776 = vmatprep.subr.bf16.mxu0 %v2775_v11 }
 0x6a5   : > { %2778 = vmatpush3.bf16.msra.mxu0 %v2775_v11 }
 0x6a6   : > { %2780 = vmatprep.subr.bf16.mxu0 %v2779_v31 }
 0x6a9   : > { %2782 = vmatpush3.bf16.msra.mxu0 %v2779_v31 }
 0x76f   : > { %v2672_v44 = vpop.f32.mrb[4].mxu0 }
 0x770   : > { %v1960_v45 = vadd.f32 %v2672_v44, %v2501_v15  ;;  %v1942_v46 = vpop.f32.mrb[5].mxu0 }
 0x771   : > { %v1959_v47 = vadd.f32 %v2501_v15, %v1942_v46 }
 0x772   : > { %v1962_v48 = vadd.f32 %v1960_v45, %v3160_v9 }
 0x773   : > { %v1961_v19 = vadd.f32 %v1959_v47, %v3155_v7 }
 0x774   : > { %v1969_v49 = vsel %vm1968_vm10, %v1962_v48, 0.0 }
 0x775   : > { %1970 = vadd.xlane.f32.xlu1 %v1969_v49  ;;  %v1965_v50 = vsel %vm710_vm2, %v1961_v19, 0.0 }
 0x776   : > { %1966 = vadd.xlane.f32.xlu0 %v1965_v50 }
 0x802   : > { %v1971_v51 = vpop.xlane.xlu1 %1970 }
 0x803   : > { %v1974_v52 = vmul.f32 0.03125, %v1971_v51  ;;  %v1967_v53 = vpop.xlane.xlu0 %1966 }
 0x804   : > { %v1973_v54 = vmul.f32 0.03125, %v1967_v53 }
 0x805   : > { %v1976_v55 = vsub.f32 %v1962_v48, %v1974_v52 }
 0x806   : > { %v1975_v56 = vsub.f32 %v1961_v19, %v1973_v54 }
 0x807   : > { %v1978_v9 = vmul.f32 %v1976_v55, %v1976_v55 }
 0x808   : > { %v1977_v57 = vmul.f32 %v1975_v56, %v1975_v56 }
 0x809   : > { %v1982_v58 = vsel %vm1968_vm10, %v1978_v9, 0.0 }
 0x80a   : > { %v1979_v7 = vsel %vm710_vm2, %v1977_v57, 0.0 }
 0x80b   : > { %1980 = vadd.xlane.f32.xlu0 %v1979_v7 }
 0x80f   : > { %1983 = vadd.xlane.f32.xlu0 %v1982_v58 }
 0x898   : > { %v1981_v13 = vpop.xlane.xlu0 %1980 }
 0x899   : > { %v1985_v16 = vmul.f32 0.03125, %v1981_v13 }
 0x89b   : > { %v1987_v17 = vadd.f32 1e-05, %v1985_v16 }
 0x89c   : > { %v1984_v18 = vpop.xlane.xlu0 %1983 }
 0x89d   : > { %2913 = vrsqrt.f32 %v1987_v17  ;;  %v1986_v12 = vmul.f32 0.03125, %v1984_v18 }
 0x89f   : > { %v1988_v14 = vadd.f32 1e-05, %v1986_v12 }
 0x8a1   : > { %2915 = vrsqrt.f32 %v1988_v14 }
 0x8a7   : > { %v2914_v20 = vpop.eup %2913 }
 0x8a8   : > { %v1991_v22 = vmul.f32 %v2914_v20, %v1975_v56 }
 0x8aa   : > { %v1999_v23 = vmul.f32 %v2502_v21, %v1991_v22 }
 0x8ab   : > { %v2916_v24 = vpop.eup %2915 }
 0x8ac   : > { %v1992_v25 = vmul.f32 %v2916_v24, %v1976_v55  ;;  %v2007_v26 = vadd.f32 %v2503_v34, %v1999_v23 }
 0x8ae   : > { %v2000_v27 = vmul.f32 %v2502_v21, %v1992_v25  ;;  %2681 = vmatprep.mubr.msk.f32.mxu1 %vm710_vm2, %v2007_v26 }
 0x8b0   : > { %v2008_v28 = vadd.f32 %v2503_v34, %v2000_v27 }
 0x8b2   : > { %2682 = vmatmul.mubr.msk.f32.vlgmr.msra.gmra.mrb[10].mxu1 %vm710_vm2, %v2008_v28 }
 0x985   : > { %v2683_v33 = vpop.f32.mrb[10].mxu1 }
 0x986   : > { %v2098_v35 = vadd.f32 %v2683_v33, %v2504_v32  ;;  %v2092_v36 = vpop.f32.mrb[11].mxu1 }
 0x987   : > { %v2093_v37 = vadd.f32 %v2504_v32, %v2092_v36 }
 0x988   : > { %v2102_v39 = vmax.f32 %v2098_v35, 0.0 }
 0x989   : > { %v2101_v38 = vmax.f32 %v2093_v37, 0.0 }
 0x98b   : > { %2700 = vmatprep.mubr.msk.f32.mxu0 %vm2118_vm11, %v2101_v38 }
 0x98c   : > { %2701 = vmatmul.mubr.msk.f32.vlgmr.msra.gmra.mrb[10].mxu0 %vm2118_vm11, %v2102_v39 }
 0xa5f   : > { %v2702_v41 = vpop.f32.mrb[10].mxu0 }
 0xa60   : > { %v2191_v42 = vpop.f32.mrb[11].mxu0  ;;  %v2197_v43 = vadd.f32 %v2702_v41, %v2507_v40 }
 0xa61   : > { %v2192_v15 = vadd.f32 %v2507_v40, %v2191_v42 }
 0xa62   : > { %v2201_v46 = vadd.f32 %v2197_v43, %v2008_v28 }
 0xa63   : > { %v2200_v44 = vadd.f32 %v2192_v15, %v2007_v26 }
 0xa64   : > { %v2207_v47 = vsel %vm1968_vm10, %v2201_v46, 0.0 }
 0xa65   : > { %v2204_v45 = vsel %vm710_vm2, %v2200_v44, 0.0 }
 0xa66   : > { %2205 = vadd.xlane.f32.xlu0 %v2204_v45 }
 0xa6a   : > { %2208 = vadd.xlane.f32.xlu0 %v2207_v47 }
 0xaf3   : > { %v2206_v48 = vpop.xlane.xlu0 %2205 }
 0xaf4   : > { %v2210_v19 = vmul.f32 0.03125, %v2206_v48 }
 0xaf6   : > { %v2212_v49 = vsub.f32 %v2200_v44, %v2210_v19 }
 0xaf7   : > { %v2209_v50 = vpop.xlane.xlu0 %2208 }
 0xaf8   : > { %v2211_v51 = vmul.f32 0.03125, %v2209_v50  ;;  %v2214_v52 = vmul.f32 %v2212_v49, %v2212_v49 }
 0xafa   : > { %v2213_v53 = vsub.f32 %v2201_v46, %v2211_v51  ;;  %v2216_v54 = vsel %vm710_vm2, %v2214_v52, 0.0 }
 0xafb   : > { %2217 = vadd.xlane.f32.xlu0 %v2216_v54 }
 0xafc   : > { %v2215_v55 = vmul.f32 %v2213_v53, %v2213_v53 }
 0xafe   : > { %v2219_v56 = vsel %vm1968_vm10, %v2215_v55, 0.0 }
 0xaff   : > { %2220 = vadd.xlane.f32.xlu0 %v2219_v56 }
 0xb88   : > { %v2218_v57 = vpop.xlane.xlu0 %2217 }
 0xb89   : > { %v2222_v7 = vmul.f32 0.03125, %v2218_v57 }
 0xb8b   : > { %v2224_v9 = vadd.f32 1e-05, %v2222_v7 }
 0xb8c   : > { %v2221_v58 = vpop.xlane.xlu0 %2220 }
 0xb8d   : > { %2917 = vrsqrt.f32 %v2224_v9  ;;  %v2223_v59 = vmul.f32 0.03125, %v2221_v58 }
 0xb8f   : > { %v2225_v60 = vadd.f32 1e-05, %v2223_v59 }
 0xb91   : > { %2919 = vrsqrt.f32 %v2225_v60 }
 0xb97   : > { %v2918_v61 = vpop.eup %2917 }
 0xb98   : > { %v2228_v63 = vmul.f32 %v2918_v61, %v2212_v49 }
 0xb9a   : > { %v2236_v1 = vmul.f32 %v2510_v62, %v2228_v63 }
 0xb9b   : > { %v2920_v2 = vpop.eup %2919 }
 0xb9c   : > { %v2244_v3 = vadd.f32 %v2511_v0, %v2236_v1  ;;  %v2229_v4 = vmul.f32 %v2920_v2, %v2213_v53 }
 0xb9e   : > { %2246 = vst.msk [vmem:[%s3149_s9] sm:$0xff] %vm710_vm2, %v2244_v3  ;;  %v2237_v5 = vmul.f32 %v2510_v62, %v2229_v4 }
 0xba0   : > { %v2245_v6 = vadd.f32 %v2511_v0, %v2237_v5 }
 0xba2   : > { %2247 = vst.msk [vmem:[%s3149_s9 + $0x8] sm:$0xf] %vm1968_vm10, %v2245_v6 }
 0xba3 PF: > { %s3441_s12 = sld [smem:[#allocation5_spill]]  ;;  %s3442_s29 = sld [smem:[#allocation3_spill]] }
 0xba4   : > { %s3443_s30 = sld [smem:[#allocation4_spill]]  ;;  %s3444_s15 = sld [smem:[#allocation6_spill]] }
 0xba5   : > { %s3445_s16 = sld [smem:[#allocation7_spill]] }
 0xba9   : > { %s24_s17 = sadd.s32 1, %s3441_s12  }
 0xbaa   : > { %p21_p8 = scmp.ge.s32.totalorder %s24_s17, 6  }
 0xbac   :  { %23 = sbr.rel (!%p21_p8) target bundleno = 11 (0xb), region = 149 }

// kernel: _lambda_.3
= control target key start
LH: loop header
LB: loop body
LE: loop exit
PB: predicated region body
PF: predicated region fallthrough
CT: control target
= control target key end

     0   :  { %s5519_s0 = inlined_call_operand.vmem [shape: f32[2,8,32], index: 0, kind: input, shape index: {}]   ;;  %s5520_s1 = inlined_call_operand.vmem [shape: f32[2,12,32], index: 1, kind: input, shape index: {}]   ;;  %s5521_s2 = inlined_call_operand.vmem [shape: f32[2,1,12], index: 2, kind: input, shape index: {}]   ;;  %s5522_s3 = inlined_call_operand.vmem [shape: f32[2,32,96], index: 3, kind: input, shape index: {}]   ;;  %s5523_s4 = inlined_call_operand.vmem [shape: f32[2,1,96], index: 4, kind: input, shape index: {}]   ;;  %s5524_s5 = inlined_call_operand.vmem [shape: f32[2,32,32], index: 5, kind: input, shape index: {}]   ;;  %s5525_s6 = inlined_call_operand.vmem [shape: f32[2,1,32], index: 6, kind: input, shape index: {}]   ;;  %s5526_s7 = inlined_call_operand.vmem [shape: f32[2,1,32], index: 7, kind: input, shape index: {}]   ;;  %s5527_s8 = inlined_call_operand.vmem [shape: f32[2,1,32], index: 8, kind: input, shape index: {}]   ;;  %s5528_s9 = inlined_call_operand.vmem [shape: f32[2,32,32], index: 9, kind: input, shape index: {}]   ;;  %s5529_s10 = inlined_call_operand.vmem [shape: f32[2,1,32], index: 10, kind: input, shape index: {}]   ;;  %s5530_s11 = inlined_call_operand.vmem [shape: f32[2,32,64], index: 11, kind: input, shape index: {}]   ;;  %s5531_s12 = inlined_call_operand.vmem [shape: f32[2,1,64], index: 12, kind: input, shape index: {}]   ;;  %s5532_s13 = inlined_call_operand.vmem [shape: f32[2,32,32], index: 13, kind: input, shape index: {}]   ;;  %s5533_s14 = inlined_call_operand.vmem [shape: f32[2,1,32], index: 14, kind: input, shape index: {}]   ;;  %s5534_s15 = inlined_call_operand.vmem [shape: f32[2,1,32], index: 15, kind: input, shape index: {}]   ;;  %s5535_s16 = inlined_call_operand.vmem [shape: f32[2,1,32], index: 16, kind: input, shape index: {}]   ;;  %s5536_s17 = inlined_call_operand.vmem [shape: f32[2,32,64], index: 17, kind: input, shape index: {}]   ;;  %s5537_s18 = inlined_call_operand.vmem [shape: f32[2,1,64], index: 18, kind: input, shape index: {}]   ;;  %s5538_s19 = inlined_call_operand.vmem [shape: f32[2,64,32], index: 19, kind: input, shape index: {}]   ;;  %s5539_s20 = inlined_call_operand.vmem [shape: f32[2,1,32], index: 20, kind: input, shape index: {}]   ;;  %s5540_s21 = inlined_call_operand.vmem [shape: f32[2,1,32], index: 21, kind: input, shape index: {}]   ;;  %s5541_s22 = inlined_call_operand.vmem [shape: f32[2,1,32], index: 22, kind: input, shape index: {}]   ;;  %s5542_s23 = inlined_call_operand.vmem [shape: f32[32,128], index: 23, kind: input, shape index: {}]   ;;  %s5543_s24 = inlined_call_operand.vmem [shape: f32[1,128], index: 24, kind: input, shape index: {}]   ;;  %s5544_s25 = inlined_call_operand.hbm [shape: f32[2,8,128], index: 25, kind: output, shape index: {}]  }
   0x1   :  { %5565 = sst [smem:[#allocation23_spill]] %s5519_s0 }
   0x2   :  { %5566 = sst [smem:[#allocation24_spill]] %s5520_s1 }
   0x3   :  { %5567 = sst [smem:[#allocation25_spill]] %s5521_s2 }
   0x4   :  { %5568 = sst [smem:[#allocation26_spill]] %s5522_s3 }
   0x5   :  { %5569 = sst [smem:[#allocation27_spill]] %s5523_s4 }
   0x6   :  { %5570 = sst [smem:[#allocation28_spill]] %s5524_s5 }
   0x7   :  { %5571 = sst [smem:[#allocation29_spill]] %s5525_s6 }
   0x8   :  { %5572 = sst [smem:[#allocation30_spill]] %s5526_s7 }
   0x9   :  { %5573 = sst [smem:[#allocation31_spill]] %s5527_s8 }
   0xa   :  { %5574 = sst [smem:[#allocation32_spill]] %s5528_s9 }
   0xb   :  { %5575 = sst [smem:[#allocation33_spill]] %s5530_s11 }
   0xc   :  { %5576 = sst [smem:[#allocation34_spill]] %s5532_s13 }
   0xd   :  { %5577 = sst [smem:[#allocation35_spill]] %s5534_s15 }
   0xe   :  { %5578 = sst [smem:[#allocation36_spill]] %s5535_s16 }
   0xf   :  { %5579 = sst [smem:[#allocation37_spill]] %s5536_s17 }
  0x10   :  { %5580 = sst [smem:[#allocation38_spill]] %s5538_s19 }
  0x11   :  { %5581 = sst [smem:[#allocation39_spill]] %s5539_s20 }
  0x12   :  { %5582 = sst [smem:[#allocation40_spill]] %s5540_s21 }
  0x13   :  { %5583 = sst [smem:[#allocation41_spill]] %s5541_s22 }
  0x14   :  { %5584 = sst [smem:[#allocation42_spill]] %s5542_s23 }
  0x15   :  { %5585 = sst [smem:[#allocation43_spill]] %s5543_s24 }
  0x16   :  { %5586 = sst [smem:[#allocation44_spill]] %s5544_s25 }
  0x17   :  { %30 = vsyncpa [#allocation4], 0 }
  0x18   :  { %32 = vsyncpa [#allocation4 + $0x1], 0  ;;  %s4925_s29 = smov 0   ;;  %s4927_s2 = smov 0  }
  0x19   :  { %s4929_s6 = smov 0   ;;  %s4931_s30 = smov 0  }
  0x1a   :  { %s4933_s7 = smov 0   ;;  %s4935_s3 = smov 0  }
  0x1b   :  { %s4937_s26 = smov 0   ;;  %s4939_s1 = smov 0  }
  0x1c LB: > { %5587 = sst [smem:[#allocation6_spill]] %s4746_s29  ;;  %s4042_s8 = sadd.s32 4294967295, %s4774_s1   ;;  %s4774_s1 = sphi %s4939_s1, %s38_s1   ;;  %s4770_s26 = sphi %s4937_s26, %s5672_s26   ;;  %s4766_s3 = sphi %s4935_s3, %s5671_s3   ;;  %s4762_s7 = sphi %s4933_s7, %s5670_s7   ;;  %s4758_s30 = sphi %s4931_s30, %s5669_s30   ;;  %s4754_s6 = sphi %s4929_s6, %s5668_s6   ;;  %s4750_s2 = sphi %s4927_s2, %s5667_s2   ;;  %s4746_s29 = sphi %s4925_s29, %s5666_s29  }
  0x1d   : > { %5588 = sst [smem:[#allocation7_spill]] %s4750_s2  ;;  %s4043_s27 = sadd.s32 4294967294, %s4774_s1  }
  0x1e   : > { %5589 = sst [smem:[#allocation8_spill]] %s4754_s6  ;;  %s47_s4 = sadd.s32 1, %s4766_s3 }
  0x1f   : > { %5590 = sst [smem:[#allocation9_spill]] %s4758_s30  ;;  %p48_p0 = scmp.ge.s32.totalorder %s47_s4, 2 }
  0x20   : > { %5591 = sst [smem:[#allocation10_spill]] %s4762_s7  ;;  %s50_s28 = sadd.s32 1, %s4770_s26 }
  0x21   : > { %5592 = sst [smem:[#allocation11_spill]] %s4766_s3  ;;  %p707_p1 = scmp.ne.s32.totalorder %s4754_s6, %s4750_s2 }
  0x22   : > { %5593 = sst [smem:[#allocation12_spill]] %s4770_s26  ;;  %p708_p2 = scmp.eq.s32.totalorder %s4042_s8, 3 }
  0x23   : > { %5594 = sst [smem:[#allocation13_spill]] %s4774_s1  ;;  %s5674_s4 = smov (%p48_p0, %s47_s4), 0 }
  0x24   : > { %5595 = sst [smem:[#allocation14_spill]] %s5674_s4  ;;  %s5676_s28 = smov (!%p48_p0, %s50_s28), %s4770_s26 }
  0x25   : > { %p4974_p3 = por %p708_p2, %p707_p1  ;;  %p713_p4 = scmp.ne.s32.totalorder %s4750_s2, %s4746_s29 }
  0x26   : > { %p52_p5 = scmp.ge.s32.totalorder %s5676_s28, 2  ;;  %p714_p6 = scmp.eq.s32.totalorder %s4043_s27, 3 }
  0x27   : > { %s5596_s9 = scalar_select %p4974_p3, 1, 0 }
  0x28   : > { %p4046_p7 = scmp.ge.s32.totalorder %s4774_s1, 1  ;;  %p893_p8 = scmp.lt.s32.totalorder %s4774_s1, 5 }
  0x29   : > { %5597 = sst [smem:[#allocation15_spill]] %s5596_s9  ;;  %s5678_s28 = smov (%p52_p5, %s5676_s28), 0 }
  0x2a   : > { %5598 = sst [smem:[#allocation16_spill]] %s5678_s28  ;;  %p4984_p9 = por %p714_p6, %p713_p4 }
  0x2b   : > { %p894_p10 = pnand %p4046_p7, %p893_p8  ;;  %s694_s0 = ssub.s32 %s4770_s26, %s5678_s28 }
  0x2c   : > { %s5599_s5 = scalar_select %p4984_p9, 1, 0 }
  0x2d   : > { %s697_s8 = sadd.s32 1, %s4754_s6  ;;  %p695_p11 = scmp.eq.s32.totalorder %s694_s0, 0 }
  0x2e   : > { %5600 = sst [smem:[#allocation17_spill]] %s5599_s5  ;;  %897 = sbr.rel (%p894_p10) target bundleno = 6961 (0x1b31), region = 120 }
  0x2f   : > { %s4992_s4 = scalar_select %p695_p11, %s4754_s6, %s697_s8  }
  0x31   : > { %5601 = sst [smem:[#allocation18_spill]] %s4992_s4 }
  0x35   : > { %s5549_s27 = sand.u32 1, %s4750_s2   ;;  %p1042_p12 = scmp.lt.s32.totalorder %s4762_s7, 1 }
  0x36   : > { %s4998_s3 = sshll.u32 %s5549_s27, 3  ;;  %p1054_p13 = scmp.lt.s32.totalorder %s4758_s30, 1 }
  0x37   : > { %s5002_s5 = scalar_select %p1042_p12, %s4762_s7, 1 }
  0x38   : > { %s5005_s0 = scalar_select %p1054_p13, %s4758_s30, 1 }
  0x39   : > { %5602 = sst [smem:[#allocation19_spill]] %s5002_s5  ;;  %s4048_s8 = sshll.u32 %s5002_s5, 3 }
  0x3a   : > { %s4133_s28 = sshll.u32 %s5002_s5, 4  ;;  %s5603_s4 = sld [smem:[#allocation23_spill]] }
  0x3b   : > { %s5604_s25 = sld [smem:[#allocation24_spill]]  ;;  %s4134_s30 = sshll.u32 %s5005_s0, 5 }
  0x3c   : > { %s5607_s19 = sld [smem:[#allocation26_spill]]  ;;  %s5615_s1 = sld [smem:[#allocation32_spill]] }
  0x3d   : > { %s5616_s11 = sld [smem:[#allocation33_spill]]  ;;  %s5617_s13 = sld [smem:[#allocation34_spill]] }
  0x3e   : > { %s5620_s17 = sld [smem:[#allocation37_spill]]  ;;  %s5622_s2 = sld [smem:[#allocation38_spill]] }
  0x3f   : > { %s5625_s26 = sld [smem:[#allocation9_spill]] }
  0x40   : > { %s1045_s6 = scalar_lea.vmem %s5603_s4, %s4048_s8  ;;  %s5621_s4 = sld [smem:[#allocation39_spill]] }
  0x41   : > { %s5015_s9 = scalar_lea.vmem %s5604_s25, %s4133_s28  ;;  %s5610_s28 = sld [smem:[#allocation28_spill]] }
  0x42   : > { %5605 = sst [smem:[#allocation20_spill]] %s5015_s9  ;;  %s5025_s20 = scalar_lea.vmem %s5607_s19, %s4134_s30 }
  0x43   : > { %5608 = sst [smem:[#allocation21_spill]] %s5025_s20  ;;  %s5051_s25 = scalar_lea.vmem %s5615_s1, %s4134_s30 }
  0x44   : > { %s5060_s5 = scalar_lea.vmem %s5616_s11, %s4134_s30  ;;  %s5069_s29 = scalar_lea.vmem %s5617_s13, %s4134_s30 }
  0x45   : > { %s5086_s22 = scalar_lea.vmem %s5620_s17, %s4134_s30  ;;  %s1113_s20 = scalar_lea.vmem %s5537_s18, %s5005_s0 }
  0x46   : > { %s4140_s11 = sshll.u32 %s5005_s0, 6  ;;  %s1121_s13 = scalar_lea.vmem %s5621_s4, %s5005_s0 }
  0x47   : > { %s5034_s8 = scalar_lea.vmem %s5610_s28, %s4134_s30  ;;  %s5100_s15 = scalar_lea.vmem %s5622_s2, %s4140_s11 }
  0x48   : > { %5611 = sst [smem:[#allocation22_spill]] %s5034_s8  ;;  %s5623_s19 = sld [smem:[#allocation40_spill]] }
  0x49   : > { %s5624_s17 = sld [smem:[#allocation41_spill]]  ;;  %s1041_s9 = scalar_lea.vmem [#allocation3], %s4998_s3 }
  0x4a   : > { %p4065_p0 = scmp.ne.s32.totalorder %s5625_s26, 0 }
  0x4b   : > { %v1132_v0 = vld [vmem:[%s1045_s6] sm:$0xff] (!%p4065_p0)  ;;  %vm1133_vm0 = vcmask (!%p4065_p0), 261120  }
  0x4c   : > { %1131 = sbr.rel (%p4065_p0) target bundleno = 83 (0x53), region = 124  ;;  %1134 = vst.msk [vmem:[#allocation2] sm:$0xff] (!%p4065_p0), %vm1133_vm0, %v1132_v0 }
  0x4e   : > { %s1124_s23 = scalar_lea.vmem %s5623_s19, %s5005_s0 }
  0x4f   : > { %s1127_s16 = scalar_lea.vmem %s5624_s17, %s5005_s0 }
  0x53 PF: > { %s5626_s4 = sld [smem:[#allocation21_spill]]  ;;  %v4776_v4 = vmov 0.0|0.0   ;;  %vm4777_vm1 = vmmov 0   ;;  %v4778_v7 = vmov 0.0   ;;  %v5123_v9 = vld [vmem:[#allocation2] sm:$0xff]  ;;  %vm1150_vm2 = vcmask 261120   ;;  %s5641_s17 = scalar_lea.vmem %s5529_s10, %s5005_s0 }
  0x54   : > { %4442 = vmatprep.subr.bf16.mxu0 %v4776_v4  ;;  %4240 = vmatprep.mubr.msk.f32.mxu0 %vm4777_vm1, %v4778_v7  ;;  %s5627_s6 = sld [smem:[#allocation27_spill]]  ;;  %s4779_s2 = smov 120   ;;  %vm1232_vm3 = vcmask 64512   ;;  %vm2493_vm5 = vcmask 97280   ;;  %vm2513_vm6 = vcmask 1043456   ;;  %vm4790_vm7 = vmmov 1  }
  0x55   : > { %4248 = vmatprep.subr.mxu1 %v4778_v7  ;;  %4250 = vmatprep.mubr.msk.f32.mxu1 %vm4777_vm1, %v4778_v7  ;;  %s4780_s27 = smov 96   ;;  %s4781_s1 = smov 88   ;;  %vm5265_vm4 = vmpackc.low %vm1232_vm3, %vm1232_vm3  ;;  %vm3542_vm9 = vcmask 523264  }
  0x56   : > { %s5629_s8 = sld [smem:[#allocation22_spill]]  ;;  %s4782_s28 = smov 56   ;;  %vm5297_vm8 = vmpackc.low %vm2513_vm6, %vm4790_vm7 }
  0x57   : > { %s4783_s24 = smov 64   ;;  %s4784_s7 = smov 80  }
  0x58   : > { %s4785_s30 = smov 112   ;;  %s4786_s21 = smov 72  }
  0x59   : > { %v1139_v1 = vld [vmem:[%s5626_s4] sm:$0xff]  ;;  %v1140_v2 = vld [vmem:[%s5626_s4 + $0x8] sm:$0xff]  ;;  %v1141_v3 = vld [vmem:[%s5626_s4 + $0x10] sm:$0xff]  ;;  %s4787_s26 = smov 104   ;;  %s4789_s11 = smov 40  }
  0x5a   : > { %v4443_v5 = vpack.c.bf16 %v1140_v2, %v1139_v1  ;;  %v1142_v6 = vld [vmem:[%s5626_s4 + $0x18] sm:$0xff]  ;;  %s5628_s19 = scalar_lea.vmem %s5627_s6, %s5005_s0  ;;  %s4788_s4 = smov 48  }
  0x5b   : > { %v4446_v8 = vpack.c.bf16 %v1142_v6, %v1141_v3  ;;  %v4066_v10 = vld [vmem:[%s5628_s19] ss:$0 sm:$0xff]  ;;  %s5630_s19 = sld [smem:[#allocation29_spill]]  ;;  %s5635_s6 = sld [smem:[#allocation31_spill]] }
  0x5c   : > { %4444 = vmatpush3.bf16.msra.mxu0 %v4443_v5  ;;  %v1225_v35 = vld [vmem:[%s5629_s8 + $0x8] sm:$0xff]  ;;  %v1224_v44 = vld [vmem:[%s5629_s8] sm:$0xff] }
  0x5d   : > { %4445 = vmatprep.subr.bf16.mxu0 %v4776_v4 }
  0x60   : > { %4447 = vmatpush3.bf16.msra.mxu0 %v4446_v8 }
  0x61   : > { %4243 = vmatprep.subr.mxu0 %v4778_v7 }
  0x63   : > { %4241 = vmatmul.mubr.msk.f32.vlgmr.msra.gmra.mrb[0].mxu0 %vm1150_vm2, %v5123_v9 }
  0x64   : > { %4245 = vmatprep.mubr.msk.f32.mxu0 %vm4777_vm1, %v4778_v7 }
 0x136   : > { %v1220_v11 = vpop.f32.mrb[0].mxu0 }
 0x137   : > { %v5135_v12 = vadd.f32 %v4066_v10, %v1220_v11  ;;  %v4242_v13 = vpop.f32.mrb[1].mxu0  ;;  %v1226_v10 = vld [vmem:[%s5629_s8 + $0x10] sm:$0xff] }
 0x139   : > { %1395 = vrot.lane.b32.xlu1 %v5135_v12, %s4779_s2  ;;  %1230 = vrot.lane.b32.xlu0 %v5135_v12, %s4780_s27 }
 0x13d   : > { %1397 = vrot.lane.b32.xlu0 %v5135_v12, %s4781_s1 }
 0x1ab   : > { %v1231_v14 = vpop.permute.xlu0 %1230  ;;  %v1396_v16 = vpop.permute.xlu1 %1395 }
 0x1ac   : > { %4244 = vmatpush3.xpose.msk.msra.mxu0 %vm1232_vm3, %v1231_v14 }
 0x1ad   : > { %4253 = vmatprep.subr.mxu0 %v4778_v7 }
 0x1af   : > { %4246 = vmatmul.mubr.msk.f32.vlgmr.msra.gmra.mrb[2].mxu0 %vm1232_vm3, %v5135_v12  ;;  %v1398_v15 = vpop.permute.xlu0 %1397 }
 0x1b0   : > { %4254 = vmatpush3.xpose.msk.msra.mxu0 %vm1232_vm3, %v1398_v15  ;;  %4255 = vmatprep.mubr.msk.f32.mxu0 %vm4777_vm1, %v4778_v7 }
 0x1b1   : > { %4263 = vmatprep.subr.mxu0 %v4778_v7 }
 0x1b3   : > { %4256 = vmatmul.mubr.msk.f32.vlgmr.msra.gmra.mrb[4].mxu0 %vm1232_vm3, %v1396_v16 }
 0x1b4   : > { %4265 = vmatprep.mubr.msk.f32.mxu0 %vm4777_vm1, %v4778_v7  ;;  %4264 = vmatpush3.msra.mxu0 %v1225_v35 }
 0x1b5   : > { %4273 = vmatprep.subr.mxu0 %v4778_v7 }
 0x282   : > { %v1303_v17 = vpop.f32.mrb[2].mxu0 }
 0x283   : > { %v1307_v18 = vmul.f32 0.35355338, %v1303_v17  ;;  %v4247_v19 = vpop.f32.mrb[3].mxu0 }
 0x285   : > { %v1308_v20 = vsel %vm1232_vm3, %v1307_v18, -inf }
 0x286   : > { %1309 = vmax.xlane.f32.xlu1 %v1308_v20  ;;  %v1469_v21 = vpop.f32.mrb[4].mxu0 }
 0x287   : > { %v1473_v22 = vmul.f32 0.35355338, %v1469_v21  ;;  %v4257_v23 = vpop.f32.mrb[5].mxu0 }
 0x289   : > { %v1474_v24 = vsel %vm1232_vm3, %v1473_v22, -inf }
 0x28a   : > { %1475 = vmax.xlane.f32.xlu0 %v1474_v24  ;;  %v1227_v24 = vld [vmem:[%s5629_s8 + $0x18] sm:$0xff]  ;;  %s5631_s8 = scalar_lea.vmem %s5630_s19, %s5005_s0  ;;  %s5636_s19 = scalar_lea.vmem %s5635_s6, %s5005_s0 }
 0x313   : > { %v1310_v25 = vpop.xlane.xlu1 %1309 }
 0x314   : > { %v1311_v26 = vsub.f32 %v1307_v18, %v1310_v25 }
 0x316   : > { %v1312_v27 = vmul.f32 1.442695, %v1311_v26 }
 0x317   : > { %v1476_v28 = vpop.xlane.xlu0 %1475 }
 0x318   : > { %4642 = vpow2.f32 %v1312_v27  ;;  %v1477_v29 = vsub.f32 %v1473_v22, %v1476_v28 }
 0x31a   : > { %v1478_v30 = vmul.f32 1.442695, %v1477_v29 }
 0x31c   : > { %4644 = vpow2.f32 %v1478_v30 }
 0x322   : > { %v4643_v31 = vpop.eup %4642 }
 0x323   : > { %v1314_v32 = vsel %vm1232_vm3, %v4643_v31, 0.0 }
 0x324   : > { %1315 = vadd.xlane.f32.xlu0 %v1314_v32  ;;  %v4084_v32 = vld [vmem:[%s5631_s8] ss:$0 sm:$0xff] }
 0x326   : > { %v4645_v33 = vpop.eup %4644 }
 0x327   : > { %v1480_v34 = vsel %vm1232_vm3, %v4645_v33, 0.0 }
 0x328   : > { %1481 = vadd.xlane.f32.xlu1 %v1480_v34 }
 0x339   : > { %1485 = vrot.lane.b32.xlu1 %v5135_v12, %s4782_s28  ;;  %s5632_s28 = sld [smem:[#allocation20_spill]] }
 0x33a   : > { %1319 = vrot.lane.b32.xlu0 %v5135_v12, %s4783_s24  ;;  %s5638_s24 = sld [smem:[#allocation19_spill]] }
 0x33d   : > { %1709 = vrot.lane.b32.xlu1 %v5135_v12, %s4784_s7 }
 0x33e   : > { %1707 = vrot.lane.b32.xlu0 %v5135_v12, %s4785_s30 }
 0x3b1   : > { %v1316_v36 = vpop.xlane.xlu0 %1315 }
 0x3b2   : > { %4646 = vrcp.f32 %v1316_v36 }
 0x3b5   : > { %v1482_v37 = vpop.xlane.xlu1 %1481  ;;  %v1320_v38 = vpop.permute.xlu0 %1319 }
 0x3b6   : > { %4648 = vrcp.f32 %v1482_v37  ;;  %4249 = vmatpush3.msra.mxu1 %v1320_v38 }
 0x3b7   : > { %4258 = vmatprep.subr.mxu1 %v4778_v7 }
 0x3b9   : > { %v1486_v41 = vpop.permute.xlu1 %1485  ;;  %v1708_v50 = vpop.permute.xlu0 %1707 }
 0x3bc   : > { %v4647_v39 = vpop.eup %4646 }
 0x3bd   : > { %v1318_v40 = vmul.f32 %v4647_v39, %v4643_v31  ;;  %v1710_v48 = vpop.permute.xlu1 %1709 }
 0x3bf   : > { %4251 = vmatmul.mubr.msk.f32.vlgmr.msra.gmra.mrb[0].mxu1 %vm1232_vm3, %v1318_v40 }
 0x3c0   : > { %v4649_v42 = vpop.eup %4648  ;;  %4259 = vmatpush3.msra.mxu1 %v1486_v41  ;;  %4260 = vmatprep.mubr.msk.f32.mxu1 %vm4777_vm1, %v4778_v7 }
 0x3c1   : > { %v1484_v43 = vmul.f32 %v4649_v42, %v4645_v33  ;;  %4268 = vmatprep.subr.mxu1 %v4778_v7 }
 0x3c3   : > { %4261 = vmatmul.mubr.msk.f32.vlgmr.msra.gmra.mrb[2].mxu1 %vm1232_vm3, %v1484_v43 }
 0x3c4   : > { %4270 = vmatprep.mubr.msk.f32.mxu1 %vm4777_vm1, %v4778_v7  ;;  %4269 = vmatpush3.msra.mxu1 %v1224_v44  ;;  %v2309_v44 = vld [vmem:[%s5060_s5] sm:$0xff] }
 0x3c5   : > { %4278 = vmatprep.subr.mxu1 %v4778_v7 }
 0x492   : > { %v1391_v45 = vpop.f32.mrb[0].mxu1 }
 0x493   : > { %v4252_v46 = vpop.f32.mrb[1].mxu1  ;;  %4271 = vmatmul.mubr.msk.f32.vlgmr.msra.gmra.mrb[4].mxu1 %vm1232_vm3, %v1391_v45  ;;  %v2310_v45 = vld [vmem:[%s5060_s5 + $0x8] sm:$0xff] }
 0x494   : > { %4280 = vmatprep.mubr.msk.f32.mxu1 %vm4777_vm1, %v4778_v7  ;;  %v4454_v46 = vpack.c.bf16 %v2310_v45, %v2309_v44 }
 0x496   : > { %v1557_v47 = vpop.f32.mrb[2].mxu1 }
 0x497   : > { %v4262_v49 = vpop.f32.mrb[3].mxu1  ;;  %4266 = vmatmul.mubr.msk.f32.vlgmr.msra.gmra.mrb[6].mxu0 %vm1232_vm3, %v1557_v47  ;;  %v2312_v47 = vld [vmem:[%s5060_s5 + $0x18] sm:$0xff] }
 0x498   : > { %4274 = vmatpush3.xpose.msk.msra.mxu0 %vm1232_vm3, %v1710_v48  ;;  %4275 = vmatprep.mubr.msk.f32.mxu0 %vm4777_vm1, %v4778_v7  ;;  %v1136_v49 = vld [vmem:[%s5632_s28] sm:$0xff] }
 0x499   : > { %4283 = vmatprep.subr.mxu0 %v4778_v7 }
 0x49b   : > { %4276 = vmatmul.mubr.msk.f32.vlgmr.msra.gmra.mrb[8].mxu0 %vm1232_vm3, %v1708_v50  ;;  %v1137_v50 = vld [vmem:[%s5632_s28 + $0x8] sm:$0xf]  ;;  %s5649_s28 = sld [smem:[#allocation36_spill]] }
 0x49c   : > { %4285 = vmatprep.mubr.msk.f32.mxu0 %vm4777_vm1, %v4778_v7  ;;  %4284 = vmatpush3.msra.mxu0 %v1226_v10 }
 0x49d   : > { %4293 = vmatprep.subr.mxu0 %v4778_v7 }
 0x566   : > { %v1703_v51 = vpop.f32.mrb[4].mxu1 }
 0x567   : > { %v4272_v52 = vpop.f32.mrb[5].mxu1 }
 0x568   : > { %v2226_v52 = vld [vmem:[%s5051_s25 + $0x8] sm:$0xff] }
 0x56a   : > { %v1630_v53 = vpop.f32.mrb[6].mxu0 }
 0x56b   : > { %v1704_v54 = vadd.f32 %v1703_v51, %v1630_v53  ;;  %v4267_v55 = vpop.f32.mrb[7].mxu0  ;;  %v2225_v51 = vld [vmem:[%s5051_s25] sm:$0xff] }
 0x56c   : > { %v4449_v53 = vpack.c.bf16 %v2226_v52, %v2225_v51  ;;  %v2228_v55 = vld [vmem:[%s5051_s25 + $0x18] sm:$0xff] }
 0x56e   : > { %v1781_v56 = vpop.f32.mrb[8].mxu0 }
 0x56f   : > { %v1785_v57 = vmul.f32 0.35355338, %v1781_v56  ;;  %v4277_v58 = vpop.f32.mrb[9].mxu0 }
 0x571   : > { %v1786_v59 = vsel %vm1232_vm3, %v1785_v57, -inf }
 0x572   : > { %1787 = vmax.xlane.f32.xlu1 %v1786_v59 }
 0x583   : > { %1949 = vrot.lane.b32.xlu1 %v5135_v12, %s4786_s21 }
 0x587   : > { %1947 = vrot.lane.b32.xlu1 %v5135_v12, %s4787_s26 }
 0x5ff   : > { %v1788_v60 = vpop.xlane.xlu1 %1787 }
 0x600   : > { %v1789_v61 = vsub.f32 %v1785_v57, %v1788_v60 }
 0x602   : > { %v1790_v62 = vmul.f32 1.442695, %v1789_v61 }
 0x603   : > { %v1950_v5 = vpop.permute.xlu1 %1949 }
 0x604   : > { %4650 = vpow2.f32 %v1790_v62 }
 0x607   : > { %v1948_v8 = vpop.permute.xlu1 %1947 }
 0x60e   : > { %v4651_v63 = vpop.eup %4650 }
 0x60f   : > { %v1792_v0 = vsel %vm1232_vm3, %v4651_v63, 0.0 }
 0x610   : > { %1793 = vadd.xlane.f32.xlu0 %v1792_v0 }
 0x626   : > { %1797 = vrot.lane.b32.xlu0 %v5135_v12, %s4788_s4  ;;  %s5633_s4 = sld [smem:[#allocation30_spill]] }
 0x69d   : > { %v1794_v1 = vpop.xlane.xlu0 %1793 }
 0x69e   : > { %4652 = vrcp.f32 %v1794_v1 }
 0x6a1   : > { %v1798_v2 = vpop.permute.xlu0 %1797 }
 0x6a2   : > { %4279 = vmatpush3.msra.mxu1 %v1798_v2 }
 0x6a3   : > { %4288 = vmatprep.subr.mxu1 %v4778_v7 }
 0x6a8   : > { %v4653_v3 = vpop.eup %4652 }
 0x6a9   : > { %v1796_v6 = vmul.f32 %v4653_v3, %v4651_v63  ;;  %v4086_v63 = vld [vmem:[%s5636_s19] ss:$0 sm:$0xff]  ;;  %s5642_s19 = sld [smem:[#allocation25_spill]] }
 0x6ab   : > { %4281 = vmatmul.mubr.msk.f32.vlgmr.msra.gmra.mrb[6].mxu1 %vm1232_vm3, %v1796_v6 }
 0x6ac   : > { %4289 = vmatpush3.xpose.msk.msra.mxu1 %vm1232_vm3, %v1950_v5  ;;  %4290 = vmatprep.mubr.msk.f32.mxu1 %vm4777_vm1, %v4778_v7 }
 0x6ad   : > { %4298 = vmatprep.subr.mxu1 %v4778_v7 }
 0x6af   : > { %4291 = vmatmul.mubr.msk.f32.vlgmr.msra.gmra.mrb[8].mxu1 %vm1232_vm3, %v1948_v8  ;;  %s5643_s8 = scalar_lea.vmem %s5642_s19, %s5638_s24 }
 0x6b0   : > { %4300 = vmatprep.mubr.msk.f32.mxu1 %vm4777_vm1, %v4778_v7  ;;  %4299 = vmatpush3.msra.mxu1 %v1227_v24 }
 0x6b1   : > { %4455 = vmatprep.subr.bf16.mxu1 %v4454_v46 }
 0x77e   : > { %v1869_v11 = vpop.f32.mrb[6].mxu1 }
 0x77f   : > { %v4282_v13 = vpop.f32.mrb[7].mxu1  ;;  %4286 = vmatmul.mubr.msk.f32.vlgmr.msra.gmra.mrb[10].mxu0 %vm1232_vm3, %v1869_v11 }
 0x780   : > { %4295 = vmatprep.mubr.msk.f32.mxu0 %vm4777_vm1, %v4778_v7 }
 0x782   : > { %v2021_v14 = vpop.f32.mrb[8].mxu1 }
 0x783   : > { %v2025_v15 = vmul.f32 0.35355338, %v2021_v14  ;;  %v4292_v16 = vpop.f32.mrb[9].mxu1  ;;  %v4087_v14 = vld [vmem:[%s5641_s17] ss:$0 sm:$0xff] }
 0x785   : > { %v2026_v17 = vsel %vm1232_vm3, %v2025_v15, -inf }
 0x786   : > { %2027 = vmax.xlane.f32.xlu0 %v2026_v17 }
 0x79c   : > { %2037 = vrot.lane.b32.xlu0 %v5135_v12, %s4789_s11  ;;  %s5634_s11 = scalar_lea.vmem %s5633_s4, %s5005_s0 }
 0x79d   : > { %v4085_v61 = vld [vmem:[%s5634_s11] ss:$0 sm:$0xff] }
 0x813   : > { %v2028_v18 = vpop.xlane.xlu0 %2027 }
 0x814   : > { %v2029_v19 = vsub.f32 %v2025_v15, %v2028_v18 }
 0x816   : > { %v2030_v20 = vmul.f32 1.442695, %v2029_v19  ;;  %v5290_v19 = vld [vmem:[%s5643_s8] ss:$0 sm:$0xff] }
 0x817   : > { %v2038_v21 = vpop.permute.xlu0 %2037 }
 0x818   : > { %4654 = vpow2.f32 %v2030_v20  ;;  %4294 = vmatpush3.msra.mxu0 %v2038_v21 }
 0x819   : > { %4448 = vmatprep.subr.bf16.mxu0 %v4776_v4 }
 0x822   : > { %v4655_v22 = vpop.eup %4654 }
 0x823   : > { %v2032_v23 = vsel %vm1232_vm3, %v4655_v22, 0.0 }
 0x824   : > { %2033 = vadd.xlane.f32.xlu1 %v2032_v23 }
 0x852   : > { %v1942_v25 = vpop.f32.mrb[10].mxu0 }
 0x853   : > { %v1946_v26 = vadd.f32 %v1942_v25, %v1704_v54  ;;  %v4287_v27 = vpop.f32.mrb[11].mxu0  ;;  %v2227_v54 = vld [vmem:[%s5051_s25 + $0x10] sm:$0xff] }
 0x854   : > { %v4452_v56 = vpack.c.bf16 %v2228_v55, %v2227_v54 }
 0x8b1   : > { %v2034_v28 = vpop.xlane.xlu1 %2033 }
 0x8b2   : > { %4656 = vrcp.f32 %v2034_v28 }
 0x8bc   : > { %v4657_v12 = vpop.eup %4656 }
 0x8bd   : > { %v2036_v29 = vmul.f32 %v4657_v12, %v4655_v22 }
 0x8bf   : > { %4296 = vmatmul.mubr.msk.f32.vlgmr.msra.gmra.mrb[12].mxu0 %vm1232_vm3, %v2036_v29 }
 0x8c0   : > { %4311 = vmatprep.mubr.msk.f32.mxu0 %vm4777_vm1, %v4778_v7  ;;  %4450 = vmatpush3.bf16.msra.mxu0 %v4449_v53 }
 0x8c1   : > { %4451 = vmatprep.subr.bf16.mxu0 %v4776_v4 }
 0x8c4   : > { %4453 = vmatpush3.bf16.msra.mxu0 %v4452_v56 }
 0x8c5   : > { %4462 = vmatprep.subr.bf16.mxu0 %v4776_v4 }
 0x992   : > { %v2109_v30 = vpop.f32.mrb[12].mxu0 }
 0x993   : > { %v4297_v31 = vpop.f32.mrb[13].mxu0  ;;  %4301 = vmatmul.mubr.msk.f32.vlgmr.msra.gmra.mrb[10].mxu1 %vm1232_vm3, %v2109_v30 }
 0x994   : > { %4457 = vmatpush3.bf16.msra.mxu1 %v4454_v46  ;;  %4322 = vmatprep.mubr.msk.f32.mxu1 %vm1150_vm2, %v1136_v49 }
 0xa66   : > { %v2182_v33 = vpop.f32.mrb[10].mxu1 }
 0xa67   : > { %v2186_v34 = vadd.f32 %v2182_v33, %v1946_v26  ;;  %v4302_v35 = vpop.f32.mrb[11].mxu1 }
 0xa69   : > { %v2193_v36 = vadd.f32 %v4084_v32, %v2186_v34 }
 0xa6b   : > { %v2194_v37 = vadd.f32 %v2193_v36, %v5123_v9  ;;  %v2311_v9 = vld [vmem:[%s5060_s5 + $0x10] sm:$0xff]  ;;  %s5637_s5 = scalar_lea.vmem %s5531_s12, %s5005_s0 }
 0xa6c   : > { %v4458_v48 = vpack.c.bf16 %v2312_v47, %v2311_v9  ;;  %v4089_v2 = vld [vmem:[%s5637_s5] ss:$0 sm:$0xff]  ;;  %s5650_s5 = scalar_lea.vmem %s5649_s28, %s5005_s0 }
 0xa6d   : > { %v2197_v38 = vsel %vm1150_vm2, %v2194_v37, 0.0 }
 0xa6e   : > { %2198 = vadd.xlane.f32.xlu1 %v2197_v38  ;;  %4459 = vmatprep.subr.bf16.mxu1 %v4458_v48 }
 0xa6f   : > { %4461 = vmatpush3.bf16.msra.mxu1 %v4458_v48 }
 0xa70   : > { %4466 = vmatprep.subr.bf16.mxu1 %v4776_v4 }
 0xa72   : > { %4323 = vmatmul.mubr.msk.f32.vlgmr.msra.gmra.mrb[12].mxu1 %vm1150_vm2, %v1137_v50 }
 0xa73   : > { %4336 = vmatprep.mubr.msk.f32.mxu1 %vm4777_vm1, %v4778_v7 }
 0xafb   : > { %v2199_v39 = vpop.xlane.xlu1 %2198 }
 0xafc   : > { %v2201_v40 = vmul.f32 0.03125, %v2199_v39 }
 0xafe   : > { %v2202_v41 = vsub.f32 %v2194_v37, %v2201_v40 }
 0xb00   : > { %v2203_v42 = vmul.f32 %v2202_v41, %v2202_v41 }
 0xb02   : > { %v2204_v43 = vsel %vm1150_vm2, %v2203_v42, 0.0 }
 0xb03   : > { %2205 = vadd.xlane.f32.xlu1 %v2204_v43 }
 0xb45   : > { %v4324_v3 = vpop.f32.mrb[12].mxu1 }
 0xb46   : > { %v2398_v5 = vadd.f32 %v4324_v3, %v4089_v2  ;;  %v2392_v6 = vpop.f32.mrb[13].mxu1 }
 0xb47   : > { %v2393_v8 = vadd.f32 %v4089_v2, %v2392_v6 }
 0xb49   : > { %v5269_v11 = vpack.i.bf16 %v2398_v5, %v2393_v8  ;;  %v4463_v13 = vpack.c.bf16 %v2398_v5, %v2393_v8 }
 0xb4b   : > { %4613 = vrot.lane.b32.xlu0 %v5269_v11, %s4779_s2 }
 0xb90   : > { %v2206_v57 = vpop.xlane.xlu1 %2205 }
 0xb91   : > { %v2207_v58 = vmul.f32 0.03125, %v2206_v57 }
 0xb93   : > { %v2208_v59 = vadd.f32 1e-05, %v2207_v58 }
 0xb95   : > { %4658 = vrsqrt.f32 %v2208_v59 }
 0xb9f   : > { %v4659_v60 = vpop.eup %4658 }
 0xba0   : > { %v2210_v62 = vmul.f32 %v4659_v60, %v2202_v41  ;;  %v2401_v41 = vld [vmem:[%s5069_s29] sm:$0xff] }
 0xba2   : > { %v2217_v0 = vmul.f32 %v4085_v61, %v2210_v62  ;;  %v2402_v62 = vld [vmem:[%s5069_s29 + $0x8] sm:$0xff] }
 0xba4   : > { %v5252_v1 = vadd.f32 %v4086_v63, %v2217_v0 }
 0xba6   : > { %4312 = vmatmul.mubr.msk.f32.vlgmr.msra.gmra.mrb[14].mxu0 %vm1150_vm2, %v5252_v1 }
 0xba7   : > { %4329 = vmatprep.mubr.msk.f32.mxu0 %vm4777_vm1, %v4778_v7  ;;  %4465 = vmatpush3.bf16.xpose.msk.msra.mxu0 %vm5265_vm4, %v4463_v13 }
 0xba8   : > { %4474 = vmatprep.subr.bf16.mxu0 %v4776_v4 }
 0xbbd   : > { %v4614_v34 = vpop.permute.xlu0 %4613 }
 0xbbe   : > { %v4616_v36 = vunpack.i.h.bf16 %v4614_v34  ;;  %v4615_v37 = vunpack.i.l.bf16 %v4614_v34 }
 0xbc0   : > { %v4471_v39 = vpack.c.bf16 %v4616_v36, %v4615_v37 }
 0xc79   : > { %v2305_v15 = vpop.f32.mrb[14].mxu0 }
 0xc7a   : > { %v2306_v16 = vadd.f32 %v4087_v14, %v2305_v15  ;;  %v4313_v17 = vpop.f32.mrb[15].mxu0 }
 0xc7c   : > { %2586 = vrot.lane.b32.xlu0 %v2306_v16, %s4779_s2  ;;  %4330 = vmatmul.mubr.msk.f32.vlgmr.msra.gmra.mrb[16].mxu0 %vm1232_vm3, %v2306_v16  ;;  %s5654_s2 = sld [smem:[#allocation9_spill]] }
 0xc7d   : > { %4350 = vmatprep.mubr.msk.f32.mxu0 %vm4777_vm1, %v4778_v7 }
 0xc82   : > { %p4126_p1 = scmp.ne.s32.totalorder %s5654_s2, 1 }
 0xc83   : > { %vm4792_vm10 = vmmov (!%p4126_p1), 0  }
 0xcee   : > { %v2587_v40 = vpop.permute.xlu0 %2586 }
 0xd4f   : > { %v2481_v18 = vpop.f32.mrb[16].mxu0 }
 0xd50   : > { %v2485_v20 = vmul.f32 0.35355338, %v2481_v18  ;;  %v4331_v21 = vpop.f32.mrb[17].mxu0 }
 0xd52   : > { %v2492_v22 = vadd.f32 %v5290_v19, %v2485_v20 }
 0xd54   : > { %v2494_v23 = vsel %vm2493_vm5, %v2492_v22, -inf }
 0xd55   : > { %2495 = vmax.xlane.f32.xlu1 %v2494_v23 }
 0xde2   : > { %v2496_v24 = vpop.xlane.xlu1 %2495 }
 0xde3   : > { %v2497_v25 = vsub.f32 %v2492_v22, %v2496_v24 }
 0xde5   : > { %v2498_v26 = vmul.f32 1.442695, %v2497_v25 }
 0xde7   : > { %4660 = vpow2.f32 %v2498_v26 }
 0xdf1   : > { %v4661_v27 = vpop.eup %4660 }
 0xdf2   : > { %v2500_v28 = vsel %vm2493_vm5, %v4661_v27, 0.0 }
 0xdf3   : > { %2501 = vadd.xlane.f32.xlu1 %v2500_v28 }
 0xe04   : > { %4608 = vrot.lane.b32.xlu1 %v5269_v11, %s4780_s27 }
 0xe80   : > { %v2502_v12 = vpop.xlane.xlu1 %2501 }
 0xe81   : > { %4662 = vrcp.f32 %v2502_v12 }
 0xe84   : > { %v4609_v29 = vpop.permute.xlu1 %4608 }
 0xe85   : > { %v4611_v30 = vunpack.i.h.bf16 %v4609_v29  ;;  %v4610_v31 = vunpack.i.l.bf16 %v4609_v29 }
 0xe87   : > { %v4467_v33 = vpack.c.bf16 %v4611_v30, %v4610_v31 }
 0xe89   : > { %4469 = vmatpush3.bf16.msk.msra.mxu1 %vm5297_vm8, %v4467_v33 }
 0xe8a   : > { %4470 = vmatprep.subr.bf16.mxu1 %v4776_v4 }
 0xe8b   : > { %v4663_v35 = vpop.eup %4662 }
 0xe8c   : > { %v2504_v38 = vmul.f32 %v4663_v35, %v4661_v27 }
 0xe8e   : > { %4337 = vmatmul.mubr.msk.f32.vlgmr.msra.gmra.mrb[14].mxu1 %vm2493_vm5, %v2504_v38 }
 0xe8f   : > { %4343 = vmatprep.mubr.msk.f32.mxu1 %vm4777_vm1, %v4778_v7 }
 0xe92   : > { %4473 = vmatpush3.bf16.xpose.msk.msra.mxu1 %vm5265_vm4, %v4471_v39 }
 0xe93   : > { %4358 = vmatprep.subr.mxu1 %v4778_v7 }
 0xe99   : > { %4344 = vmatmul.mubr.msk.f32.vlgmr.msra.gmra.mrb[16].mxu1 %vm1232_vm3, %v2587_v40 }
 0xe9a   : > { %4360 = vmatprep.mubr.msk.f32.mxu1 %vm4777_vm1, %v4778_v7  ;;  %4359 = vmatpush3.msra.mxu1 %v2401_v41 }
 0xe9b   : > { %4482 = vmatprep.subr.bf16.mxu1 %v4776_v4 }
 0xf61   : > { %v2582_v42 = vpop.f32.mrb[14].mxu1 }
 0xf62   : > { %v4338_v43 = vpop.f32.mrb[15].mxu1  ;;  %4361 = vmatmul.mubr.msk.f32.vlgmr.msra.gmra.mrb[18].mxu1 %vm1232_vm3, %v2582_v42 }
 0xf63   : > { %4374 = vmatprep.mubr.msk.f32.mxu1 %vm4777_vm1, %v4778_v7 }
 0xf6c   : > { %v2664_v44 = vpop.f32.mrb[16].mxu1 }
 0xf6d   : > { %v2668_v45 = vmul.f32 0.35355338, %v2664_v44  ;;  %v4345_v46 = vpop.f32.mrb[17].mxu1 }
 0xf6f   : > { %v2669_v9 = vadd.f32 %v5290_v19, %v2668_v45 }
 0xf71   : > { %v2670_v47 = vsel %vm2493_vm5, %v2669_v9, -inf }
 0xf72   : > { %2671 = vmax.xlane.f32.xlu0 %v2670_v47 }
 0xf88   : > { %4618 = vrot.lane.b32.xlu0 %v5269_v11, %s4781_s1  ;;  %s5646_s1 = scalar_lea.vmem %s5533_s14, %s5005_s0 }
 0xf8c   : > { %2907 = vrot.lane.b32.xlu0 %v2306_v16, %s4785_s30 }
 0xf90   : > { %4628 = vrot.lane.b32.xlu0 %v5269_v11, %s4787_s26 }
 0xf94   : > { %3156 = vrot.lane.b32.xlu0 %v2306_v16, %s4787_s26 }
 0xfff   : > { %v2672_v48 = vpop.xlane.xlu0 %2671 }
0x1000   : > { %v2673_v49 = vsub.f32 %v2669_v9, %v2672_v48  ;;  %v2403_v9 = vld [vmem:[%s5069_s29 + $0x10] sm:$0xff] }
0x1002   : > { %v2674_v50 = vmul.f32 1.442695, %v2673_v49 }
0x1003   : > { %v4619_v51 = vpop.permute.xlu0 %4618 }
0x1004   : > { %4664 = vpow2.f32 %v2674_v50  ;;  %v4621_v52 = vunpack.i.h.bf16 %v4619_v51  ;;  %v4620_v53 = vunpack.i.l.bf16 %v4619_v51 }
0x1006   : > { %v4475_v54 = vpack.c.bf16 %v4621_v52, %v4620_v53 }
0x1007   : > { %v2908_v0 = vpop.permute.xlu0 %2907 }
0x1008   : > { %4477 = vmatpush3.bf16.msk.msra.mxu0 %vm5297_vm8, %v4475_v54 }
0x1009   : > { %4353 = vmatprep.subr.mxu0 %v4778_v7 }
0x100b   : > { %v4629_v8 = vpop.permute.xlu0 %4628 }
0x100c   : > { %v4631_v14 = vunpack.i.h.bf16 %v4629_v8  ;;  %v4630_v15 = vunpack.i.l.bf16 %v4629_v8 }
0x100e   : > { %v4665_v55 = vpop.eup %4664  ;;  %v4487_v16 = vpack.c.bf16 %v4631_v14, %v4630_v15  ;;  %v3442_v14 = vld [vmem:[%s5086_s22] sm:$0xff]  ;;  %v3443_v15 = vld [vmem:[%s5086_s22 + $0x8] sm:$0xff] }
0x100f   : > { %v2676_v56 = vsel %vm2493_vm5, %v4665_v55, 0.0  ;;  %v3157_v17 = vpop.permute.xlu0 %3156 }
0x1010   : > { %2677 = vadd.xlane.f32.xlu1 %v2676_v56 }
0x1021   : > { %4623 = vrot.lane.b32.xlu1 %v5269_v11, %s4785_s30 }
0x1035   : > { %v2903_v57 = vpop.f32.mrb[18].mxu1 }
0x1036   : > { %v4362_v58 = vpop.f32.mrb[19].mxu1 }
0x109d   : > { %v2678_v59 = vpop.xlane.xlu1 %2677 }
0x109e   : > { %4666 = vrcp.f32 %v2678_v59 }
0x10a1   : > { %v4624_v63 = vpop.permute.xlu1 %4623 }
0x10a2   : > { %v4626_v2 = vunpack.i.h.bf16 %v4624_v63  ;;  %v4625_v3 = vunpack.i.l.bf16 %v4624_v63 }
0x10a4   : > { %v4479_v5 = vpack.c.bf16 %v4626_v2, %v4625_v3 }
0x10a8   : > { %v4667_v60 = vpop.eup %4666 }
0x10a9   : > { %v2680_v61 = vmul.f32 %v4667_v60, %v4665_v55  ;;  %v2404_v55 = vld [vmem:[%s5069_s29 + $0x18] sm:$0xff]  ;;  %v4117_v60 = vld [vmem:[%s5646_s1] ss:$0 sm:$0xff]  ;;  %s5655_s29 = sld [smem:[#allocation42_spill]] (!%p4126_p1) }
0x10ab   : > { %4351 = vmatmul.mubr.msk.f32.vlgmr.msra.gmra.mrb[18].mxu0 %vm2493_vm5, %v2680_v61 }
0x10ac   : > { %4354 = vmatpush3.msra.mxu0 %v2402_v62  ;;  %4355 = vmatprep.mubr.msk.f32.mxu0 %vm4777_vm1, %v4778_v7 }
0x10ad   : > { %4478 = vmatprep.subr.bf16.mxu0 %v4776_v4 }
0x117e   : > { %v2757_v6 = vpop.f32.mrb[18].mxu0 }
0x117f   : > { %v4352_v13 = vpop.f32.mrb[19].mxu0  ;;  %4356 = vmatmul.mubr.msk.f32.vlgmr.msra.gmra.mrb[20].mxu0 %vm1232_vm3, %v2757_v6 }
0x1180   : > { %4481 = vmatpush3.bf16.xpose.msk.msra.mxu0 %vm5265_vm4, %v4479_v5  ;;  %4367 = vmatprep.mubr.msk.f32.mxu0 %vm4777_vm1, %v4778_v7 }
0x1181   : > { %4486 = vmatprep.subr.bf16.mxu0 %v4776_v4 }
0x1187   : > { %4368 = vmatmul.mubr.msk.f32.vlgmr.msra.gmra.mrb[22].mxu0 %vm1232_vm3, %v2908_v0 }
0x1188   : > { %4489 = vmatpush3.bf16.xpose.msk.msra.mxu0 %vm5265_vm4, %v4487_v16  ;;  %4386 = vmatprep.mubr.msk.f32.mxu0 %vm4777_vm1, %v4778_v7  ;;  %v4495_v16 = vpack.c.bf16 %v3443_v15, %v3442_v14 }
0x1189   : > { %4494 = vmatprep.subr.bf16.mxu0 %v4776_v4 }
0x118f   : > { %4387 = vmatmul.mubr.msk.f32.vlgmr.msra.gmra.mrb[24].mxu0 %vm1232_vm3, %v3157_v17  ;;  %v3445_v17 = vld [vmem:[%s5086_s22 + $0x18] sm:$0xff] }
0x1190   : > { %4409 = vmatprep.mubr.msk.f32.mxu0 %vm4777_vm1, %v4778_v7  ;;  %4496 = vmatpush3.bf16.msra.mxu0 %v4495_v16 }
0x1191   : > { %4497 = vmatprep.subr.bf16.mxu0 %v4776_v4 }
0x1252   : > { %v2830_v18 = vpop.f32.mrb[20].mxu0 }
0x1253   : > { %v5352_v20 = vadd.f32 %v2903_v57, %v2830_v18  ;;  %v4357_v21 = vpop.f32.mrb[21].mxu0 }
0x1254   : > { %v3528_v21 = vld [vmem:[%s5100_s15 + $0x8] sm:$0xff] }
0x125a   : > { %v2985_v22 = vpop.f32.mrb[22].mxu0 }
0x125b   : > { %v2989_v23 = vmul.f32 0.35355338, %v2985_v22  ;;  %v4369_v24 = vpop.f32.mrb[23].mxu0  ;;  %v3529_v22 = vld [vmem:[%s5100_s15 + $0x10] sm:$0xff] }
0x125c   : > { %v3530_v24 = vld [vmem:[%s5100_s15 + $0x18] sm:$0xff] }
0x125d   : > { %v2990_v10 = vadd.f32 %v5290_v19, %v2989_v23 }
0x125f   : > { %v2991_v25 = vsel %vm2493_vm5, %v2990_v10, -inf }
0x1260   : > { %2992 = vmax.xlane.f32.xlu1 %v2991_v25  ;;  %v3531_v25 = vld [vmem:[%s5100_s15 + $0x20] sm:$0xff] }
0x1262   : > { %v3234_v26 = vpop.f32.mrb[24].mxu0 }
0x1263   : > { %v3238_v27 = vmul.f32 0.35355338, %v3234_v26  ;;  %v4388_v28 = vpop.f32.mrb[25].mxu0  ;;  %v3532_v26 = vld [vmem:[%s5100_s15 + $0x28] sm:$0xff] }
0x1265   : > { %v3239_v12 = vadd.f32 %v5290_v19, %v3238_v27  ;;  %v4507_v27 = vpack.c.bf16 %v3532_v26, %v3531_v25 }
0x1267   : > { %v3240_v29 = vsel %vm2493_vm5, %v3239_v12, -inf }
0x1268   : > { %3241 = vmax.xlane.f32.xlu1 %v3240_v29 }
0x12ed   : > { %v2993_v30 = vpop.xlane.xlu1 %2992 }
0x12ee   : > { %v2994_v31 = vsub.f32 %v2990_v10, %v2993_v30  ;;  %v4504_v10 = vpack.c.bf16 %v3530_v24, %v3529_v22 }
0x12f0   : > { %v2995_v33 = vmul.f32 1.442695, %v2994_v31 }
0x12f2   : > { %4668 = vpow2.f32 %v2995_v33 }
0x12f5   : > { %v3242_v34 = vpop.xlane.xlu1 %3241 }
0x12f6   : > { %v3243_v35 = vsub.f32 %v3239_v12, %v3242_v34  ;;  %v4119_v34 = vld [vmem:[%s5650_s5] ss:$0 sm:$0xff]  ;;  %s5657_s5 = sld [smem:[#allocation43_spill]] (!%p4126_p1) }
0x12f8   : > { %v3244_v36 = vmul.f32 1.442695, %v3243_v35 }
0x12fa   : > { %4670 = vpow2.f32 %v3244_v36  ;;  %v3533_v36 = vld [vmem:[%s5100_s15 + $0x30] sm:$0xff] }
0x12fc   : > { %v4669_v37 = vpop.eup %4668 }
0x12fd   : > { %v2997_v38 = vsel %vm2493_vm5, %v4669_v37, 0.0 }
0x12fe   : > { %2998 = vadd.xlane.f32.xlu0 %v2997_v38 }
0x1304   : > { %v4671_v39 = vpop.eup %4670 }
0x1305   : > { %v3246_v40 = vsel %vm2493_vm5, %v4671_v39, 0.0 }
0x1306   : > { %3247 = vadd.xlane.f32.xlu1 %v3246_v40 }
0x1314   : > { %4633 = vrot.lane.b32.xlu0 %v5269_v11, %s4784_s7  ;;  %s5647_s7 = sld [smem:[#allocation35_spill]] }
0x1317   : > { %4638 = vrot.lane.b32.xlu1 %v5269_v11, %s4786_s21 }
0x131a   : > { %s5648_s30 = scalar_lea.vmem %s5647_s7, %s5005_s0 }
0x131b   : > { %v4118_v31 = vld [vmem:[%s5648_s30] ss:$0 sm:$0xff] }
0x138b   : > { %v2999_v19 = vpop.xlane.xlu0 %2998 }
0x138c   : > { %4672 = vrcp.f32 %v2999_v19 }
0x138f   : > { %v4634_v41 = vpop.permute.xlu0 %4633 }
0x1390   : > { %v4636_v42 = vunpack.i.h.bf16 %v4634_v41  ;;  %v4635_v43 = vunpack.i.l.bf16 %v4634_v41 }
0x1392   : > { %v4483_v44 = vpack.c.bf16 %v4636_v42, %v4635_v43  ;;  %v4122_v43 = vld [vmem:[%s1121_s13] ss:$0 sm:$0xff] }
0x1393   : > { %v3248_v11 = vpop.xlane.xlu1 %3247 }
0x1394   : > { %4485 = vmatpush3.bf16.msk.msra.mxu1 %vm5297_vm8, %v4483_v44  ;;  %4674 = vrcp.f32 %v3248_v11 }
0x1395   : > { %4377 = vmatprep.subr.mxu1 %v4778_v7 }
0x1396   : > { %v4673_v45 = vpop.eup %4672 }
0x1397   : > { %v3001_v46 = vmul.f32 %v4673_v45, %v4669_v37  ;;  %v4639_v47 = vpop.permute.xlu1 %4638  ;;  %v3534_v37 = vld [vmem:[%s5100_s15 + $0x38] sm:$0xff] }
0x1398   : > { %v4641_v48 = vunpack.i.h.bf16 %v4639_v47  ;;  %v4640_v49 = vunpack.i.l.bf16 %v4639_v47  ;;  %v4510_v38 = vpack.c.bf16 %v3534_v37, %v3533_v36 }
0x1399   : > { %4375 = vmatmul.mubr.msk.f32.vlgmr.msra.gmra.mrb[20].mxu1 %vm2493_vm5, %v3001_v46 }
0x139a   : > { %4378 = vmatpush3.msra.mxu1 %v2403_v9  ;;  %4379 = vmatprep.mubr.msk.f32.mxu1 %vm4777_vm1, %v4778_v7  ;;  %v4491_v51 = vpack.c.bf16 %v4641_v48, %v4640_v49 }
0x139b   : > { %4490 = vmatprep.subr.bf16.mxu1 %v4776_v4 }
0x139e   : > { %v4675_v50 = vpop.eup %4674 }
0x139f   : > { %v3250_v54 = vmul.f32 %v4675_v50, %v4671_v39  ;;  %v4120_v39 = vld [vmem:[%s1113_s20] ss:$0 sm:$0xff] }
0x146c   : > { %v3078_v52 = vpop.f32.mrb[20].mxu1 }
0x146d   : > { %v4376_v53 = vpop.f32.mrb[21].mxu1  ;;  %4380 = vmatmul.mubr.msk.f32.vlgmr.msra.gmra.mrb[22].mxu1 %vm1232_vm3, %v3078_v52 }
0x146e   : > { %4493 = vmatpush3.bf16.msk.msra.mxu1 %vm5297_vm8, %v4491_v51  ;;  %4393 = vmatprep.mubr.msk.f32.mxu1 %vm4777_vm1, %v4778_v7 }
0x146f   : > { %4396 = vmatprep.subr.mxu1 %v4778_v7 }
0x1471   : > { %4394 = vmatmul.mubr.msk.f32.vlgmr.msra.gmra.mrb[24].mxu1 %vm2493_vm5, %v3250_v54 }
0x1472   : > { %4398 = vmatprep.mubr.msk.f32.mxu1 %vm4777_vm1, %v4778_v7  ;;  %4397 = vmatpush3.msra.mxu1 %v2404_v55 }
0x1473   : > { %4500 = vmatprep.subr.bf16.mxu1 %v4776_v4 }
0x1540   : > { %v3151_v56 = vpop.f32.mrb[22].mxu1 }
0x1541   : > { %v3155_v32 = vadd.f32 %v3151_v56, %v5352_v20  ;;  %v4381_v57 = vpop.f32.mrb[23].mxu1  ;;  %v3527_v20 = vld [vmem:[%s5100_s15] sm:$0xff] }
0x1542   : > { %v4501_v23 = vpack.c.bf16 %v3528_v21, %v3527_v20  ;;  %v4124_v56 = vld [vmem:[%s1124_s23] ss:$0 sm:$0xff] }
0x1543   : > { %v4125_v57 = vld [vmem:[%s1127_s16] ss:$0 sm:$0xff] }
0x1544   : > { %v3327_v58 = vpop.f32.mrb[24].mxu1 }
0x1545   : > { %v4395_v59 = vpop.f32.mrb[25].mxu1  ;;  %4399 = vmatmul.mubr.msk.f32.vlgmr.msra.gmra.mrb[26].mxu1 %vm1232_vm3, %v3327_v58 }
0x1546   : > { %4428 = vmatprep.mubr.msk.f32.mxu1 %vm4777_vm1, %v4778_v7  ;;  %4502 = vmatpush3.bf16.msra.mxu1 %v4501_v23 }
0x1547   : > { %4503 = vmatprep.subr.bf16.mxu1 %v4776_v4 }
0x154a   : > { %4505 = vmatpush3.bf16.msra.mxu1 %v4504_v10 }
0x154b   : > { %4506 = vmatprep.subr.bf16.mxu1 %v4776_v4 }
0x154e   : > { %4508 = vmatpush3.bf16.msra.mxu1 %v4507_v27 }
0x154f   : > { %4509 = vmatprep.subr.bf16.mxu1 %v4776_v4 }
0x1552   : > { %4511 = vmatpush3.bf16.msra.mxu1 %v4510_v38 }
0x1618   : > { %v3400_v61 = vpop.f32.mrb[26].mxu1 }
0x1619   : > { %v3404_v62 = vadd.f32 %v3400_v61, %v3155_v32  ;;  %v4400_v63 = vpop.f32.mrb[27].mxu1 }
0x161a   : > { %v4791_v63 = vmov (!%p4126_p1), 0.0|0.0  }
0x161b   : > { %v3411_v0 = vadd.f32 %v4117_v60, %v3404_v62  ;;  %v3651_v60 = vld [vmem:[%s5655_s29] sm:$0xff] (!%p4126_p1) }
0x161d   : > { %v3412_v2 = vadd.f32 %v3411_v0, %v5252_v1  ;;  %v3444_v1 = vld [vmem:[%s5086_s22 + $0x10] sm:$0xff]  ;;  %s5656_s22 = smov (!%p4126_p1), %s5655_s29 }
0x161e   : > { %v4498_v18 = vpack.c.bf16 %v3445_v17, %v3444_v1  ;;  %v3652_v61 = vld [vmem:[%s5656_s22 + $0x8] sm:$0xff] (!%p4126_p1)  ;;  %v3653_v62 = vld [vmem:[%s5656_s22 + $0x10] sm:$0xff] (!%p4126_p1) }
0x161f   : > { %v3415_v3 = vsel %vm1150_vm2, %v3412_v2, 0.0  ;;  %v4513_v0 = vpack.c.bf16 (!%p4126_p1), %v3652_v61, %v3651_v60 }
0x1620   : > { %3416 = vadd.xlane.f32.xlu0 %v3415_v3  ;;  %4499 = vmatpush3.bf16.msra.mxu0 %v4498_v18  ;;  %v4793_v3 = vmov (!%p4126_p1), 0.0  }
0x1621   : > { %4512 = vmatprep.subr.bf16.mxu0 (!%p4126_p1), %v4791_v63 }
0x16ad   : > { %v3417_v5 = vpop.xlane.xlu0 %3416 }
0x16ae   : > { %v3418_v7 = vmul.f32 0.03125, %v3417_v5 }
0x16b0   : > { %v3419_v6 = vsub.f32 %v3412_v2, %v3418_v7  ;;  %v3654_v2 = vld [vmem:[%s5656_s22 + $0x18] sm:$0xff] (!%p4126_p1)  ;;  %v4127_v7 = vld [vmem:[%s5657_s5] ss:$0 sm:$0xff] (!%p4126_p1) }
0x16b1   : > { %v4516_v5 = vpack.c.bf16 (!%p4126_p1), %v3654_v2, %v3653_v62 }
0x16b2   : > { %v3420_v8 = vmul.f32 %v3419_v6, %v3419_v6 }
0x16b4   : > { %v3421_v13 = vsel %vm1150_vm2, %v3420_v8, 0.0 }
0x16b5   : > { %3422 = vadd.xlane.f32.xlu1 %v3421_v13 }
0x1742   : > { %v3423_v28 = vpop.xlane.xlu1 %3422 }
0x1743   : > { %v3424_v12 = vmul.f32 0.03125, %v3423_v28 }
0x1745   : > { %v3425_v29 = vadd.f32 1e-05, %v3424_v12 }
0x1747   : > { %4676 = vrsqrt.f32 %v3425_v29 }
0x1751   : > { %v4677_v30 = vpop.eup %4676 }
0x1752   : > { %v3427_v33 = vmul.f32 %v4677_v30, %v3419_v6 }
0x1754   : > { %v3434_v35 = vmul.f32 %v4118_v31, %v3427_v33 }
0x1756   : > { %v3441_v4 = vadd.f32 %v4119_v34, %v3434_v35 }
0x1758   : > { %4410 = vmatmul.mubr.msk.f32.vlgmr.msra.gmra.mrb[26].mxu0 %vm1150_vm2, %v3441_v4 }
0x1759   : > { %4439 = vmatprep.mubr.msk.f32.mxu0 (!%p4126_p1), %vm4792_vm10, %v4793_v3  ;;  %4514 = vmatpush3.bf16.msra.mxu0 (!%p4126_p1), %v4513_v0 }
0x175a   : > { %4515 = vmatprep.subr.bf16.mxu0 (!%p4126_p1), %v4791_v63 }
0x175d   : > { %4517 = vmatpush3.bf16.msra.mxu0 (!%p4126_p1), %v4516_v5 }
0x182b   : > { %v3522_v40 = vpop.f32.mrb[26].mxu0 }
0x182c   : > { %v3523_v19 = vadd.f32 %v4120_v39, %v3522_v40  ;;  %v4411_v41 = vpop.f32.mrb[27].mxu0 }
0x182e   : > { %v3526_v42 = vmax.f32 %v3523_v19, 0.0 }
0x1830   : > { %4429 = vmatmul.mubr.msk.f32.vlgmr.msra.gmra.mrb[28].mxu1 %vm3542_vm9, %v3526_v42 }
0x1903   : > { %v3612_v44 = vpop.f32.mrb[28].mxu1 }
0x1904   : > { %v3613_v45 = vadd.f32 %v4122_v43, %v3612_v44  ;;  %v4430_v46 = vpop.f32.mrb[29].mxu1 }
0x1906   : > { %v3616_v9 = vadd.f32 %v3613_v45, %v3441_v4 }
0x1908   : > { %v3619_v11 = vsel %vm1150_vm2, %v3616_v9, 0.0 }
0x1909   : > { %3620 = vadd.xlane.f32.xlu0 %v3619_v11 }
0x1996   : > { %v3621_v47 = vpop.xlane.xlu0 %3620 }
0x1997   : > { %v3622_v48 = vmul.f32 0.03125, %v3621_v47 }
0x1999   : > { %v3623_v49 = vsub.f32 %v3616_v9, %v3622_v48 }
0x199b   : > { %v3624_v50 = vmul.f32 %v3623_v49, %v3623_v49 }
0x199d   : > { %v3625_v51 = vsel %vm1150_vm2, %v3624_v50, 0.0 }
0x199e   : > { %3626 = vadd.xlane.f32.xlu0 %v3625_v51 }
0x1a2b   : > { %v3627_v52 = vpop.xlane.xlu0 %3626 }
0x1a2c   : > { %v3628_v53 = vmul.f32 0.03125, %v3627_v52 }
0x1a2e   : > { %v3629_v54 = vadd.f32 1e-05, %v3628_v53 }
0x1a30   : > { %4678 = vrsqrt.f32 %v3629_v54 }
0x1a3a   : > { %v4679_v55 = vpop.eup %4678 }
0x1a3b   : > { %v3631_v32 = vmul.f32 %v4679_v55, %v3623_v49  ;;  %3650 = sbr.rel (%p4126_p1) target bundleno = 6936 (0x1b18), region = 128 }
0x1a3d   : > { %v3638_v58 = vmul.f32 %v4124_v56, %v3631_v32 }
0x1a3f   : > { %v3645_v59 = vadd.f32 %v4125_v57, %v3638_v58 }
0x1a41   : > { %3646 = vst.msk [vmem:[#allocation2] sm:$0xff] %vm1150_vm2, %v3645_v59  ;;  %4440 = vmatmul.mubr.msk.f32.vlgmr.msra.gmra.mrb[0].mxu0 (!%p4126_p1), %vm1150_vm2, %v3645_v59 }
0x1b14   : > { %v3731_v6 = vpop.f32.mrb[0].mxu0 }
0x1b15   : > { %v3732_v8 = vadd.f32 %v4127_v7, %v3731_v6  ;;  %v4441_v13 = vpop.f32.mrb[1].mxu0 }
0x1b17   : > { %3735 = vst [vmem:[%s1041_s9] sm:$0xff] %v3732_v8 }
0x1b18 PF: > { %s5658_s24 = sld [smem:[#allocation10_spill]]  ;;  %s5659_s4 = sld [smem:[#allocation7_spill]] }
0x1b19   : > { %s5661_s15 = sld [smem:[#allocation44_spill]]  ;;  %s3750_s6 = sshll.u32 %s1041_s9, 4  ;;  %s3751_s6 = int_to_ptr.vmem [resolvable:$true] %s3750_s6 }
0x1b1a   : > { %s4680_s2 = scalar_lea.vmem %s3751_s6, 128  ;;  %s4794_s27 = smov [#allocation3]  }
0x1b1b   : > { %p4681_p2 = scmp.ne.s32.totalorder %s3751_s6, %s4680_s2  ;;  %s4684_s1 = sshll.u32 %s4794_s27, 4  ;;  %s4685_s1 = int_to_ptr.vmem [resolvable:$false] %s4684_s1 }
0x1b1c   : > { %s4686_s29 = scalar_lea.vmem %s4685_s1, 256  ;;  %p4687_p6 = scmp.lt.s32.totalorder %s3751_s6, %s4685_s1 }
0x1b1d   : > { %p4682_p4 = pnand %p4681_p2, %p4974_p3  ;;  %p4688_p7 = scmp.lt.s32.totalorder %s4686_s29, %s4680_s2 }
0x1b1e   : > { %s4130_s17 = sshll.u32 %s5658_s24, 7  ;;  %s5662_s19 = sand.u32 1, %s5659_s4  }
0x1b1f   : > { %s5468_s20 = scalar_lea.hbm %s5661_s15, %s4130_s17  ;;  %s3737_s8 = scalar_lea.sflag [#allocation4], %s5662_s19 }
0x1b20   : > { %p4683_p5 = pneg %p4682_p4  ;;  %p4689_p8 = por %p4688_p7, %p4687_p6 }
0x1b22   : > { %p4690_p10 = pnand %p4689_p8, %p4683_p5 }
0x1b24   : > { %4693 = shalt.err (!%p4690_p10)
}
0x1b25   : > { %s4694_s3 = scalar_lea.hbm %s5468_s20, 128  ;;  %s4698_s30 = scalar_lea.hbm %s5661_s15, 256 }
0x1b26   : > { %p4695_p11 = scmp.ne.s32.totalorder %s5468_s20, %s4694_s3  ;;  %p4699_p0 = scmp.lt.u32.totalorder %s5468_s20, %s5661_s15 }
0x1b27   : > { %p4700_p1 = scmp.lt.u32.totalorder %s4698_s30, %s4694_s3  ;;  %p4702_p4 = scmp.lt.u32.totalorder %s4694_s3, %s5468_s20 }
0x1b28   : > { %p4696_p12 = pnand %p4695_p11, %p4974_p3 }
0x1b29   : > { %p4701_p2 = por %p4700_p1, %p4699_p0 }
0x1b2a   : > { %p4697_p13 = pneg %p4696_p12 }
0x1b2b   : > { %p4703_p5 = por %p4702_p4, %p4701_p2 }
0x1b2d   : > { %p4704_p6 = pnand %p4703_p5, %p4697_p13 }
0x1b2f   : > { %4707 = shalt.err (!%p4704_p6)
}
0x1b30   : > { %4518 = dma.vmem_to_hbm [thread:$0]  (%p4974_p3), %s3751_s6, 128, %s5468_s20, %s3737_s8  }
0x1b31 PF: > { %s5663_s16 = sld [smem:[#allocation13_spill]]  ;;  %s5664_s0 = sld [smem:[#allocation6_spill]] }
0x1b37   : > { %p4524_p7 = scmp.ge.s32.totalorder %s5663_s16, 2  ;;  %s3762_s28 = sand.u32 1, %s5664_s0  }
0x1b38   : > { %s3763_s5 = scalar_lea.sflag [#allocation4], %s3762_s28 }
0x1b39   : > { %p4521_p8 = pnand %p4524_p7, %p4984_p9 }
0x1b3b   : > { %4741 = dma.done.wait (!%p4521_p8), %s3763_s5, 128  }
0x1b3c   : > { %4743 = vsyncadd (!%p4521_p8), %s3763_s5, 4294967168  ;;  %s38_s1 = sadd.s32 1, %s5663_s16   ;;  %s5666_s29 = sld [smem:[#allocation7_spill]] }
0x1b3d   : > { %p35_p10 = scmp.ge.s32.totalorder %s38_s1, 6   ;;  %s5667_s2 = sld [smem:[#allocation8_spill]] }
0x1b3e   : > { %s5668_s6 = sld [smem:[#allocation18_spill]]  ;;  %s5669_s30 = sld [smem:[#allocation11_spill]] }
0x1b3f   : > { %s5670_s7 = sld [smem:[#allocation12_spill]]  ;;  %s5671_s3 = sld [smem:[#allocation14_spill]] }
0x1b40   : > { %s5672_s26 = sld [smem:[#allocation16_spill]]  ;;  %37 = sbr.rel (!%p35_p10) target bundleno = 28 (0x1c), region = 229 }
0x1b47   :  { %3768 = vsyncpa [#allocation4], 1 }
0x1b48   :  { %3770 = vsyncpa [#allocation4 + $0x1], 1 }

</bundles_post_ra>
